<compile_context>
chip_gen: v5e
topology: v5e:2x2
jax: 0.10.0
libtpu: 0.0.40
codegen_flags: <defaults>
</compile_context>

<pallas_src>
import functools

import jax
import jax.numpy as jnp
import numpy as np
from jax import lax
from jax.experimental import pallas as pl
from jax.experimental.pallas import tpu as pltpu

MEL_CHANNELS = 40
SLIDING_WIN_SIZE = 160

_LAYER_CFG = [
    # (c_in, c_out, k, stride, pad, relu_after)
    (MEL_CHANNELS, 32, 4, 2, 1, True),
    (32, 32, 4, 2, 1, True),
    (32, 64, 4, 2, 1, True),
    (64, 64, 4, 2, 1, True),
    (64, 64, 4, 1, 0, True),
    (64, 64, 7, 1, 0, False),
]


def _layer_meta():
    """Static per-layer (l_in, l_out, c_in, c_out, k, stride, pad, relu)."""
    meta = []
    l = SLIDING_WIN_SIZE
    for (c_in, c_out, k, s, p, relu) in _LAYER_CFG:
        l_out = (l + 2 * p - k) // s + 1
        meta.append((l, l_out, c_in, c_out, k, s, p, relu))
        l = l_out
    return tuple(meta)


_META = _layer_meta()          # ((160,80,...), (80,40,...), ..., (7,1,...))
_OUT_L = _META[-1][1]          # 1
_OUT_C = _META[-1][3]          # 64
assert _OUT_L == 1             # final layer batched across windows relies on this


# ----------------------------------------------------------------------------
# Fused encoder kernel: TB windows per grid step, everything in VMEM.
# args = (x_ref, w0, b0, ..., w5, b5, o_ref, scratch_for_padded_layers...)
#   w_i are pre-reshaped to (K*C_in, C_out); b_i to (1, C_out).
# ----------------------------------------------------------------------------
def _encoder_kernel(*args, meta, tb):
    n_layers = len(meta)
    x_ref = args[0]
    w_refs = [args[1 + 2 * i] for i in range(n_layers)]
    b_refs = [args[2 + 2 * i] for i in range(n_layers)]
    o_ref = args[1 + 2 * n_layers]
    scratch = args[2 + 2 * n_layers:]

    uses_scratch = [(s > 1 or p > 0)
                    for (_li, _lo, _ci, _co, _k, s, p, _r) in meta]

    # Write the zero padding rows once; scratch persists across grid steps and
    # across the TB windows within a step (only rows p:p+l_in are rewritten).
    @pl.when(pl.program_id(0) == 0)
    def _init_pads():
        si = 0
        for i, (l_in, _lo, c_in, _co, _k, _s, p, _r) in enumerate(meta):
            if uses_scratch[i]:
                if p > 0:
                    zero = jnp.zeros((p, c_in), jnp.float32)
                    scratch[si][0:p, :] = zero
                    scratch[si][p + l_in:p + l_in + p, :] = zero
                si += 1

    last_rows = []                               # per-window (1, K*C_in) im2col rows
    for b in range(tb):                          # unrolled window loop
        cur = x_ref[b]                           # (160, 40) channels-last activation
        si = 0
        for i, (l_in, l_out, c_in, c_out, k, s, p, relu) in enumerate(meta):
            if uses_scratch[i]:
                buf = scratch[si]
                si += 1
                buf[p:p + l_in, :] = cur         # pad rows untouched (already zero)
                taps = [buf[pl.ds(kk, l_out, stride=s), :] for kk in range(k)]
            else:
                # s=1, p=0 layers: build im2col straight from the value (no VMEM
                # round trip).
                taps = [cur[kk:kk + l_out, :] for kk in range(k)]
            x_col = jnp.concatenate(taps, axis=1) if k > 1 else taps[0]

            if i == n_layers - 1:
                # Final layer (L_out == 1): collect the (1, K*C_in) row, batch the
                # matmul over all TB windows below.
                last_rows.append(x_col)
            else:
                acc = jnp.dot(x_col, w_refs[i][...],
                              preferred_element_type=jnp.float32) + b_refs[i][...]
                cur = jnp.maximum(acc, 0.0) if relu else acc

    x_last = jnp.concatenate(last_rows, axis=0) if tb > 1 else last_rows[0]
    out = jnp.dot(x_last, w_refs[-1][...],
                  preferred_element_type=jnp.float32) + b_refs[-1][...]
    if meta[-1][-1]:                             # (no ReLU on the last layer here)
        out = jnp.maximum(out, 0.0)
    o_ref[...] = out.astype(o_ref.dtype)         # dense (TB, 64) store


# ----------------------------------------------------------------------------
# Wrapper: boundary transpose only, one pallas_call, batch-tiled grid.
# ----------------------------------------------------------------------------
def accent_encoder_conv_forward(frames, params, tb_max=8):
    """frames: (N, MEL_CHANNELS, SLIDING_WIN_SIZE) -> (N, 64, 1)  (PyTorch NCL)."""
    n, c_in, l_in = frames.shape
    assert c_in == MEL_CHANNELS and l_in == SLIDING_WIN_SIZE

    tb = int(min(tb_max, n))
    n_pad = ((n + tb - 1) // tb) * tb

    # NCL -> NLC once at the boundary; channels stay on the lane axis inside.
    x_nlc = jnp.transpose(frames, (0, 2, 1))
    if n_pad != n:
        x_nlc = jnp.pad(x_nlc, ((0, n_pad - n), (0, 0), (0, 0)))

    flat_inputs = [x_nlc]
    in_specs = [pl.BlockSpec((tb, SLIDING_WIN_SIZE, MEL_CHANNELS),
                             lambda i: (i, 0, 0))]
    scratch_shapes = []
    for (w, b), (l_i, l_o, ci, co, k, s, p, relu) in zip(params, _META):
        # (C_out, C_in, K) -> (K, C_in, C_out) -> (K*C_in, C_out): matches the
        # tap-major im2col concat in the kernel.
        w_flat = jnp.transpose(w, (2, 1, 0)).reshape(k * ci, co)
        b2 = b.reshape(1, co)
        flat_inputs += [w_flat, b2]
        in_specs += [
            pl.BlockSpec((k * ci, co), lambda i: (0, 0)),   # resident weights
            pl.BlockSpec((1, co), lambda i: (0, 0)),
        ]
        if s > 1 or p > 0:
            scratch_shapes.append(pltpu.VMEM((l_i + 2 * p, ci), jnp.float32))

    out2d = pl.pallas_call(
        functools.partial(_encoder_kernel, meta=_META, tb=tb),
        out_shape=jax.ShapeDtypeStruct((n_pad, _OUT_C), jnp.float32),
        grid=(n_pad // tb,),
        in_specs=in_specs,
        out_specs=pl.BlockSpec((tb, _OUT_C), lambda i: (i, 0)),
        scratch_shapes=scratch_shapes,
        compiler_params=pltpu.CompilerParams(
            # Sequential grid keeps the once-only pad init correct everywhere.
            # TODO(synk): v7x 2-TC: use pltpu.CORE_PARALLEL + per-step pad init.
            dimension_semantics=("arbitrary",),
        ),
    )(*flat_inputs)

    # (N, 64) -> (N, 64, 1): pure reshape at the boundary (no transpose).
    return out2d[:n].reshape(n, _OUT_C, _OUT_L)


# ----------------------------------------------------------------------------
# Parameter construction (deterministic, PyTorch-default-style uniform init)
# ----------------------------------------------------------------------------
def init_encoder_params(key):
    params = []
    for (c_in, c_out, k, _s, _p, _r) in _LAYER_CFG:
        key, kw, kb = jax.random.split(key, 3)
        bound = 1.0 / np.sqrt(c_in * k)
        w = jax.random.uniform(kw, (c_out, c_in, k), jnp.float32, -bound, bound)
        b = jax.random.uniform(kb, (c_out,), jnp.float32, -bound, bound)
        params.append((w, b))
    return params


# ----------------------------------------------------------------------------
# Pure-JAX reference (lax conv) for correctness check
# ----------------------------------------------------------------------------
def _reference_forward(frames, params):
    x = frames
    for (w, b), (_ci, _co, _k, s, p, relu) in zip(params, _LAYER_CFG):
        y = lax.conv_general_dilated(
            x, w,
            window_strides=(s,),
            padding=[(p, p)],
            dimension_numbers=("NCH", "OIH", "NCH"),
        )
        y = y + b[None, :, None]
        x = jnp.maximum(y, 0.0) if relu else y
    return x


if __name__ == "__main__":
    key = jax.random.PRNGKey(0)
    key, kx = jax.random.split(key)

    # Batch of 2 sliding windows, PyTorch NCL layout: (N, MEL_CHANNELS, L).
    frames = jax.random.normal(kx, (2, MEL_CHANNELS, SLIDING_WIN_SIZE), jnp.float32)
    params = init_encoder_params(key)

    fwd = jax.jit(accent_encoder_conv_forward)
    out = jax.block_until_ready(fwd(frames, params))

    ref = jax.block_until_ready(_reference_forward(frames, params))
    np.testing.assert_allclose(np.asarray(out), np.asarray(ref), rtol=1e-4, atol=1e-4)
    assert out.shape == (2, 64, 1), out.shape

    print("KERNEL_OK")
</pallas_src>

<mosaic_0001>
module attributes {stable_mosaic.version = 11 : i64} {
  func.func @_encoder_kernel(%arg0: i32, %arg1: memref<2x160x40xf32, #tpu.memory_space<vmem>>, %arg2: memref<160x32xf32, #tpu.memory_space<vmem>>, %arg3: memref<1x32xf32, #tpu.memory_space<vmem>>, %arg4: memref<128x32xf32, #tpu.memory_space<vmem>>, %arg5: memref<1x32xf32, #tpu.memory_space<vmem>>, %arg6: memref<128x64xf32, #tpu.memory_space<vmem>>, %arg7: memref<1x64xf32, #tpu.memory_space<vmem>>, %arg8: memref<256x64xf32, #tpu.memory_space<vmem>>, %arg9: memref<1x64xf32, #tpu.memory_space<vmem>>, %arg10: memref<256x64xf32, #tpu.memory_space<vmem>>, %arg11: memref<1x64xf32, #tpu.memory_space<vmem>>, %arg12: memref<448x64xf32, #tpu.memory_space<vmem>>, %arg13: memref<1x64xf32, #tpu.memory_space<vmem>>, %arg14: memref<2x64xf32, #tpu.memory_space<vmem>>, %arg15: memref<162x40xf32, #tpu.memory_space<vmem>>, %arg16: memref<82x32xf32, #tpu.memory_space<vmem>>, %arg17: memref<42x32xf32, #tpu.memory_space<vmem>>, %arg18: memref<22x64xf32, #tpu.memory_space<vmem>>) attributes {dimension_semantics = [#tpu.dimension_semantics<arbitrary>], iteration_bounds = array<i64: 1>, scalar_prefetch = 0 : i64, scratch_operands = 4 : i64, tpu.core_type = #tpu.core_type<tc>, window_params = [{transform_indices = @transform_0, window_bounds = array<i64: 2, 160, 40>}, {pipeline_mode = #tpu.pipeline_mode<synchronous>, transform_indices = @transform_1, window_bounds = array<i64: 160, 32>}, {pipeline_mode = #tpu.pipeline_mode<synchronous>, transform_indices = @transform_2, window_bounds = array<i64: 1, 32>}, {pipeline_mode = #tpu.pipeline_mode<synchronous>, transform_indices = @transform_3, window_bounds = array<i64: 128, 32>}, {pipeline_mode = #tpu.pipeline_mode<synchronous>, transform_indices = @transform_4, window_bounds = array<i64: 1, 32>}, {pipeline_mode = #tpu.pipeline_mode<synchronous>, transform_indices = @transform_5, window_bounds = array<i64: 128, 64>}, {pipeline_mode = #tpu.pipeline_mode<synchronous>, transform_indices = @transform_6, window_bounds = array<i64: 1, 64>}, {pipeline_mode = #tpu.pipeline_mode<synchronous>, transform_indices = @transform_7, window_bounds = array<i64: 256, 64>}, {pipeline_mode = #tpu.pipeline_mode<synchronous>, transform_indices = @transform_8, window_bounds = array<i64: 1, 64>}, {pipeline_mode = #tpu.pipeline_mode<synchronous>, transform_indices = @transform_9, window_bounds = array<i64: 256, 64>}, {pipeline_mode = #tpu.pipeline_mode<synchronous>, transform_indices = @transform_10, window_bounds = array<i64: 1, 64>}, {pipeline_mode = #tpu.pipeline_mode<synchronous>, transform_indices = @transform_11, window_bounds = array<i64: 448, 64>}, {pipeline_mode = #tpu.pipeline_mode<synchronous>, transform_indices = @transform_12, window_bounds = array<i64: 1, 64>}, {transform_indices = @transform_13, window_bounds = array<i64: 2, 64>}]} {
    %c0_i32 = arith.constant 0 : i32
    %0 = arith.cmpi eq, %arg0, %c0_i32 : i32
    %1 = arith.extui %0 : i1 to i32
    %c0_i32_0 = arith.constant 0 : i32
    %2 = arith.cmpi ne, %1, %c0_i32_0 : i32
    scf.if %2 {
      %cst_149 = arith.constant 0.000000e+00 : f32
      %158 = vector.broadcast %cst_149 : f32 to vector<1x40xf32>
      %c0_150 = arith.constant 0 : index
      %c0_151 = arith.constant 0 : index
      %159 = vector.load %arg15[%c0_150, %c0_151] : memref<162x40xf32, #tpu.memory_space<vmem>>, vector<1x40xf32>
      tpu.vector_store %arg15[%c0_150, %c0_151], %158 {strides = array<i32>} : memref<162x40xf32, #tpu.memory_space<vmem>>, vector<1x40xf32>,
      %c161 = arith.constant 161 : index
      %c0_152 = arith.constant 0 : index
      %160 = vector.load %arg15[%c161, %c0_152] : memref<162x40xf32, #tpu.memory_space<vmem>>, vector<1x40xf32>
      tpu.vector_store %arg15[%c161, %c0_152], %158 {strides = array<i32>} : memref<162x40xf32, #tpu.memory_space<vmem>>, vector<1x40xf32>,
      %cst_153 = arith.constant 0.000000e+00 : f32
      %161 = vector.broadcast %cst_153 : f32 to vector<1x32xf32>
      %c0_154 = arith.constant 0 : index
      %c0_155 = arith.constant 0 : index
      %162 = vector.load %arg16[%c0_154, %c0_155] : memref<82x32xf32, #tpu.memory_space<vmem>>, vector<1x32xf32>
      tpu.vector_store %arg16[%c0_154, %c0_155], %161 {strides = array<i32>} : memref<82x32xf32, #tpu.memory_space<vmem>>, vector<1x32xf32>,
      %c81 = arith.constant 81 : index
      %c0_156 = arith.constant 0 : index
      %163 = vector.load %arg16[%c81, %c0_156] : memref<82x32xf32, #tpu.memory_space<vmem>>, vector<1x32xf32>
      tpu.vector_store %arg16[%c81, %c0_156], %161 {strides = array<i32>} : memref<82x32xf32, #tpu.memory_space<vmem>>, vector<1x32xf32>,
      %cst_157 = arith.constant 0.000000e+00 : f32
      %164 = vector.broadcast %cst_157 : f32 to vector<1x32xf32>
      %c0_158 = arith.constant 0 : index
      %c0_159 = arith.constant 0 : index
      %165 = vector.load %arg17[%c0_158, %c0_159] : memref<42x32xf32, #tpu.memory_space<vmem>>, vector<1x32xf32>
      tpu.vector_store %arg17[%c0_158, %c0_159], %164 {strides = array<i32>} : memref<42x32xf32, #tpu.memory_space<vmem>>, vector<1x32xf32>,
      %c41 = arith.constant 41 : index
      %c0_160 = arith.constant 0 : index
      %166 = vector.load %arg17[%c41, %c0_160] : memref<42x32xf32, #tpu.memory_space<vmem>>, vector<1x32xf32>
      tpu.vector_store %arg17[%c41, %c0_160], %164 {strides = array<i32>} : memref<42x32xf32, #tpu.memory_space<vmem>>, vector<1x32xf32>,
      %cst_161 = arith.constant 0.000000e+00 : f32
      %167 = vector.broadcast %cst_161 : f32 to vector<1x64xf32>
      %c0_162 = arith.constant 0 : index
      %c0_163 = arith.constant 0 : index
      %168 = vector.load %arg18[%c0_162, %c0_163] : memref<22x64xf32, #tpu.memory_space<vmem>>, vector<1x64xf32>
      tpu.vector_store %arg18[%c0_162, %c0_163], %167 {strides = array<i32>} : memref<22x64xf32, #tpu.memory_space<vmem>>, vector<1x64xf32>,
      %c21 = arith.constant 21 : index
      %c0_164 = arith.constant 0 : index
      %169 = vector.load %arg18[%c21, %c0_164] : memref<22x64xf32, #tpu.memory_space<vmem>>, vector<1x64xf32>
      tpu.vector_store %arg18[%c21, %c0_164], %167 {strides = array<i32>} : memref<22x64xf32, #tpu.memory_space<vmem>>, vector<1x64xf32>,
    } else {
    }
    %c0 = arith.constant 0 : index
    %c0_1 = arith.constant 0 : index
    %c0_2 = arith.constant 0 : index
    %3 = vector.load %arg1[%c0, %c0_1, %c0_2] : memref<2x160x40xf32, #tpu.memory_space<vmem>>, vector<1x160x40xf32>
    %4 = vector.shape_cast %3 : vector<1x160x40xf32> to vector<160x40xf32>
    %c1 = arith.constant 1 : index
    %c0_3 = arith.constant 0 : index
    %5 = vector.load %arg15[%c1, %c0_3] : memref<162x40xf32, #tpu.memory_space<vmem>>, vector<160x40xf32>
    tpu.vector_store %arg15[%c1, %c0_3], %4 {strides = array<i32>} : memref<162x40xf32, #tpu.memory_space<vmem>>, vector<160x40xf32>,
    %c0_4 = arith.constant 0 : index
    %c0_5 = arith.constant 0 : index
    %6 = tpu.strided_load %arg15[%c0_4, %c0_5] {strides = array<i32: 2, 1>} : memref<162x40xf32, #tpu.memory_space<vmem>>, vector<80x40xf32>
    %c1_6 = arith.constant 1 : index
    %c0_7 = arith.constant 0 : index
    %7 = tpu.strided_load %arg15[%c1_6, %c0_7] {strides = array<i32: 2, 1>} : memref<162x40xf32, #tpu.memory_space<vmem>>, vector<80x40xf32>
    %c2 = arith.constant 2 : index
    %c0_8 = arith.constant 0 : index
    %8 = tpu.strided_load %arg15[%c2, %c0_8] {strides = array<i32: 2, 1>} : memref<162x40xf32, #tpu.memory_space<vmem>>, vector<80x40xf32>
    %c3 = arith.constant 3 : index
    %c0_9 = arith.constant 0 : index
    %9 = tpu.strided_load %arg15[%c3, %c0_9] {strides = array<i32: 2, 1>} : memref<162x40xf32, #tpu.memory_space<vmem>>, vector<80x40xf32>
    %10 = tpu.concatenate %6, %7, %8, %9 in 1 : vector<80x40xf32>, vector<80x40xf32>, vector<80x40xf32>, vector<80x40xf32> -> vector<80x160xf32>
    %c0_10 = arith.constant 0 : index
    %c0_11 = arith.constant 0 : index
    %11 = vector.load %arg2[%c0_10, %c0_11] : memref<160x32xf32, #tpu.memory_space<vmem>>, vector<160x32xf32>
    %cst = arith.constant dense<0.000000e+00> : vector<80x32xf32>
    %12 = tpu.matmul %10, %11, %cst {dimension_numbers = #tpu.dot_dimension_numbers<[1], [0], [0], [1], [0, 0, 1, 1], [], []>} : vector<80x160xf32>, vector<160x32xf32>, vector<80x32xf32> -> vector<80x32xf32>
    %c0_12 = arith.constant 0 : index
    %c0_13 = arith.constant 0 : index
    %13 = vector.load %arg3[%c0_12, %c0_13] : memref<1x32xf32, #tpu.memory_space<vmem>>, vector<1x32xf32>
    %14 = vector.broadcast %13 : vector<1x32xf32> to vector<80x32xf32>
    %15 = arith.addf %12, %14 : vector<80x32xf32>
    %cst_14 = arith.constant 0.000000e+00 : f32
    %16 = vector.broadcast %cst_14 : f32 to vector<80x32xf32>
    %17 = arith.maximumf %15, %16 : vector<80x32xf32>
    %c1_15 = arith.constant 1 : index
    %c0_16 = arith.constant 0 : index
    %18 = vector.load %arg16[%c1_15, %c0_16] : memref<82x32xf32, #tpu.memory_space<vmem>>, vector<80x32xf32>
    tpu.vector_store %arg16[%c1_15, %c0_16], %17 {strides = array<i32>} : memref<82x32xf32, #tpu.memory_space<vmem>>, vector<80x32xf32>,
    %c0_17 = arith.constant 0 : index
    %c0_18 = arith.constant 0 : index
    %19 = tpu.strided_load %arg16[%c0_17, %c0_18] {strides = array<i32: 2, 1>} : memref<82x32xf32, #tpu.memory_space<vmem>>, vector<40x32xf32>
    %c1_19 = arith.constant 1 : index
    %c0_20 = arith.constant 0 : index
    %20 = tpu.strided_load %arg16[%c1_19, %c0_20] {strides = array<i32: 2, 1>} : memref<82x32xf32, #tpu.memory_space<vmem>>, vector<40x32xf32>
    %c2_21 = arith.constant 2 : index
    %c0_22 = arith.constant 0 : index
    %21 = tpu.strided_load %arg16[%c2_21, %c0_22] {strides = array<i32: 2, 1>} : memref<82x32xf32, #tpu.memory_space<vmem>>, vector<40x32xf32>
    %c3_23 = arith.constant 3 : index
    %c0_24 = arith.constant 0 : index
    %22 = tpu.strided_load %arg16[%c3_23, %c0_24] {strides = array<i32: 2, 1>} : memref<82x32xf32, #tpu.memory_space<vmem>>, vector<40x32xf32>
    %23 = tpu.concatenate %19, %20, %21, %22 in 1 : vector<40x32xf32>, vector<40x32xf32>, vector<40x32xf32>, vector<40x32xf32> -> vector<40x128xf32>
    %c0_25 = arith.constant 0 : index
    %c0_26 = arith.constant 0 : index
    %24 = vector.load %arg4[%c0_25, %c0_26] : memref<128x32xf32, #tpu.memory_space<vmem>>, vector<128x32xf32>
    %cst_27 = arith.constant dense<0.000000e+00> : vector<40x32xf32>
    %25 = tpu.matmul %23, %24, %cst_27 {dimension_numbers = #tpu.dot_dimension_numbers<[1], [0], [0], [1], [0, 0, 1, 1], [], []>} : vector<40x128xf32>, vector<128x32xf32>, vector<40x32xf32> -> vector<40x32xf32>
    %c0_28 = arith.constant 0 : index
    %c0_29 = arith.constant 0 : index
    %26 = vector.load %arg5[%c0_28, %c0_29] : memref<1x32xf32, #tpu.memory_space<vmem>>, vector<1x32xf32>
    %27 = vector.broadcast %26 : vector<1x32xf32> to vector<40x32xf32>
    %28 = arith.addf %25, %27 : vector<40x32xf32>
    %cst_30 = arith.constant 0.000000e+00 : f32
    %29 = vector.broadcast %cst_30 : f32 to vector<40x32xf32>
    %30 = arith.maximumf %28, %29 : vector<40x32xf32>
    %c1_31 = arith.constant 1 : index
    %c0_32 = arith.constant 0 : index
    %31 = vector.load %arg17[%c1_31, %c0_32] : memref<42x32xf32, #tpu.memory_space<vmem>>, vector<40x32xf32>
    tpu.vector_store %arg17[%c1_31, %c0_32], %30 {strides = array<i32>} : memref<42x32xf32, #tpu.memory_space<vmem>>, vector<40x32xf32>,
    %c0_33 = arith.constant 0 : index
    %c0_34 = arith.constant 0 : index
    %32 = tpu.strided_load %arg17[%c0_33, %c0_34] {strides = array<i32: 2, 1>} : memref<42x32xf32, #tpu.memory_space<vmem>>, vector<20x32xf32>
    %c1_35 = arith.constant 1 : index
    %c0_36 = arith.constant 0 : index
    %33 = tpu.strided_load %arg17[%c1_35, %c0_36] {strides = array<i32: 2, 1>} : memref<42x32xf32, #tpu.memory_space<vmem>>, vector<20x32xf32>
    %c2_37 = arith.constant 2 : index
    %c0_38 = arith.constant 0 : index
    %34 = tpu.strided_load %arg17[%c2_37, %c0_38] {strides = array<i32: 2, 1>} : memref<42x32xf32, #tpu.memory_space<vmem>>, vector<20x32xf32>
    %c3_39 = arith.constant 3 : index
    %c0_40 = arith.constant 0 : index
    %35 = tpu.strided_load %arg17[%c3_39, %c0_40] {strides = array<i32: 2, 1>} : memref<42x32xf32, #tpu.memory_space<vmem>>, vector<20x32xf32>
    %36 = tpu.concatenate %32, %33, %34, %35 in 1 : vector<20x32xf32>, vector<20x32xf32>, vector<20x32xf32>, vector<20x32xf32> -> vector<20x128xf32>
    %c0_41 = arith.constant 0 : index
    %c0_42 = arith.constant 0 : index
    %37 = vector.load %arg6[%c0_41, %c0_42] : memref<128x64xf32, #tpu.memory_space<vmem>>, vector<128x64xf32>
    %cst_43 = arith.constant dense<0.000000e+00> : vector<20x64xf32>
    %38 = tpu.matmul %36, %37, %cst_43 {dimension_numbers = #tpu.dot_dimension_numbers<[1], [0], [0], [1], [0, 0, 1, 1], [], []>} : vector<20x128xf32>, vector<128x64xf32>, vector<20x64xf32> -> vector<20x64xf32>
    %c0_44 = arith.constant 0 : index
    %c0_45 = arith.constant 0 : index
    %39 = vector.load %arg7[%c0_44, %c0_45] : memref<1x64xf32, #tpu.memory_space<vmem>>, vector<1x64xf32>
    %40 = vector.broadcast %39 : vector<1x64xf32> to vector<20x64xf32>
    %41 = arith.addf %38, %40 : vector<20x64xf32>
    %cst_46 = arith.constant 0.000000e+00 : f32
    %42 = vector.broadcast %cst_46 : f32 to vector<20x64xf32>
    %43 = arith.maximumf %41, %42 : vector<20x64xf32>
    %c1_47 = arith.constant 1 : index
    %c0_48 = arith.constant 0 : index
    %44 = vector.load %arg18[%c1_47, %c0_48] : memref<22x64xf32, #tpu.memory_space<vmem>>, vector<20x64xf32>
    tpu.vector_store %arg18[%c1_47, %c0_48], %43 {strides = array<i32>} : memref<22x64xf32, #tpu.memory_space<vmem>>, vector<20x64xf32>,
    %c0_49 = arith.constant 0 : index
    %c0_50 = arith.constant 0 : index
    %45 = tpu.strided_load %arg18[%c0_49, %c0_50] {strides = array<i32: 2, 1>} : memref<22x64xf32, #tpu.memory_space<vmem>>, vector<10x64xf32>
    %c1_51 = arith.constant 1 : index
    %c0_52 = arith.constant 0 : index
    %46 = tpu.strided_load %arg18[%c1_51, %c0_52] {strides = array<i32: 2, 1>} : memref<22x64xf32, #tpu.memory_space<vmem>>, vector<10x64xf32>
    %c2_53 = arith.constant 2 : index
    %c0_54 = arith.constant 0 : index
    %47 = tpu.strided_load %arg18[%c2_53, %c0_54] {strides = array<i32: 2, 1>} : memref<22x64xf32, #tpu.memory_space<vmem>>, vector<10x64xf32>
    %c3_55 = arith.constant 3 : index
    %c0_56 = arith.constant 0 : index
    %48 = tpu.strided_load %arg18[%c3_55, %c0_56] {strides = array<i32: 2, 1>} : memref<22x64xf32, #tpu.memory_space<vmem>>, vector<10x64xf32>
    %49 = tpu.concatenate %45, %46, %47, %48 in 1 : vector<10x64xf32>, vector<10x64xf32>, vector<10x64xf32>, vector<10x64xf32> -> vector<10x256xf32>
    %c0_57 = arith.constant 0 : index
    %c0_58 = arith.constant 0 : index
    %50 = vector.load %arg8[%c0_57, %c0_58] : memref<256x64xf32, #tpu.memory_space<vmem>>, vector<256x64xf32>
    %cst_59 = arith.constant dense<0.000000e+00> : vector<10x64xf32>
    %51 = tpu.matmul %49, %50, %cst_59 {dimension_numbers = #tpu.dot_dimension_numbers<[1], [0], [0], [1], [0, 0, 1, 1], [], []>} : vector<10x256xf32>, vector<256x64xf32>, vector<10x64xf32> -> vector<10x64xf32>
    %c0_60 = arith.constant 0 : index
    %c0_61 = arith.constant 0 : index
    %52 = vector.load %arg9[%c0_60, %c0_61] : memref<1x64xf32, #tpu.memory_space<vmem>>, vector<1x64xf32>
    %53 = vector.broadcast %52 : vector<1x64xf32> to vector<10x64xf32>
    %54 = arith.addf %51, %53 : vector<10x64xf32>
    %cst_62 = arith.constant 0.000000e+00 : f32
    %55 = vector.broadcast %cst_62 : f32 to vector<10x64xf32>
    %56 = arith.maximumf %54, %55 : vector<10x64xf32>
    %57 = vector.extract_strided_slice %56 {offsets = [0, 0], sizes = [7, 64], strides = [1, 1]} : vector<10x64xf32> to vector<7x64xf32>
    %58 = vector.extract_strided_slice %56 {offsets = [1, 0], sizes = [7, 64], strides = [1, 1]} : vector<10x64xf32> to vector<7x64xf32>
    %59 = vector.extract_strided_slice %56 {offsets = [2, 0], sizes = [7, 64], strides = [1, 1]} : vector<10x64xf32> to vector<7x64xf32>
    %60 = vector.extract_strided_slice %56 {offsets = [3, 0], sizes = [7, 64], strides = [1, 1]} : vector<10x64xf32> to vector<7x64xf32>
    %61 = tpu.concatenate %57, %58, %59, %60 in 1 : vector<7x64xf32>, vector<7x64xf32>, vector<7x64xf32>, vector<7x64xf32> -> vector<7x256xf32>
    %c0_63 = arith.constant 0 : index
    %c0_64 = arith.constant 0 : index
    %62 = vector.load %arg10[%c0_63, %c0_64] : memref<256x64xf32, #tpu.memory_space<vmem>>, vector<256x64xf32>
    %cst_65 = arith.constant dense<0.000000e+00> : vector<7x64xf32>
    %63 = tpu.matmul %61, %62, %cst_65 {dimension_numbers = #tpu.dot_dimension_numbers<[1], [0], [0], [1], [0, 0, 1, 1], [], []>} : vector<7x256xf32>, vector<256x64xf32>, vector<7x64xf32> -> vector<7x64xf32>
    %c0_66 = arith.constant 0 : index
    %c0_67 = arith.constant 0 : index
    %64 = vector.load %arg11[%c0_66, %c0_67] : memref<1x64xf32, #tpu.memory_space<vmem>>, vector<1x64xf32>
    %65 = vector.broadcast %64 : vector<1x64xf32> to vector<7x64xf32>
    %66 = arith.addf %63, %65 : vector<7x64xf32>
    %cst_68 = arith.constant 0.000000e+00 : f32
    %67 = vector.broadcast %cst_68 : f32 to vector<7x64xf32>
    %68 = arith.maximumf %66, %67 : vector<7x64xf32>
    %69 = vector.extract_strided_slice %68 {offsets = [0, 0], sizes = [1, 64], strides = [1, 1]} : vector<7x64xf32> to vector<1x64xf32>
    %70 = vector.extract_strided_slice %68 {offsets = [1, 0], sizes = [1, 64], strides = [1, 1]} : vector<7x64xf32> to vector<1x64xf32>
    %71 = vector.extract_strided_slice %68 {offsets = [2, 0], sizes = [1, 64], strides = [1, 1]} : vector<7x64xf32> to vector<1x64xf32>
    %72 = vector.extract_strided_slice %68 {offsets = [3, 0], sizes = [1, 64], strides = [1, 1]} : vector<7x64xf32> to vector<1x64xf32>
    %73 = vector.extract_strided_slice %68 {offsets = [4, 0], sizes = [1, 64], strides = [1, 1]} : vector<7x64xf32> to vector<1x64xf32>
    %74 = vector.extract_strided_slice %68 {offsets = [5, 0], sizes = [1, 64], strides = [1, 1]} : vector<7x64xf32> to vector<1x64xf32>
    %75 = vector.extract_strided_slice %68 {offsets = [6, 0], sizes = [1, 64], strides = [1, 1]} : vector<7x64xf32> to vector<1x64xf32>
    %76 = tpu.concatenate %69, %70, %71, %72, %73, %74, %75 in 1 : vector<1x64xf32>, vector<1x64xf32>, vector<1x64xf32>, vector<1x64xf32>, vector<1x64xf32>, vector<1x64xf32>, vector<1x64xf32> -> vector<1x448xf32>
    %c1_69 = arith.constant 1 : index
    %c0_70 = arith.constant 0 : index
    %c0_71 = arith.constant 0 : index
    %77 = vector.load %arg1[%c1_69, %c0_70, %c0_71] : memref<2x160x40xf32, #tpu.memory_space<vmem>>, vector<1x160x40xf32>
    %78 = vector.shape_cast %77 : vector<1x160x40xf32> to vector<160x40xf32>
    %c1_72 = arith.constant 1 : index
    %c0_73 = arith.constant 0 : index
    %79 = vector.load %arg15[%c1_72, %c0_73] : memref<162x40xf32, #tpu.memory_space<vmem>>, vector<160x40xf32>
    tpu.vector_store %arg15[%c1_72, %c0_73], %78 {strides = array<i32>} : memref<162x40xf32, #tpu.memory_space<vmem>>, vector<160x40xf32>,
    %c0_74 = arith.constant 0 : index
    %c0_75 = arith.constant 0 : index
    %80 = tpu.strided_load %arg15[%c0_74, %c0_75] {strides = array<i32: 2, 1>} : memref<162x40xf32, #tpu.memory_space<vmem>>, vector<80x40xf32>
    %c1_76 = arith.constant 1 : index
    %c0_77 = arith.constant 0 : index
    %81 = tpu.strided_load %arg15[%c1_76, %c0_77] {strides = array<i32: 2, 1>} : memref<162x40xf32, #tpu.memory_space<vmem>>, vector<80x40xf32>
    %c2_78 = arith.constant 2 : index
    %c0_79 = arith.constant 0 : index
    %82 = tpu.strided_load %arg15[%c2_78, %c0_79] {strides = array<i32: 2, 1>} : memref<162x40xf32, #tpu.memory_space<vmem>>, vector<80x40xf32>
    %c3_80 = arith.constant 3 : index
    %c0_81 = arith.constant 0 : index
    %83 = tpu.strided_load %arg15[%c3_80, %c0_81] {strides = array<i32: 2, 1>} : memref<162x40xf32, #tpu.memory_space<vmem>>, vector<80x40xf32>
    %84 = tpu.concatenate %80, %81, %82, %83 in 1 : vector<80x40xf32>, vector<80x40xf32>, vector<80x40xf32>, vector<80x40xf32> -> vector<80x160xf32>
    %c0_82 = arith.constant 0 : index
    %c0_83 = arith.constant 0 : index
    %85 = vector.load %arg2[%c0_82, %c0_83] : memref<160x32xf32, #tpu.memory_space<vmem>>, vector<160x32xf32>
    %cst_84 = arith.constant dense<0.000000e+00> : vector<80x32xf32>
    %86 = tpu.matmul %84, %85, %cst_84 {dimension_numbers = #tpu.dot_dimension_numbers<[1], [0], [0], [1], [0, 0, 1, 1], [], []>} : vector<80x160xf32>, vector<160x32xf32>, vector<80x32xf32> -> vector<80x32xf32>
    %c0_85 = arith.constant 0 : index
    %c0_86 = arith.constant 0 : index
    %87 = vector.load %arg3[%c0_85, %c0_86] : memref<1x32xf32, #tpu.memory_space<vmem>>, vector<1x32xf32>
    %88 = vector.broadcast %87 : vector<1x32xf32> to vector<80x32xf32>
    %89 = arith.addf %86, %88 : vector<80x32xf32>
    %cst_87 = arith.constant 0.000000e+00 : f32
    %90 = vector.broadcast %cst_87 : f32 to vector<80x32xf32>
    %91 = arith.maximumf %89, %90 : vector<80x32xf32>
    %c1_88 = arith.constant 1 : index
    %c0_89 = arith.constant 0 : index
    %92 = vector.load %arg16[%c1_88, %c0_89] : memref<82x32xf32, #tpu.memory_space<vmem>>, vector<80x32xf32>
    tpu.vector_store %arg16[%c1_88, %c0_89], %91 {strides = array<i32>} : memref<82x32xf32, #tpu.memory_space<vmem>>, vector<80x32xf32>,
    %c0_90 = arith.constant 0 : index
    %c0_91 = arith.constant 0 : index
    %93 = tpu.strided_load %arg16[%c0_90, %c0_91] {strides = array<i32: 2, 1>} : memref<82x32xf32, #tpu.memory_space<vmem>>, vector<40x32xf32>
    %c1_92 = arith.constant 1 : index
    %c0_93 = arith.constant 0 : index
    %94 = tpu.strided_load %arg16[%c1_92, %c0_93] {strides = array<i32: 2, 1>} : memref<82x32xf32, #tpu.memory_space<vmem>>, vector<40x32xf32>
    %c2_94 = arith.constant 2 : index
    %c0_95 = arith.constant 0 : index
    %95 = tpu.strided_load %arg16[%c2_94, %c0_95] {strides = array<i32: 2, 1>} : memref<82x32xf32, #tpu.memory_space<vmem>>, vector<40x32xf32>
    %c3_96 = arith.constant 3 : index
    %c0_97 = arith.constant 0 : index
    %96 = tpu.strided_load %arg16[%c3_96, %c0_97] {strides = array<i32: 2, 1>} : memref<82x32xf32, #tpu.memory_space<vmem>>, vector<40x32xf32>
    %97 = tpu.concatenate %93, %94, %95, %96 in 1 : vector<40x32xf32>, vector<40x32xf32>, vector<40x32xf32>, vector<40x32xf32> -> vector<40x128xf32>
    %c0_98 = arith.constant 0 : index
    %c0_99 = arith.constant 0 : index
    %98 = vector.load %arg4[%c0_98, %c0_99] : memref<128x32xf32, #tpu.memory_space<vmem>>, vector<128x32xf32>
    %cst_100 = arith.constant dense<0.000000e+00> : vector<40x32xf32>
    %99 = tpu.matmul %97, %98, %cst_100 {dimension_numbers = #tpu.dot_dimension_numbers<[1], [0], [0], [1], [0, 0, 1, 1], [], []>} : vector<40x128xf32>, vector<128x32xf32>, vector<40x32xf32> -> vector<40x32xf32>
    %c0_101 = arith.constant 0 : index
    %c0_102 = arith.constant 0 : index
    %100 = vector.load %arg5[%c0_101, %c0_102] : memref<1x32xf32, #tpu.memory_space<vmem>>, vector<1x32xf32>
    %101 = vector.broadcast %100 : vector<1x32xf32> to vector<40x32xf32>
    %102 = arith.addf %99, %101 : vector<40x32xf32>
    %cst_103 = arith.constant 0.000000e+00 : f32
    %103 = vector.broadcast %cst_103 : f32 to vector<40x32xf32>
    %104 = arith.maximumf %102, %103 : vector<40x32xf32>
    %c1_104 = arith.constant 1 : index
    %c0_105 = arith.constant 0 : index
    %105 = vector.load %arg17[%c1_104, %c0_105] : memref<42x32xf32, #tpu.memory_space<vmem>>, vector<40x32xf32>
    tpu.vector_store %arg17[%c1_104, %c0_105], %104 {strides = array<i32>} : memref<42x32xf32, #tpu.memory_space<vmem>>, vector<40x32xf32>,
    %c0_106 = arith.constant 0 : index
    %c0_107 = arith.constant 0 : index
    %106 = tpu.strided_load %arg17[%c0_106, %c0_107] {strides = array<i32: 2, 1>} : memref<42x32xf32, #tpu.memory_space<vmem>>, vector<20x32xf32>
    %c1_108 = arith.constant 1 : index
    %c0_109 = arith.constant 0 : index
    %107 = tpu.strided_load %arg17[%c1_108, %c0_109] {strides = array<i32: 2, 1>} : memref<42x32xf32, #tpu.memory_space<vmem>>, vector<20x32xf32>
    %c2_110 = arith.constant 2 : index
    %c0_111 = arith.constant 0 : index
    %108 = tpu.strided_load %arg17[%c2_110, %c0_111] {strides = array<i32: 2, 1>} : memref<42x32xf32, #tpu.memory_space<vmem>>, vector<20x32xf32>
    %c3_112 = arith.constant 3 : index
    %c0_113 = arith.constant 0 : index
    %109 = tpu.strided_load %arg17[%c3_112, %c0_113] {strides = array<i32: 2, 1>} : memref<42x32xf32, #tpu.memory_space<vmem>>, vector<20x32xf32>
    %110 = tpu.concatenate %106, %107, %108, %109 in 1 : vector<20x32xf32>, vector<20x32xf32>, vector<20x32xf32>, vector<20x32xf32> -> vector<20x128xf32>
    %c0_114 = arith.constant 0 : index
    %c0_115 = arith.constant 0 : index
    %111 = vector.load %arg6[%c0_114, %c0_115] : memref<128x64xf32, #tpu.memory_space<vmem>>, vector<128x64xf32>
    %cst_116 = arith.constant dense<0.000000e+00> : vector<20x64xf32>
    %112 = tpu.matmul %110, %111, %cst_116 {dimension_numbers = #tpu.dot_dimension_numbers<[1], [0], [0], [1], [0, 0, 1, 1], [], []>} : vector<20x128xf32>, vector<128x64xf32>, vector<20x64xf32> -> vector<20x64xf32>
    %c0_117 = arith.constant 0 : index
    %c0_118 = arith.constant 0 : index
    %113 = vector.load %arg7[%c0_117, %c0_118] : memref<1x64xf32, #tpu.memory_space<vmem>>, vector<1x64xf32>
    %114 = vector.broadcast %113 : vector<1x64xf32> to vector<20x64xf32>
    %115 = arith.addf %112, %114 : vector<20x64xf32>
    %cst_119 = arith.constant 0.000000e+00 : f32
    %116 = vector.broadcast %cst_119 : f32 to vector<20x64xf32>
    %117 = arith.maximumf %115, %116 : vector<20x64xf32>
    %c1_120 = arith.constant 1 : index
    %c0_121 = arith.constant 0 : index
    %118 = vector.load %arg18[%c1_120, %c0_121] : memref<22x64xf32, #tpu.memory_space<vmem>>, vector<20x64xf32>
    tpu.vector_store %arg18[%c1_120, %c0_121], %117 {strides = array<i32>} : memref<22x64xf32, #tpu.memory_space<vmem>>, vector<20x64xf32>,
    %c0_122 = arith.constant 0 : index
    %c0_123 = arith.constant 0 : index
    %119 = tpu.strided_load %arg18[%c0_122, %c0_123] {strides = array<i32: 2, 1>} : memref<22x64xf32, #tpu.memory_space<vmem>>, vector<10x64xf32>
    %c1_124 = arith.constant 1 : index
    %c0_125 = arith.constant 0 : index
    %120 = tpu.strided_load %arg18[%c1_124, %c0_125] {strides = array<i32: 2, 1>} : memref<22x64xf32, #tpu.memory_space<vmem>>, vector<10x64xf32>
    %c2_126 = arith.constant 2 : index
    %c0_127 = arith.constant 0 : index
    %121 = tpu.strided_load %arg18[%c2_126, %c0_127] {strides = array<i32: 2, 1>} : memref<22x64xf32, #tpu.memory_space<vmem>>, vector<10x64xf32>
    %c3_128 = arith.constant 3 : index
    %c0_129 = arith.constant 0 : index
    %122 = tpu.strided_load %arg18[%c3_128, %c0_129] {strides = array<i32: 2, 1>} : memref<22x64xf32, #tpu.memory_space<vmem>>, vector<10x64xf32>
    %123 = tpu.concatenate %119, %120, %121, %122 in 1 : vector<10x64xf32>, vector<10x64xf32>, vector<10x64xf32>, vector<10x64xf32> -> vector<10x256xf32>
    %c0_130 = arith.constant 0 : index
    %c0_131 = arith.constant 0 : index
    %124 = vector.load %arg8[%c0_130, %c0_131] : memref<256x64xf32, #tpu.memory_space<vmem>>, vector<256x64xf32>
    %cst_132 = arith.constant dense<0.000000e+00> : vector<10x64xf32>
    %125 = tpu.matmul %123, %124, %cst_132 {dimension_numbers = #tpu.dot_dimension_numbers<[1], [0], [0], [1], [0, 0, 1, 1], [], []>} : vector<10x256xf32>, vector<256x64xf32>, vector<10x64xf32> -> vector<10x64xf32>
    %c0_133 = arith.constant 0 : index
    %c0_134 = arith.constant 0 : index
    %126 = vector.load %arg9[%c0_133, %c0_134] : memref<1x64xf32, #tpu.memory_space<vmem>>, vector<1x64xf32>
    %127 = vector.broadcast %126 : vector<1x64xf32> to vector<10x64xf32>
    %128 = arith.addf %125, %127 : vector<10x64xf32>
    %cst_135 = arith.constant 0.000000e+00 : f32
    %129 = vector.broadcast %cst_135 : f32 to vector<10x64xf32>
    %130 = arith.maximumf %128, %129 : vector<10x64xf32>
    %131 = vector.extract_strided_slice %130 {offsets = [0, 0], sizes = [7, 64], strides = [1, 1]} : vector<10x64xf32> to vector<7x64xf32>
    %132 = vector.extract_strided_slice %130 {offsets = [1, 0], sizes = [7, 64], strides = [1, 1]} : vector<10x64xf32> to vector<7x64xf32>
    %133 = vector.extract_strided_slice %130 {offsets = [2, 0], sizes = [7, 64], strides = [1, 1]} : vector<10x64xf32> to vector<7x64xf32>
    %134 = vector.extract_strided_slice %130 {offsets = [3, 0], sizes = [7, 64], strides = [1, 1]} : vector<10x64xf32> to vector<7x64xf32>
    %135 = tpu.concatenate %131, %132, %133, %134 in 1 : vector<7x64xf32>, vector<7x64xf32>, vector<7x64xf32>, vector<7x64xf32> -> vector<7x256xf32>
    %c0_136 = arith.constant 0 : index
    %c0_137 = arith.constant 0 : index
    %136 = vector.load %arg10[%c0_136, %c0_137] : memref<256x64xf32, #tpu.memory_space<vmem>>, vector<256x64xf32>
    %cst_138 = arith.constant dense<0.000000e+00> : vector<7x64xf32>
    %137 = tpu.matmul %135, %136, %cst_138 {dimension_numbers = #tpu.dot_dimension_numbers<[1], [0], [0], [1], [0, 0, 1, 1], [], []>} : vector<7x256xf32>, vector<256x64xf32>, vector<7x64xf32> -> vector<7x64xf32>
    %c0_139 = arith.constant 0 : index
    %c0_140 = arith.constant 0 : index
    %138 = vector.load %arg11[%c0_139, %c0_140] : memref<1x64xf32, #tpu.memory_space<vmem>>, vector<1x64xf32>
    %139 = vector.broadcast %138 : vector<1x64xf32> to vector<7x64xf32>
    %140 = arith.addf %137, %139 : vector<7x64xf32>
    %cst_141 = arith.constant 0.000000e+00 : f32
    %141 = vector.broadcast %cst_141 : f32 to vector<7x64xf32>
    %142 = arith.maximumf %140, %141 : vector<7x64xf32>
    %143 = vector.extract_strided_slice %142 {offsets = [0, 0], sizes = [1, 64], strides = [1, 1]} : vector<7x64xf32> to vector<1x64xf32>
    %144 = vector.extract_strided_slice %142 {offsets = [1, 0], sizes = [1, 64], strides = [1, 1]} : vector<7x64xf32> to vector<1x64xf32>
    %145 = vector.extract_strided_slice %142 {offsets = [2, 0], sizes = [1, 64], strides = [1, 1]} : vector<7x64xf32> to vector<1x64xf32>
    %146 = vector.extract_strided_slice %142 {offsets = [3, 0], sizes = [1, 64], strides = [1, 1]} : vector<7x64xf32> to vector<1x64xf32>
    %147 = vector.extract_strided_slice %142 {offsets = [4, 0], sizes = [1, 64], strides = [1, 1]} : vector<7x64xf32> to vector<1x64xf32>
    %148 = vector.extract_strided_slice %142 {offsets = [5, 0], sizes = [1, 64], strides = [1, 1]} : vector<7x64xf32> to vector<1x64xf32>
    %149 = vector.extract_strided_slice %142 {offsets = [6, 0], sizes = [1, 64], strides = [1, 1]} : vector<7x64xf32> to vector<1x64xf32>
    %150 = tpu.concatenate %143, %144, %145, %146, %147, %148, %149 in 1 : vector<1x64xf32>, vector<1x64xf32>, vector<1x64xf32>, vector<1x64xf32>, vector<1x64xf32>, vector<1x64xf32>, vector<1x64xf32> -> vector<1x448xf32>
    %151 = tpu.concatenate %76, %150 in 0 : vector<1x448xf32>, vector<1x448xf32> -> vector<2x448xf32>
    %c0_142 = arith.constant 0 : index
    %c0_143 = arith.constant 0 : index
    %152 = vector.load %arg12[%c0_142, %c0_143] : memref<448x64xf32, #tpu.memory_space<vmem>>, vector<448x64xf32>
    %cst_144 = arith.constant dense<0.000000e+00> : vector<2x64xf32>
    %153 = tpu.matmul %151, %152, %cst_144 {dimension_numbers = #tpu.dot_dimension_numbers<[1], [0], [0], [1], [0, 0, 1, 1], [], []>} : vector<2x448xf32>, vector<448x64xf32>, vector<2x64xf32> -> vector<2x64xf32>
    %c0_145 = arith.constant 0 : index
    %c0_146 = arith.constant 0 : index
    %154 = vector.load %arg13[%c0_145, %c0_146] : memref<1x64xf32, #tpu.memory_space<vmem>>, vector<1x64xf32>
    %155 = vector.broadcast %154 : vector<1x64xf32> to vector<2x64xf32>
    %156 = arith.addf %153, %155 : vector<2x64xf32>
    %c0_147 = arith.constant 0 : index
    %c0_148 = arith.constant 0 : index
    %157 = vector.load %arg14[%c0_147, %c0_148] : memref<2x64xf32, #tpu.memory_space<vmem>>, vector<2x64xf32>
    tpu.vector_store %arg14[%c0_147, %c0_148], %156 {strides = array<i32>} : memref<2x64xf32, #tpu.memory_space<vmem>>, vector<2x64xf32>,
    return
  }
  func.func @transform_0(%arg0: i32) -> (i32, i32, i32) {
    %c0_i32 = arith.constant 0 : i32
    %c0_i32_0 = arith.constant 0 : i32
    %c0_i32_1 = arith.constant 0 : i32
    return %arg0, %c0_i32, %c0_i32_0 : i32, i32, i32
  }
  func.func @transform_1(%arg0: i32) -> (i32, i32) {
    %c0_i32 = arith.constant 0 : i32
    %c0_i32_0 = arith.constant 0 : i32
    %c0_i32_1 = arith.constant 0 : i32
    return %c0_i32, %c0_i32_0 : i32, i32
  }
  func.func @transform_2(%arg0: i32) -> (i32, i32) {
    %c0_i32 = arith.constant 0 : i32
    %c0_i32_0 = arith.constant 0 : i32
    %c0_i32_1 = arith.constant 0 : i32
    return %c0_i32, %c0_i32_0 : i32, i32
  }
  func.func @transform_3(%arg0: i32) -> (i32, i32) {
    %c0_i32 = arith.constant 0 : i32
    %c0_i32_0 = arith.constant 0 : i32
    %c0_i32_1 = arith.constant 0 : i32
    return %c0_i32, %c0_i32_0 : i32, i32
  }
  func.func @transform_4(%arg0: i32) -> (i32, i32) {
    %c0_i32 = arith.constant 0 : i32
    %c0_i32_0 = arith.constant 0 : i32
    %c0_i32_1 = arith.constant 0 : i32
    return %c0_i32, %c0_i32_0 : i32, i32
  }
  func.func @transform_5(%arg0: i32) -> (i32, i32) {
    %c0_i32 = arith.constant 0 : i32
    %c0_i32_0 = arith.constant 0 : i32
    %c0_i32_1 = arith.constant 0 : i32
    return %c0_i32, %c0_i32_0 : i32, i32
  }
  func.func @transform_6(%arg0: i32) -> (i32, i32) {
    %c0_i32 = arith.constant 0 : i32
    %c0_i32_0 = arith.constant 0 : i32
    %c0_i32_1 = arith.constant 0 : i32
    return %c0_i32, %c0_i32_0 : i32, i32
  }
  func.func @transform_7(%arg0: i32) -> (i32, i32) {
    %c0_i32 = arith.constant 0 : i32
    %c0_i32_0 = arith.constant 0 : i32
    %c0_i32_1 = arith.constant 0 : i32
    return %c0_i32, %c0_i32_0 : i32, i32
  }
  func.func @transform_8(%arg0: i32) -> (i32, i32) {
    %c0_i32 = arith.constant 0 : i32
    %c0_i32_0 = arith.constant 0 : i32
    %c0_i32_1 = arith.constant 0 : i32
    return %c0_i32, %c0_i32_0 : i32, i32
  }
  func.func @transform_9(%arg0: i32) -> (i32, i32) {
    %c0_i32 = arith.constant 0 : i32
    %c0_i32_0 = arith.constant 0 : i32
    %c0_i32_1 = arith.constant 0 : i32
    return %c0_i32, %c0_i32_0 : i32, i32
  }
  func.func @transform_10(%arg0: i32) -> (i32, i32) {
    %c0_i32 = arith.constant 0 : i32
    %c0_i32_0 = arith.constant 0 : i32
    %c0_i32_1 = arith.constant 0 : i32
    return %c0_i32, %c0_i32_0 : i32, i32
  }
  func.func @transform_11(%arg0: i32) -> (i32, i32) {
    %c0_i32 = arith.constant 0 : i32
    %c0_i32_0 = arith.constant 0 : i32
    %c0_i32_1 = arith.constant 0 : i32
    return %c0_i32, %c0_i32_0 : i32, i32
  }
  func.func @transform_12(%arg0: i32) -> (i32, i32) {
    %c0_i32 = arith.constant 0 : i32
    %c0_i32_0 = arith.constant 0 : i32
    %c0_i32_1 = arith.constant 0 : i32
    return %c0_i32, %c0_i32_0 : i32, i32
  }
  func.func @transform_13(%arg0: i32) -> (i32, i32) {
    %c0_i32 = arith.constant 0 : i32
    %c0_i32_0 = arith.constant 0 : i32
    return %arg0, %c0_i32 : i32, i32
  }
}

</mosaic_0001>

<bundles_post_ra>
// kernel: accent_encoder_conv_forward.1
= control target key start
LH: loop header
LB: loop body
LE: loop exit
PB: predicated region body
PF: predicated region fallthrough
CT: control target
= control target key end

     0   :  { %vm80_vm0 = vcmask 326656   ;;  %s2300_s17 = smov 120   ;;  %s3825_s0 = inlined_call_operand.vmem [shape: f32[2,160,40], index: 0, kind: input, shape index: {}]   ;;  %s3826_s1 = inlined_call_operand.vmem [shape: f32[160,32], index: 1, kind: input, shape index: {}]   ;;  %s3827_s2 = inlined_call_operand.vmem [shape: f32[1,32], index: 2, kind: input, shape index: {}]   ;;  %s3828_s3 = inlined_call_operand.vmem [shape: f32[128,32], index: 3, kind: input, shape index: {}]   ;;  %s3829_s4 = inlined_call_operand.vmem [shape: f32[1,32], index: 4, kind: input, shape index: {}]   ;;  %s3830_s5 = inlined_call_operand.vmem [shape: f32[128,64], index: 5, kind: input, shape index: {}]   ;;  %s3831_s6 = inlined_call_operand.vmem [shape: f32[1,64], index: 6, kind: input, shape index: {}]   ;;  %s3832_s7 = inlined_call_operand.vmem [shape: f32[256,64], index: 7, kind: input, shape index: {}]   ;;  %s3833_s8 = inlined_call_operand.vmem [shape: f32[1,64], index: 8, kind: input, shape index: {}]   ;;  %s3834_s9 = inlined_call_operand.vmem [shape: f32[256,64], index: 9, kind: input, shape index: {}]   ;;  %s3835_s10 = inlined_call_operand.vmem [shape: f32[1,64], index: 10, kind: input, shape index: {}]   ;;  %s3836_s11 = inlined_call_operand.vmem [shape: f32[448,64], index: 11, kind: input, shape index: {}]   ;;  %s3837_s12 = inlined_call_operand.vmem [shape: f32[1,64], index: 12, kind: input, shape index: {}]   ;;  %s3838_s13 = inlined_call_operand.hbm [shape: f32[2,64], index: 13, kind: output, shape index: {}]  }
   0x1   :  { %v60_v0 = vld [vmem:[%s3825_s0] sm:$0xff]  ;;  %v61_v1 = vld [vmem:[%s3825_s0 + $0x8] sm:$0xff]  ;;  %v62_v2 = vld [vmem:[%s3825_s0 + $0x10] sm:$0xff] }
   0x2   :  { %v63_v3 = vld [vmem:[%s3825_s0 + $0x18] sm:$0xff]  ;;  %81 = vst.msk [vmem:[#allocation2 + $0x1] sm:$0xff] %vm80_vm0, %v60_v0  ;;  %v64_v4 = vld [vmem:[%s3825_s0 + $0x20] sm:$0xff]  ;;  %v66_v5 = vld [vmem:[%s3825_s0 + $0x30] sm:$0xff] }
   0x3   :  { %82 = vst.msk [vmem:[#allocation2 + $0x9] sm:$0xff] %vm80_vm0, %v61_v1  ;;  %v67_v6 = vld [vmem:[%s3825_s0 + $0x38] sm:$0xff]  ;;  %v68_v7 = vld [vmem:[%s3825_s0 + $0x40] sm:$0xff]  ;;  %v65_v8 = vld [vmem:[%s3825_s0 + $0x28] sm:$0xff] }
   0x4   :  { %83 = vst.msk [vmem:[#allocation2 + $0x11] sm:$0xff] %vm80_vm0, %v62_v2  ;;  %v69_v9 = vld [vmem:[%s3825_s0 + $0x48] sm:$0xff]  ;;  %v70_v10 = vld [vmem:[%s3825_s0 + $0x50] sm:$0xff]  ;;  %v71_v12 = vld [vmem:[%s3825_s0 + $0x58] sm:$0xff] }
   0x5   :  { %84 = vst.msk [vmem:[#allocation2 + $0x19] sm:$0xff] %vm80_vm0, %v63_v3  ;;  %v72_v14 = vld [vmem:[%s3825_s0 + $0x60] sm:$0xff]  ;;  %v73_v16 = vld [vmem:[%s3825_s0 + $0x68] sm:$0xff]  ;;  %v74_v18 = vld [vmem:[%s3825_s0 + $0x70] sm:$0xff] }
   0x6   :  { %85 = vst.msk [vmem:[#allocation2 + $0x21] sm:$0xff] %vm80_vm0, %v64_v4 }
   0x7   :  { %87 = vst.msk [vmem:[#allocation2 + $0x31] sm:$0xff] %vm80_vm0, %v66_v5 }
   0x8   :  { %88 = vst.msk [vmem:[#allocation2 + $0x39] sm:$0xff] %vm80_vm0, %v67_v6 }
   0x9   :  { %89 = vst.msk [vmem:[#allocation2 + $0x41] sm:$0xff] %vm80_vm0, %v68_v7 }
   0xa   :  { %v121_v11 = vld [vmem:[#allocation2 + $0x1] ss:$2 sm:$0xff]  ;;  %86 = vst.msk [vmem:[#allocation2 + $0x29] sm:$0xff] %vm80_vm0, %v65_v8 }
   0xb   :  { %v161_v13 = vld [vmem:[#allocation2 + $0x3] ss:$2 sm:$0xff]  ;;  %90 = vst.msk [vmem:[#allocation2 + $0x49] sm:$0xff] %vm80_vm0, %v69_v9 }
   0xc   :  { %v123_v15 = vld [vmem:[#allocation2 + $0x11] ss:$2 sm:$0xff]  ;;  %270 = vrot.lane.b32.xlu1 %v161_v13, %s2300_s17  ;;  %91 = vst.msk [vmem:[#allocation2 + $0x51] sm:$0xff] %vm80_vm0, %v70_v10 }
   0xd   :  { %v2138_v17 = vpack.i.bf16 %v123_v15, %v121_v11  ;;  %92 = vst.msk [vmem:[#allocation2 + $0x59] sm:$0xff] %vm80_vm0, %v71_v12 }
   0xe   :  { %93 = vst.msk [vmem:[#allocation2 + $0x61] sm:$0xff] %vm80_vm0, %v72_v14 }
   0xf   :  { %18 = vsyncpa [#allocation7], 0  ;;  %s2301_s22 = smov 40   ;;  %v127_v19 = vld [vmem:[#allocation2 + $0x31] ss:$2 sm:$0xff]  ;;  %94 = vst.msk [vmem:[#allocation2 + $0x69] sm:$0xff] %vm80_vm0, %v73_v16 }
  0x10   :  { %2139 = vrot.lane.b32.xlu0 %v2138_v17, %s2301_s22  ;;  %v75_v20 = vld [vmem:[%s3825_s0 + $0x78] sm:$0xff]  ;;  %v141_v21 = vld [vmem:[#allocation2 + $0x2] ss:$2 sm:$0xff]  ;;  %95 = vst.msk [vmem:[#allocation2 + $0x71] sm:$0xff] %vm80_vm0, %v74_v18  ;;  %s2302_s25 = smov 80   ;;  %vm49_vm1 = vcmask 319488  }
  0x11   :  { %v143_v22 = vld [vmem:[#allocation2 + $0x12] ss:$2 sm:$0xff]  ;;  %v163_v23 = vld [vmem:[#allocation2 + $0x13] ss:$2 sm:$0xff]  ;;  %96 = vst.msk [vmem:[#allocation2 + $0x79] sm:$0xff] %vm80_vm0, %v75_v20  ;;  %v77_v31 = vld [vmem:[%s3825_s0 + $0x88] sm:$0xff] }
  0x12   :  { %v125_v24 = vld [vmem:[#allocation2 + $0x21] ss:$2 sm:$0xff]  ;;  %v2143_v26 = vpack.i.bf16 %v143_v22, %v141_v21  ;;  %v145_v27 = vld [vmem:[#allocation2 + $0x22] ss:$2 sm:$0xff]  ;;  %v147_v28 = vld [vmem:[#allocation2 + $0x32] ss:$2 sm:$0xff] }
  0x13   :  { %v2148_v25 = vpack.i.bf16 %v127_v19, %v125_v24  ;;  %v76_v29 = vld [vmem:[%s3825_s0 + $0x80] sm:$0xff]  ;;  %v2153_v30 = vpack.i.bf16 %v147_v28, %v145_v27  ;;  %98 = vst.msk [vmem:[#allocation2 + $0x89] sm:$0xff] %vm80_vm0, %v77_v31  ;;  %v78_v36 = vld [vmem:[%s3825_s0 + $0x90] sm:$0xff]  ;;  %v79_v37 = vld [vmem:[%s3825_s0 + $0x98] sm:$0xff]  ;;  %v2303_v45 = vmov 0.0   ;;  %vm356_vm2 = vcmask 261120  }
  0x14   :  { %272 = vrot.lane.b32.xlu1 %v163_v23, %s2300_s17  ;;  %97 = vst.msk [vmem:[#allocation2 + $0x81] sm:$0xff] %vm80_vm0, %v76_v29  ;;  %v167_v32 = vld [vmem:[#allocation2 + $0x33] ss:$2 sm:$0xff]  ;;  %v165_v33 = vld [vmem:[#allocation2 + $0x23] ss:$2 sm:$0xff]  ;;  %vm310_vm3 = vcmask 654336  }
  0x15   :  { %2149 = vrot.lane.b32.xlu2 %v2148_v25, %s2301_s22  ;;  %v129_v34 = vld [vmem:[#allocation2 + $0x41] ss:$2 sm:$0xff]  ;;  %v131_v35 = vld [vmem:[#allocation2 + $0x51] ss:$2 sm:$0xff]  ;;  %v149_v38 = vld [vmem:[#allocation2 + $0x42] ss:$2 sm:$0xff] }
  0x16   :  { %v151_v39 = vld [vmem:[#allocation2 + $0x52] ss:$2 sm:$0xff]  ;;  %v2158_v40 = vpack.i.bf16 %v131_v35, %v129_v34  ;;  %99 = vst.msk [vmem:[#allocation2 + $0x91] sm:$0xff] %vm80_vm0, %v78_v36  ;;  %v169_v41 = vld [vmem:[#allocation2 + $0x43] ss:$2 sm:$0xff]  ;;  %vm321_vm4 = vcmask 982016  }
  0x17   :  { %100 = vst.msk [vmem:[#allocation2 + $0x99] sm:$0xff] %vm80_vm0, %v79_v37  ;;  %v2163_v42 = vpack.i.bf16 %v151_v39, %v149_v38  ;;  %v133_v43 = vld [vmem:[#allocation2 + $0x61] ss:$2 sm:$0xff]  ;;  %v347_v46 = vld [vmem:[%s3826_s1 + $0x78] sm:$0xff]  ;;  %v346_v47 = vld [vmem:[%s3826_s1 + $0x70] sm:$0xff]  ;;  %vm52_vm5 = vcmask 253952  }
  0x18   :  { %2144 = vrot.lane.b32.xlu0 %v2143_v26, %s2302_s25  ;;  %v135_v44 = vld [vmem:[#allocation2 + $0x71] ss:$2 sm:$0xff]  ;;  %51 = vst.msk [vmem:[#allocation2 + $0xa1] sm:$0x1] %vm49_vm1, %v2303_v45  ;;  %v153_v48 = vld [vmem:[#allocation2 + $0x62] ss:$2 sm:$0xff]  ;;  %377 = vmatpush.msra.mxu0 %v347_v46 }
  0x19   :  { %v171_v49 = vld [vmem:[#allocation2 + $0x53] ss:$2 sm:$0xff]  ;;  %50 = vst.msk [vmem:[#allocation2] sm:$0x1] %vm49_vm1, %v2303_v45  ;;  %v345_v50 = vld [vmem:[%s3826_s1 + $0x68] sm:$0xff]  ;;  %v2168_v51 = vpack.i.bf16 %v135_v44, %v133_v43  ;;  %s2304_s14 = smov 64  }
  0x1a   :  { %378 = vmatpush.msra.mxu0 %v346_v47  ;;  %v344_v52 = vld [vmem:[%s3826_s1 + $0x60] sm:$0xff]  ;;  %v343_v53 = vld [vmem:[%s3826_s1 + $0x58] sm:$0xff]  ;;  %v342_v54 = vld [vmem:[%s3826_s1 + $0x50] sm:$0xff]  ;;  %54 = vst.msk [vmem:[#allocation3 + $0x51] sm:$0x1] %vm52_vm5, %v2303_v45  ;;  %s2305_s15 = smov 96  }
  0x1b   :  { %v175_v55 = vld [vmem:[#allocation2 + $0x73] ss:$2 sm:$0xff]  ;;  %v173_v56 = vld [vmem:[#allocation2 + $0x63] ss:$2 sm:$0xff]  ;;  %v155_v58 = vld [vmem:[#allocation2 + $0x72] ss:$2 sm:$0xff] }
  0x1c   :  { %276 = vrot.lane.b32.xlu1 %v167_v32, %s2300_s17  ;;  %379 = vmatpush.msra.mxu0 %v345_v50  ;;  %v341_v57 = vld [vmem:[%s3826_s1 + $0x48] sm:$0xff]  ;;  %v340_v59 = vld [vmem:[%s3826_s1 + $0x40] sm:$0xff]  ;;  %v339_v60 = vld [vmem:[%s3826_s1 + $0x38] sm:$0xff]  ;;  %53 = vst.msk [vmem:[#allocation3] sm:$0x1] %vm52_vm5, %v2303_v45  ;;  %s2306_s16 = smov 32  }
  0x1d   :  { %2154 = vrot.lane.b32.xlu2 %v2153_v30, %s2302_s25  ;;  %v338_v61 = vld [vmem:[%s3826_s1 + $0x30] sm:$0xff]  ;;  %v137_v63 = vld [vmem:[#allocation2 + $0x81] ss:$2 sm:$0xff]  ;;  %v351_v6 = vld [vmem:[%s3826_s1 + $0x98] sm:$0xff]  ;;  %55 = vst.msk [vmem:[#allocation4] sm:$0x1] %vm52_vm5, %v2303_v45 }
  0x1e   :  { %380 = vmatpush.msra.mxu0 %v344_v52  ;;  %v177_v62 = vld [vmem:[#allocation2 + $0x83] ss:$2 sm:$0xff]  ;;  %v157_v0 = vld [vmem:[#allocation2 + $0x82] ss:$2 sm:$0xff]  ;;  %v159_v3 = vld [vmem:[#allocation2 + $0x92] ss:$2 sm:$0xff]  ;;  %436 = vmatpush.msra.mxu1 %v351_v6 }
  0x1f   :  { %v179_v1 = vld [vmem:[#allocation2 + $0x93] ss:$2 sm:$0xff]  ;;  %v337_v4 = vld [vmem:[%s3826_s1 + $0x28] sm:$0xff]  ;;  %v103_v16 = vld [vmem:[#allocation2 + $0x10] ss:$2 sm:$0xff]  ;;  %vm595_vm6 = vcmask 523264  }
  0x20   :  { %274 = vrot.lane.b32.xlu0 %v165_v33, %s2300_s17  ;;  %381 = vmatpush.msra.mxu0 %v343_v53  ;;  %v139_v2 = vld [vmem:[#allocation2 + $0x91] ss:$2 sm:$0xff]  ;;  %v336_v5 = vld [vmem:[%s3826_s1 + $0x20] sm:$0xff]  ;;  %v349_v10 = vld [vmem:[%s3826_s1 + $0x88] sm:$0xff]  ;;  %56 = vst.msk [vmem:[#allocation4 + $0x29] sm:$0x1] %vm52_vm5, %v2303_v45 }
  0x21   :  { %v350_v7 = vld [vmem:[%s3826_s1 + $0x90] sm:$0xff]  ;;  %v335_v8 = vld [vmem:[%s3826_s1 + $0x18] sm:$0xff]  ;;  %v333_v11 = vld [vmem:[%s3826_s1 + $0x8] sm:$0xff]  ;;  %vm601_vm7 = vcmask 785408   ;;  %vm57_vm8 = vcmask 516096   ;;  %vm788_vm9 = vcmask 519168  }
  0x22   :  { %382 = vmatpush.msra.mxu0 %v342_v54  ;;  %437 = vmatpush.msra.mxu1 %v350_v7  ;;  %v334_v9 = vld [vmem:[%s3826_s1 + $0x10] sm:$0xff]  ;;  %v348_v12 = vld [vmem:[%s3826_s1 + $0x80] sm:$0xff]  ;;  %v2099_v17 = vld [vmem:[%s3825_s0 + $0xa8] sm:$0xff]  ;;  %58 = vst.msk [vmem:[#allocation5] sm:$0x1] %vm57_vm8, %v2303_v45  ;;  %vm920_vm10 = vcmask 1044480  }
  0x23   :  { %v332_v13 = vld [vmem:[%s3826_s1] sm:$0xff]  ;;  %v2100_v18 = vld [vmem:[%s3825_s0 + $0xb0] sm:$0xff]  ;;  %v2101_v21 = vld [vmem:[%s3825_s0 + $0xb8] sm:$0xff]  ;;  %59 = vst.msk [vmem:[#allocation5 + $0x15] sm:$0x1] %vm57_vm8, %v2303_v45  ;;  %vm915_vm11 = vcmask 1045504  }
  0x24   :  { %278 = vrot.lane.b32.xlu1 %v169_v41, %s2300_s17  ;;  %383 = vmatpush.msra.mxu0 %v341_v57  ;;  %v101_v14 = vld [vmem:[#allocation2] ss:$2 sm:$0xff]  ;;  %1051 = vst.msk [vmem:[#allocation2 + $0x11] sm:$0xff] %vm80_vm0, %v2100_v18  ;;  %v107_v25 = vld [vmem:[#allocation2 + $0x30] ss:$2 sm:$0xff]  ;;  %vm1922_vm12 = vcmask 1040384  }
  0x25   :  { %2159 = vrot.lane.b32.xlu2 %v2158_v40, %s2301_s22  ;;  %438 = vmatpush.msra.mxu1 %v349_v10  ;;  %v2098_v15 = vld [vmem:[%s3825_s0 + $0xa0] sm:$0xff]  ;;  %1050 = vst.msk [vmem:[#allocation2 + $0x9] sm:$0xff] %vm80_vm0, %v2099_v17  ;;  %v2103_v26 = vld [vmem:[%s3825_s0 + $0xc8] sm:$0xff]  ;;  %v2104_v27 = vld [vmem:[%s3825_s0 + $0xd0] sm:$0xff]  ;;  %s2307_s23 = smov [#allocation6]   ;;  %s2079_s26 = sshll.u32 %s3838_s13, 4  ;;  %s2080_s26 = int_to_ptr.hbm [resolvable:$true] %s2079_s26 }
  0x26   :  { %384 = vmatpush.msra.mxu0 %v340_v59  ;;  %1049 = vst.msk [vmem:[#allocation2 + $0x1] sm:$0xff] %vm80_vm0, %v2098_v15  ;;  %v105_v20 = vld [vmem:[#allocation2 + $0x20] ss:$2 sm:$0xff]  ;;  %v2105_v38 = vld [vmem:[%s3825_s0 + $0xd8] sm:$0xff]  ;;  %v2108_v52 = vld [vmem:[%s3825_s0 + $0xf0] sm:$0xff]  ;;  %vm2070_vm13 = vcmask 517120  }
  0x27   :  { %439 = vmatpush.msra.mxu1 %v348_v12  ;;  %v2102_v22 = vld [vmem:[%s3825_s0 + $0xc0] sm:$0xff]  ;;  %1052 = vst.msk [vmem:[#allocation2 + $0x19] sm:$0xff] %vm80_vm0, %v2101_v21  ;;  %v2109_v53 = vld [vmem:[%s3825_s0 + $0xf8] sm:$0xff]  ;;  %v2112_v57 = vld [vmem:[%s3825_s0 + $0x110] sm:$0xff] }
  0x28   :  { %2164 = vrot.lane.b32.xlu0 %v2163_v42, %s2302_s25  ;;  %385 = vmatpush.msra.mxu0 %v339_v60  ;;  %1053 = vst.msk [vmem:[#allocation2 + $0x21] sm:$0xff] %vm80_vm0, %v2102_v22  ;;  %v109_v37 = vld [vmem:[#allocation2 + $0x40] ss:$2 sm:$0xff]  ;;  %v119_v17 = vld [vmem:[#allocation2 + $0x90] ss:$2 sm:$0xff] }
  0x29   :  { %1054 = vst.msk [vmem:[#allocation2 + $0x29] sm:$0xff] %vm80_vm0, %v2103_v26  ;;  %v2106_v39 = vld [vmem:[%s3825_s0 + $0xe0] sm:$0xff]  ;;  %v2115_v18 = vld [vmem:[%s3825_s0 + $0x128] sm:$0xff]  ;;  %v2117_v22 = vld [vmem:[%s3825_s0 + $0x138] sm:$0xff] }
  0x2a   :  { %386 = vmatpush.msra.mxu0 %v338_v61  ;;  %1055 = vst.msk [vmem:[#allocation2 + $0x31] sm:$0xff] %vm80_vm0, %v2104_v27  ;;  %v2110_v40 = vld [vmem:[%s3825_s0 + $0x100] sm:$0xff]  ;;  %v839_v45 = vld [vmem:[%s3832_s7 + $0x70] sm:$0xff] }
  0x2b   :  { %1056 = vst.msk [vmem:[#allocation2 + $0x39] sm:$0xff] %vm80_vm0, %v2105_v38  ;;  %v2587_v41 = vld [vmem:[#allocation2 + $0x60] ss:$2 sm:$0xff] }
  0x2c   :  { %242 = vrot.lane.b32.xlu1 %v153_v48, %s2302_s25  ;;  %387 = vmatpush.msra.mxu0 %v337_v4  ;;  %1057 = vst.msk [vmem:[#allocation2 + $0x41] sm:$0xff] %vm80_vm0, %v2106_v39  ;;  %v2114_v10 = vld [vmem:[%s3825_s0 + $0x120] sm:$0xff] }
  0x2d   :  { %280 = vrot.lane.b32.xlu2 %v171_v49, %s2300_s17  ;;  %1061 = vst.msk [vmem:[#allocation2 + $0x61] sm:$0xff] %vm80_vm0, %v2110_v40  ;;  %v111_v49 = vld [vmem:[#allocation2 + $0x50] ss:$2 sm:$0xff] }
  0x2e   :  { %388 = vmatpush.msra.mxu0 %v336_v5  ;;  %1059 = vst.msk [vmem:[#allocation2 + $0x51] sm:$0xff] %vm80_vm0, %v2108_v52 }
  0x2f   :  { %1060 = vst.msk [vmem:[#allocation2 + $0x59] sm:$0xff] %vm80_vm0, %v2109_v53 }
  0x30   :  { %2169 = vrot.lane.b32.xlu0 %v2168_v51, %s2301_s22  ;;  %389 = vmatpush.msra.mxu0 %v335_v8  ;;  %v2107_v51 = vld [vmem:[%s3825_s0 + $0xe8] sm:$0xff]  ;;  %1068 = vst.msk [vmem:[#allocation2 + $0x99] sm:$0xff] %vm80_vm0, %v2117_v22 }
  0x31   :  { %1058 = vst.msk [vmem:[#allocation2 + $0x49] sm:$0xff] %vm80_vm0, %v2107_v51  ;;  %v117_v8 = vld [vmem:[#allocation2 + $0x80] ss:$2 sm:$0xff] }
  0x32   :  { %390 = vmatpush.msra.mxu0 %v334_v9  ;;  %v2113_v9 = vld [vmem:[%s3825_s0 + $0x118] sm:$0xff]  ;;  %1065 = vst.msk [vmem:[#allocation2 + $0x81] sm:$0xff] %vm80_vm0, %v2114_v10  ;;  %v2673_v51 = vld [vmem:[%s3827_s2] ss:$0 sm:$0xff] }
  0x33   :  { %1066 = vst.msk [vmem:[#allocation2 + $0x89] sm:$0xff] %vm80_vm0, %v2115_v18 }
  0x34   :  { %284 = vrot.lane.b32.xlu1 %v175_v55, %s2300_s17  ;;  %391 = vmatpush.msra.mxu0 %v333_v11 }
  0x35   :  { %282 = vrot.lane.b32.xlu2 %v173_v56, %s2300_s17  ;;  %v2111_v56 = vld [vmem:[%s3825_s0 + $0x108] sm:$0xff] }
  0x36   :  { %392 = vmatpush.msra.mxu0 %v332_v13 }
  0x38   :  { %244 = vrot.lane.b32.xlu0 %v155_v58, %s2302_s25  ;;  %v115_v58 = vld [vmem:[#allocation2 + $0x70] ss:$2 sm:$0xff] }
  0x39   :  { %1062 = vst.msk [vmem:[#allocation2 + $0x69] sm:$0xff] %vm80_vm0, %v2111_v56 }
  0x3a   :  { %1063 = vst.msk [vmem:[#allocation2 + $0x71] sm:$0xff] %vm80_vm0, %v2112_v57 }
  0x3b   :  { %1064 = vst.msk [vmem:[#allocation2 + $0x79] sm:$0xff] %vm80_vm0, %v2113_v9 }
  0x3c   :  { %286 = vrot.lane.b32.xlu1 %v177_v62, %s2300_s17 }
  0x3d   :  { %206 = vrot.lane.b32.xlu2 %v137_v63, %s2301_s22 }
  0x40   :  { %246 = vrot.lane.b32.xlu0 %v157_v0, %s2302_s25 }
  0x44   :  { %288 = vrot.lane.b32.xlu1 %v179_v1, %s2300_s17 }
  0x45   :  { %208 = vrot.lane.b32.xlu2 %v139_v2, %s2301_s22 }
  0x48   :  { %248 = vrot.lane.b32.xlu0 %v159_v3, %s2302_s25 }
  0x6f   :  { %v2150_v30 = vpop.permute.xlu2 %2149 }
  0x70   :  { %v2151_v46 = vunpack.i.l.bf16 %v2150_v30  ;;  %v2152_v60 = vunpack.i.h.bf16 %v2150_v30 }
  0x72   :  { %v302_v55 = vsel %vm80_vm0, %v105_v20, %v2151_v46  ;;  %v303_v0 = vsel %vm80_vm0, %v107_v25, %v2152_v60 }
  0x77   :  { %v2155_v47 = vpop.permute.xlu2 %2154 }
  0x78   :  { %v2156_v50 = vunpack.i.l.bf16 %v2155_v47  ;;  %v2157_v63 = vunpack.i.h.bf16 %v2155_v47 }
  0x7a   :  { %v313_v59 = vsel %vm310_vm3, %v302_v55, %v2156_v50  ;;  %v314_v4 = vsel %vm310_vm3, %v303_v0, %v2157_v63 }
  0x7e   :  { %v271_v19 = vpop.permute.xlu1 %270 }
  0x7f   :  { %2088 = vmatmul.msk.f32.vlgmr.msra.gmra.mxu1 %vm356_vm2, %v271_v19  ;;  %v2160_v62 = vpop.permute.xlu2 %2159 }
  0x80   :  { %v2161_v2 = vunpack.i.l.bf16 %v2160_v62  ;;  %v2162_v13 = vunpack.i.h.bf16 %v2160_v62 }
  0x82   :  { %v2140_v23 = vpop.permute.xlu0 %2139  ;;  %v304_v7 = vsel %vm80_vm0, %v109_v37, %v2161_v2  ;;  %v305_v20 = vsel %vm80_vm0, %v111_v49, %v2162_v13 }
  0x83   :  { %v2141_v28 = vunpack.i.l.bf16 %v2140_v23  ;;  %v2142_v34 = vunpack.i.h.bf16 %v2140_v23 }
  0x85   :  { %v300_v32 = vsel %vm80_vm0, %v101_v14, %v2141_v28  ;;  %v301_v43 = vsel %vm80_vm0, %v103_v16, %v2142_v34 }
  0x86   :  { %v273_v24 = vpop.permute.xlu1 %272 }
  0x87   :  { %2089 = vmatmul.msk.f32.gmra.mxu1 %vm356_vm2, %v273_v24  ;;  %v281_v11 = vpop.permute.xlu2 %280 }
  0x8a   :  { %v2145_v29 = vpop.permute.xlu0 %2144 }
  0x8b   :  { %v2146_v31 = vunpack.i.l.bf16 %v2145_v29  ;;  %v2147_v36 = vunpack.i.h.bf16 %v2145_v29 }
  0x8d   :  { %v311_v33 = vsel %vm310_vm3, %v300_v32, %v2146_v31  ;;  %v312_v44 = vsel %vm310_vm3, %v301_v43, %v2147_v36 }
  0x8e   :  { %v322_v35 = vsel %vm321_vm4, %v311_v33, %v271_v19  ;;  %v323_v48 = vsel %vm321_vm4, %v312_v44, %v273_v24  ;;  %v277_v54 = vpop.permute.xlu1 %276  ;;  %v2116_v19 = vld [vmem:[%s3825_s0 + $0x130] sm:$0xff] }
  0x8f   :  { %393 = vmatmul.f32.vlgmr.msra.gmra.mxu0 %v322_v35  ;;  %v325_v6 = vsel %vm321_vm4, %v314_v4, %v277_v54  ;;  %v283_v21 = vpop.permute.xlu2 %282  ;;  %1067 = vst.msk [vmem:[#allocation2 + $0x91] sm:$0xff] %vm80_vm0, %v2116_v19 }
  0x92   :  { %v275_v42 = vpop.permute.xlu0 %274 }
  0x93   :  { %2090 = vmatmul.msk.f32.gmra.mxu1 %vm356_vm2, %v275_v42  ;;  %v324_v61 = vsel %vm321_vm4, %v313_v59, %v275_v42 }
  0x96   :  { %v279_v1 = vpop.permute.xlu1 %278 }
  0x97   :  { %396 = vmatmul.f32.gmra.mxu0 %v323_v48  ;;  %v207_v35 = vpop.permute.xlu2 %206 }
  0x98   :  { %v308_v39 = vsel %vm80_vm0, %v117_v8, %v207_v35  ;;  %v620_v35 = vld [vmem:[%s3828_s3 + $0x68] sm:$0xff] }
  0x9a   :  { %v2165_v3 = vpop.permute.xlu0 %2164 }
  0x9b   :  { %2091 = vmatmul.msk.f32.gmra.mxu1 %vm356_vm2, %v277_v54  ;;  %v2166_v5 = vunpack.i.l.bf16 %v2165_v3  ;;  %v2167_v16 = vunpack.i.h.bf16 %v2165_v3 }
  0x9d   :  { %v315_v12 = vsel %vm310_vm3, %v304_v7, %v2166_v5  ;;  %v316_v25 = vsel %vm310_vm3, %v305_v20, %v2167_v16 }
  0x9e   :  { %v326_v14 = vsel %vm321_vm4, %v315_v12, %v279_v1  ;;  %v243_v15 = vpop.permute.xlu1 %242  ;;  %v327_v27 = vsel %vm321_vm4, %v316_v25, %v281_v11 }
  0x9f   :  { %399 = vmatmul.f32.gmra.mxu0 %v324_v61  ;;  %v209_v42 = vpop.permute.xlu2 %208 }
  0xa0   :  { %v309_v44 = vsel %vm80_vm0, %v119_v17, %v209_v42 }
  0xa2   :  { %v2170_v23 = vpop.permute.xlu0 %2169 }
  0xa3   :  { %2092 = vmatmul.msk.f32.gmra.mxu1 %vm356_vm2, %v279_v1  ;;  %v2171_v24 = vunpack.i.l.bf16 %v2170_v23  ;;  %v2172_v30 = vunpack.i.h.bf16 %v2170_v23 }
  0xa5   :  { %v306_v26 = vsel %vm80_vm0, %v2587_v41, %v2171_v24  ;;  %v307_v34 = vsel %vm80_vm0, %v115_v58, %v2172_v30 }
  0xa6   :  { %v285_v28 = vpop.permute.xlu1 %284  ;;  %v317_v29 = vsel %vm310_vm3, %v306_v26, %v243_v15 }
  0xa7   :  { %402 = vmatmul.f32.gmra.mxu0 %v325_v6  ;;  %v328_v32 = vsel %vm321_vm4, %v317_v29, %v283_v21 }
  0xaa   :  { %v245_v31 = vpop.permute.xlu0 %244 }
  0xab   :  { %2093 = vmatmul.msk.f32.gmra.mxu1 %vm356_vm2, %v281_v11  ;;  %v318_v36 = vsel %vm310_vm3, %v307_v34, %v245_v31 }
  0xac   :  { %v329_v38 = vsel %vm321_vm4, %v318_v36, %v285_v28 }
  0xae   :  { %v287_v33 = vpop.permute.xlu1 %286 }
  0xaf   :  { %405 = vmatmul.f32.gmra.mxu0 %v326_v14 }
  0xb2   :  { %v247_v37 = vpop.permute.xlu0 %246 }
  0xb3   :  { %2094 = vmatmul.msk.f32.gmra.mxu1 %vm356_vm2, %v283_v21  ;;  %v319_v41 = vsel %vm310_vm3, %v308_v39, %v247_v37  ;;  %v619_v37 = vld [vmem:[%s3828_s3 + $0x60] sm:$0xff] }
  0xb4   :  { %v330_v43 = vsel %vm321_vm4, %v319_v41, %v287_v33 }
  0xb6   :  { %v289_v40 = vpop.permute.xlu1 %288 }
  0xb7   :  { %408 = vmatmul.f32.gmra.mxu0 %v327_v27 }
  0xba   :  { %v249_v46 = vpop.permute.xlu0 %248 }
  0xbb   :  { %2095 = vmatmul.msk.f32.gmra.mxu1 %vm356_vm2, %v285_v28  ;;  %v320_v47 = vsel %vm310_vm3, %v309_v44, %v249_v46  ;;  %v616_v46 = vld [vmem:[%s3828_s3 + $0x48] sm:$0xff] }
  0xbc   :  { %v331_v48 = vsel %vm321_vm4, %v320_v47, %v289_v40 }
  0xbf   :  { %411 = vmatmul.f32.gmra.mxu0 %v328_v32  ;;  %v622_v32 = vld [vmem:[%s3828_s3 + $0x78] sm:$0xff] }
  0xc0   :  { %627 = vmatpush.msra.mxu2 %v622_v32 }
  0xc3   :  { %2096 = vmatmul.msk.f32.gmra.mxu1 %vm356_vm2, %v287_v33  ;;  %v621_v33 = vld [vmem:[%s3828_s3 + $0x70] sm:$0xff] }
  0xc4   :  { %628 = vmatpush.msra.mxu2 %v621_v33 }
  0xc6   :  { %629 = vmatpush.msra.mxu2 %v620_v35 }
  0xc7   :  { %414 = vmatmul.f32.gmra.mxu0 %v329_v38 }
  0xc8   :  { %630 = vmatpush.msra.mxu2 %v619_v37 }
  0xcb   :  { %2097 = vmatmul.msk.f32.gmra.mxu1 %vm356_vm2, %v289_v40  ;;  %v618_v40 = vld [vmem:[%s3828_s3 + $0x58] sm:$0xff] }
  0xcc   :  { %631 = vmatpush.msra.mxu2 %v618_v40 }
  0xcf   :  { %417 = vmatmul.f32.gmra.mxu0 %v330_v43  ;;  %v617_v43 = vld [vmem:[%s3828_s3 + $0x50] sm:$0xff] }
  0xd0   :  { %632 = vmatpush.msra.mxu2 %v617_v43 }
  0xd2   :  { %633 = vmatpush.msra.mxu2 %v616_v46 }
  0xd7   :  { %420 = vmatmul.f32.gmra.mxu0 %v331_v48 }
  0xfc   :  { %v441_v49 = vpop.f32.mrf.mxu1 }
 0x104   :  { %v444_v50 = vpop.f32.mrf.mxu1 }
 0x10c   :  { %v394_v52 = vpop.f32.mrf.mxu0 }
 0x10d   :  { %v395_v53 = vadd.f32 %v2673_v51, %v394_v52 }
 0x10f   :  { %v442_v54 = vadd.f32 %v441_v49, %v395_v53  ;;  %v615_v49 = vld [vmem:[%s3828_s3 + $0x40] sm:$0xff] }
 0x110   :  { %v447_v55 = vpop.f32.mrf.mxu1  ;;  %634 = vmatpush.msra.mxu2 %v615_v49 }
 0x111   :  { %v471_v56 = vmax.f32 %v442_v54, 0.0 }
 0x113   :  { %481 = vst.msk [vmem:[#allocation3 + $0x1] sm:$0xff] %vm356_vm2, %v471_v56 }
 0x114   :  { %v397_v57 = vpop.f32.mrf.mxu0 }
 0x115   :  { %v398_v58 = vadd.f32 %v2673_v51, %v397_v57 }
 0x117   :  { %v445_v59 = vadd.f32 %v444_v50, %v398_v58 }
 0x118   :  { %v450_v61 = vpop.f32.mrf.mxu1 }
 0x119   :  { %v472_v60 = vmax.f32 %v445_v59, 0.0 }
 0x11b   :  { %482 = vst.msk [vmem:[#allocation3 + $0x9] sm:$0xff] %vm356_vm2, %v472_v60 }
 0x11c   :  { %v400_v62 = vpop.f32.mrf.mxu0 }
 0x11d   :  { %v401_v63 = vadd.f32 %v2673_v51, %v400_v62  ;;  %v613_v62 = vld [vmem:[%s3828_s3 + $0x30] sm:$0xff] }
 0x11f   :  { %v448_v0 = vadd.f32 %v447_v55, %v401_v63  ;;  %v612_v63 = vld [vmem:[%s3828_s3 + $0x28] sm:$0xff] }
 0x120   :  { %v453_v4 = vpop.f32.mrf.mxu1 }
 0x121   :  { %v473_v1 = vmax.f32 %v448_v0, 0.0  ;;  %v611_v0 = vld [vmem:[%s3828_s3 + $0x20] sm:$0xff] }
 0x122   :  { %v511_v2 = vld [vmem:[#allocation3 + $0x2] ss:$2 sm:$0xff]  ;;  %v501_v14 = vld [vmem:[#allocation3 + $0x1] ss:$2 sm:$0xff] }
 0x123   :  { %483 = vst.msk [vmem:[#allocation3 + $0x11] sm:$0xff] %vm356_vm2, %v473_v1  ;;  %555 = vrot.lane.b32.xlu0 %v511_v2, %s2304_s14  ;;  %v610_v1 = vld [vmem:[%s3828_s3 + $0x18] sm:$0xff]  ;;  %v609_v2 = vld [vmem:[%s3828_s3 + $0x10] sm:$0xff] }
 0x124   :  { %v403_v3 = vpop.f32.mrf.mxu0 }
 0x125   :  { %v404_v5 = vadd.f32 %v2673_v51, %v403_v3  ;;  %v608_v3 = vld [vmem:[%s3828_s3 + $0x8] sm:$0xff] }
 0x127   :  { %v451_v6 = vadd.f32 %v450_v61, %v404_v5 }
 0x128   :  { %v456_v11 = vpop.f32.mrf.mxu1 }
 0x129   :  { %v474_v7 = vmax.f32 %v451_v6, 0.0 }
 0x12a   :  { %v521_v8 = vld [vmem:[#allocation3 + $0x3] ss:$2 sm:$0xff] }
 0x12b   :  { %484 = vst.msk [vmem:[#allocation3 + $0x19] sm:$0xff] %vm356_vm2, %v474_v7  ;;  %575 = vrot.lane.b32.xlu1 %v521_v8, %s2305_s15  ;;  %v491_v8 = vld [vmem:[#allocation3] ss:$2 sm:$0xff] }
 0x12c   :  { %v406_v9 = vpop.f32.mrf.mxu0 }
 0x12d   :  { %v407_v10 = vadd.f32 %v2673_v51, %v406_v9 }
 0x12f   :  { %v454_v12 = vadd.f32 %v453_v4, %v407_v10  ;;  %v607_v4 = vld [vmem:[%s3828_s3] sm:$0xff] }
 0x130   :  { %v459_v20 = vpop.f32.mrf.mxu1 }
 0x131   :  { %v475_v13 = vmax.f32 %v454_v12, 0.0 }
 0x132   :  { %v503_v15 = vld [vmem:[#allocation3 + $0x11] ss:$2 sm:$0xff]  ;;  %v513_v24 = vld [vmem:[#allocation3 + $0x12] ss:$2 sm:$0xff] }
 0x133   :  { %485 = vst.msk [vmem:[#allocation3 + $0x21] sm:$0xff] %vm356_vm2, %v475_v13  ;;  %v2173_v16 = vpack.i.bf16 %v503_v15, %v501_v14  ;;  %v493_v15 = vld [vmem:[#allocation3 + $0x10] ss:$2 sm:$0xff] }
 0x134   :  { %v409_v17 = vpop.f32.mrf.mxu0 }
 0x135   :  { %v410_v18 = vadd.f32 %v2673_v51, %v409_v17  ;;  %2174 = vrot.lane.b32.xlu2 %v2173_v16, %s2306_s16 }
 0x137   :  { %v457_v19 = vadd.f32 %v456_v11, %v410_v18 }
 0x138   :  { %v462_v28 = vpop.f32.mrf.mxu1 }
 0x139   :  { %v476_v21 = vmax.f32 %v457_v19, 0.0 }
 0x13a   :  { %v523_v22 = vld [vmem:[#allocation3 + $0x13] ss:$2 sm:$0xff] }
 0x13b   :  { %486 = vst.msk [vmem:[#allocation3 + $0x29] sm:$0xff] %vm356_vm2, %v476_v21  ;;  %577 = vrot.lane.b32.xlu0 %v523_v22, %s2305_s15 }
 0x13c   :  { %v412_v23 = vpop.f32.mrf.mxu0 }
 0x13d   :  { %v413_v25 = vadd.f32 %v2673_v51, %v412_v23  ;;  %557 = vrot.lane.b32.xlu2 %v513_v24, %s2304_s14 }
 0x13f   :  { %v460_v26 = vadd.f32 %v459_v20, %v413_v25 }
 0x140   :  { %v465_v41 = vpop.f32.mrf.mxu1 }
 0x141   :  { %v477_v27 = vmax.f32 %v460_v26, 0.0 }
 0x142   :  { %v505_v29 = vld [vmem:[#allocation3 + $0x21] ss:$2 sm:$0xff]  ;;  %v515_v31 = vld [vmem:[#allocation3 + $0x22] ss:$2 sm:$0xff] }
 0x143   :  { %487 = vst.msk [vmem:[#allocation3 + $0x31] sm:$0xff] %vm356_vm2, %v477_v27  ;;  %539 = vrot.lane.b32.xlu1 %v505_v29, %s2306_s16  ;;  %v495_v21 = vld [vmem:[#allocation3 + $0x20] ss:$2 sm:$0xff] }
 0x144   :  { %v415_v30 = vpop.f32.mrf.mxu0 }
 0x145   :  { %v416_v34 = vadd.f32 %v2673_v51, %v415_v30  ;;  %559 = vrot.lane.b32.xlu2 %v515_v31, %s2304_s14 }
 0x147   :  { %v463_v36 = vadd.f32 %v462_v28, %v416_v34 }
 0x148   :  { %v468_v55 = vpop.f32.mrf.mxu1 }
 0x149   :  { %v478_v38 = vmax.f32 %v463_v36, 0.0 }
 0x14a   :  { %v525_v39 = vld [vmem:[#allocation3 + $0x23] ss:$2 sm:$0xff] }
 0x14b   :  { %488 = vst.msk [vmem:[#allocation3 + $0x39] sm:$0xff] %vm356_vm2, %v478_v38  ;;  %579 = vrot.lane.b32.xlu0 %v525_v39, %s2305_s15 }
 0x14c   :  { %v418_v42 = vpop.f32.mrf.mxu0 }
 0x14d   :  { %v419_v44 = vadd.f32 %v2673_v51, %v418_v42 }
 0x14f   :  { %v466_v47 = vadd.f32 %v465_v41, %v419_v44  ;;  %v2264_v41 = vld [vmem:[%s3829_s4] ss:$0 sm:$0xff] }
 0x151   :  { %v479_v48 = vmax.f32 %v466_v47, 0.0 }
 0x152   :  { %v507_v50 = vld [vmem:[#allocation3 + $0x31] ss:$2 sm:$0xff]  ;;  %v517_v52 = vld [vmem:[#allocation3 + $0x32] ss:$2 sm:$0xff] }
 0x153   :  { %489 = vst.msk [vmem:[#allocation3 + $0x41] sm:$0xff] %vm356_vm2, %v479_v48  ;;  %541 = vrot.lane.b32.xlu1 %v507_v50, %s2306_s16  ;;  %561 = vrot.lane.b32.xlu2 %v517_v52, %s2304_s14  ;;  %v497_v28 = vld [vmem:[#allocation3 + $0x30] ss:$2 sm:$0xff] }
 0x154   :  { %v421_v53 = vpop.f32.mrf.mxu0 }
 0x155   :  { %v422_v54 = vadd.f32 %v2673_v51, %v421_v53  ;;  %v614_v51 = vld [vmem:[%s3828_s3 + $0x38] sm:$0xff] }
 0x156   :  { %635 = vmatpush.msra.mxu2 %v614_v51 }
 0x157   :  { %v469_v56 = vadd.f32 %v468_v55, %v422_v54 }
 0x158   :  { %636 = vmatpush.msra.mxu2 %v613_v62 }
 0x159   :  { %v480_v57 = vmax.f32 %v469_v56, 0.0 }
 0x15a   :  { %v527_v58 = vld [vmem:[#allocation3 + $0x33] ss:$2 sm:$0xff]  ;;  %637 = vmatpush.msra.mxu2 %v612_v63 }
 0x15b   :  { %490 = vst.msk [vmem:[#allocation3 + $0x49] sm:$0xff] %vm356_vm2, %v480_v57  ;;  %581 = vrot.lane.b32.xlu0 %v527_v58, %s2305_s15 }
 0x15c   :  { %638 = vmatpush.msra.mxu2 %v611_v0 }
 0x15e   :  { %639 = vmatpush.msra.mxu2 %v610_v1 }
 0x160   :  { %640 = vmatpush.msra.mxu2 %v609_v2 }
 0x162   :  { %v509_v59 = vld [vmem:[#allocation3 + $0x41] ss:$2 sm:$0xff]  ;;  %v519_v61 = vld [vmem:[#allocation3 + $0x42] ss:$2 sm:$0xff]  ;;  %641 = vmatpush.msra.mxu2 %v608_v3 }
 0x163   :  { %v529_v60 = vld [vmem:[#allocation3 + $0x43] ss:$2 sm:$0xff]  ;;  %543 = vrot.lane.b32.xlu1 %v509_v59, %s2306_s16  ;;  %563 = vrot.lane.b32.xlu2 %v519_v61, %s2304_s14  ;;  %v499_v34 = vld [vmem:[#allocation3 + $0x40] ss:$2 sm:$0xff] }
 0x164   :  { %583 = vrot.lane.b32.xlu0 %v529_v60, %s2305_s15  ;;  %642 = vmatpush.msra.mxu2 %v607_v4  ;;  %v752_v3 = vld [vmem:[%s3830_s5 + $0x78] sm:$0xff]  ;;  %v751_v4 = vld [vmem:[%s3830_s5 + $0x70] sm:$0xff] }
 0x165   :  { %757 = vmatpush.msra.mxu3 %v752_v3  ;;  %v831_v3 = vld [vmem:[%s3832_s7 + $0x30] sm:$0xff] }
 0x167   :  { %758 = vmatpush.msra.mxu3 %v751_v4 }
 0x18f   :  { %v2175_v5 = vpop.permute.xlu2 %2174 }
 0x190   :  { %v2176_v6 = vunpack.i.l.bf16 %v2175_v5  ;;  %v2177_v13 = vunpack.i.h.bf16 %v2175_v5  ;;  %v750_v5 = vld [vmem:[%s3830_s5 + $0x68] sm:$0xff] }
 0x191   :  { %759 = vmatpush.msra.mxu3 %v750_v5  ;;  %v846_v5 = vld [vmem:[%s3832_s7 + $0xa8] sm:$0xff] }
 0x192   :  { %v590_v9 = vsel %vm356_vm2, %v491_v8, %v2176_v6  ;;  %v591_v16 = vsel %vm356_vm2, %v493_v15, %v2177_v13  ;;  %v749_v6 = vld [vmem:[%s3830_s5 + $0x60] sm:$0xff]  ;;  %v747_v8 = vld [vmem:[%s3830_s5 + $0x50] sm:$0xff]  ;;  %v742_v13 = vld [vmem:[%s3830_s5 + $0x28] sm:$0xff] }
 0x193   :  { %760 = vmatpush.msra.mxu3 %v749_v6  ;;  %v740_v15 = vld [vmem:[%s3830_s5 + $0x18] sm:$0xff]  ;;  %v830_v6 = vld [vmem:[%s3832_s7 + $0x28] sm:$0xff] }
 0x195   :  { %v556_v7 = vpop.permute.xlu0 %555 }
 0x196   :  { %v596_v10 = vsel %vm595_vm6, %v590_v9, %v556_v7  ;;  %v748_v7 = vld [vmem:[%s3830_s5 + $0x58] sm:$0xff]  ;;  %v746_v9 = vld [vmem:[%s3830_s5 + $0x48] sm:$0xff] }
 0x197   :  { %v558_v14 = vpop.permute.xlu2 %557  ;;  %761 = vmatpush.msra.mxu3 %v748_v7 }
 0x198   :  { %v597_v17 = vsel %vm595_vm6, %v591_v16, %v558_v14  ;;  %v741_v14 = vld [vmem:[%s3830_s5 + $0x20] sm:$0xff]  ;;  %v739_v16 = vld [vmem:[%s3830_s5 + $0x10] sm:$0xff] }
 0x199   :  { %762 = vmatpush.msra.mxu3 %v747_v8  ;;  %v845_v8 = vld [vmem:[%s3832_s7 + $0xa0] sm:$0xff] }
 0x19b   :  { %763 = vmatpush.msra.mxu3 %v746_v9  ;;  %v829_v9 = vld [vmem:[%s3832_s7 + $0x20] sm:$0xff] }
 0x19d   :  { %v576_v11 = vpop.permute.xlu1 %575 }
 0x19e   :  { %v602_v12 = vsel %vm601_vm7, %v596_v10, %v576_v11  ;;  %v745_v10 = vld [vmem:[%s3830_s5 + $0x40] sm:$0xff]  ;;  %v744_v11 = vld [vmem:[%s3830_s5 + $0x38] sm:$0xff] }
 0x19f   :  { %643 = vmatmul.f32.vlgmr.msra.gmra.mxu2 %v602_v12  ;;  %v560_v23 = vpop.permute.xlu2 %559  ;;  %764 = vmatpush.msra.mxu3 %v745_v10  ;;  %v743_v12 = vld [vmem:[%s3830_s5 + $0x30] sm:$0xff]  ;;  %v844_v10 = vld [vmem:[%s3832_s7 + $0x98] sm:$0xff] }
 0x1a1   :  { %765 = vmatpush.msra.mxu3 %v744_v11  ;;  %v828_v11 = vld [vmem:[%s3832_s7 + $0x18] sm:$0xff] }
 0x1a3   :  { %766 = vmatpush.msra.mxu3 %v743_v12  ;;  %v843_v12 = vld [vmem:[%s3832_s7 + $0x90] sm:$0xff] }
 0x1a5   :  { %767 = vmatpush.msra.mxu3 %v742_v13  ;;  %v827_v13 = vld [vmem:[%s3832_s7 + $0x10] sm:$0xff] }
 0x1a7   :  { %768 = vmatpush.msra.mxu3 %v741_v14 }
 0x1a9   :  { %769 = vmatpush.msra.mxu3 %v740_v15 }
 0x1ab   :  { %770 = vmatpush.msra.mxu3 %v739_v16 }
 0x1ad   :  { %v578_v18 = vpop.permute.xlu0 %577  ;;  %v562_v30 = vpop.permute.xlu2 %561 }
 0x1ae   :  { %v603_v19 = vsel %vm601_vm7, %v597_v17, %v578_v18  ;;  %v738_v17 = vld [vmem:[%s3830_s5 + $0x8] sm:$0xff]  ;;  %v737_v18 = vld [vmem:[%s3830_s5] sm:$0xff] }
 0x1af   :  { %646 = vmatmul.f32.gmra.mxu2 %v603_v19  ;;  %771 = vmatpush.msra.mxu3 %v738_v17  ;;  %v826_v17 = vld [vmem:[%s3832_s7 + $0x8] sm:$0xff] }
 0x1b1   :  { %772 = vmatpush.msra.mxu3 %v737_v18  ;;  %v842_v18 = vld [vmem:[%s3832_s7 + $0x88] sm:$0xff] }
 0x1b5   :  { %v540_v20 = vpop.permute.xlu1 %539 }
 0x1b6   :  { %v592_v22 = vsel %vm356_vm2, %v495_v21, %v540_v20 }
 0x1b7   :  { %v598_v25 = vsel %vm595_vm6, %v592_v22, %v560_v23 }
 0x1bd   :  { %v580_v24 = vpop.permute.xlu0 %579  ;;  %v564_v36 = vpop.permute.xlu2 %563 }
 0x1be   :  { %v604_v26 = vsel %vm601_vm7, %v598_v25, %v580_v24 }
 0x1bf   :  { %649 = vmatmul.f32.gmra.mxu2 %v604_v26 }
 0x1c5   :  { %v542_v27 = vpop.permute.xlu1 %541 }
 0x1c6   :  { %v593_v29 = vsel %vm356_vm2, %v497_v28, %v542_v27 }
 0x1c7   :  { %v599_v32 = vsel %vm595_vm6, %v593_v29, %v562_v30 }
 0x1cd   :  { %v582_v31 = vpop.permute.xlu0 %581 }
 0x1ce   :  { %v605_v33 = vsel %vm601_vm7, %v599_v32, %v582_v31 }
 0x1cf   :  { %652 = vmatmul.f32.gmra.mxu2 %v605_v33 }
 0x1d5   :  { %v544_v35 = vpop.permute.xlu1 %543 }
 0x1d6   :  { %v594_v37 = vsel %vm356_vm2, %v499_v34, %v544_v35  ;;  %v584_v38 = vpop.permute.xlu0 %583 }
 0x1d7   :  { %v600_v39 = vsel %vm595_vm6, %v594_v37, %v564_v36 }
 0x1d8   :  { %v606_v40 = vsel %vm601_vm7, %v600_v39, %v584_v38 }
 0x1d9   :  { %655 = vmatmul.f32.gmra.mxu2 %v606_v40  ;;  %v2265_v40 = vld [vmem:[%s3831_s6] ss:$0 sm:$0xff] }
 0x222   :  { %v644_v42 = vpop.f32.mrf.mxu2 }
 0x223   :  { %v645_v43 = vadd.f32 %v2264_v41, %v644_v42 }
 0x225   :  { %v659_v44 = vmax.f32 %v645_v43, 0.0 }
 0x227   :  { %664 = vst.msk [vmem:[#allocation4 + $0x1] sm:$0xff] %vm356_vm2, %v659_v44  ;;  %v856_v44 = vld [vmem:[%s3832_s7 + $0xf8] sm:$0xff] }
 0x228   :  { %884 = vmatpush.msrb.mxu2 %v856_v44  ;;  %v944_v44 = vld [vmem:[%s3834_s9 + $0x78] sm:$0xff] }
 0x229   :  { %965 = vmatpush.msrb.mxu1 %v944_v44  ;;  %v1259_v44 = vld [vmem:[%s3826_s1] sm:$0xff] }
 0x232   :  { %v647_v46 = vpop.f32.mrf.mxu2 }
 0x233   :  { %v648_v47 = vadd.f32 %v2264_v41, %v647_v46  ;;  %v855_v46 = vld [vmem:[%s3832_s7 + $0xf0] sm:$0xff] }
 0x234   :  { %885 = vmatpush.msrb.mxu2 %v855_v46  ;;  %v1085_v46 = vld [vmem:[#allocation2 + $0x61] ss:$2 sm:$0xff] }
 0x235   :  { %v660_v48 = vmax.f32 %v648_v47, 0.0  ;;  %v840_v47 = vld [vmem:[%s3832_s7 + $0x78] sm:$0xff] }
 0x236   :  { %861 = vmatpush.msrb.mxu3 %v840_v47  ;;  %v1086_v47 = vld [vmem:[#allocation2 + $0x71] ss:$2 sm:$0xff] }
 0x237   :  { %665 = vst.msk [vmem:[#allocation4 + $0x9] sm:$0xff] %vm356_vm2, %v660_v48  ;;  %v854_v48 = vld [vmem:[%s3832_s7 + $0xe8] sm:$0xff] }
 0x238   :  { %862 = vmatpush.msrb.mxu3 %v839_v45  ;;  %886 = vmatpush.msrb.mxu2 %v854_v48  ;;  %v2218_v45 = vpack.i.bf16 %v1086_v47, %v1085_v46  ;;  %v1095_v48 = vld [vmem:[#allocation2 + $0x62] ss:$2 sm:$0xff] }
 0x239   :  { %v1275_v46 = vld [vmem:[%s3826_s1 + $0x80] sm:$0xff] }
 0x23e   :  { %v681_v49 = vld [vmem:[#allocation4 + $0x2] ss:$2 sm:$0xff]  ;;  %v675_v50 = vld [vmem:[#allocation4 + $0x1] ss:$2 sm:$0xff] }
 0x23f   :  { %707 = vrot.lane.b32.xlu2 %v681_v49, %s2304_s14  ;;  %695 = vrot.lane.b32.xlu1 %v675_v50, %s2306_s16  ;;  %v669_v20 = vld [vmem:[#allocation4] ss:$2 sm:$0xff] }
 0x240   :  { %v838_v49 = vld [vmem:[%s3832_s7 + $0x68] sm:$0xff]  ;;  %v853_v50 = vld [vmem:[%s3832_s7 + $0xe0] sm:$0xff] }
 0x241   :  { %863 = vmatpush.msrb.mxu3 %v838_v49  ;;  %887 = vmatpush.msrb.mxu2 %v853_v50  ;;  %v943_v49 = vld [vmem:[%s3834_s9 + $0x70] sm:$0xff]  ;;  %v942_v50 = vld [vmem:[%s3834_s9 + $0x68] sm:$0xff] }
 0x242   :  { %v650_v52 = vpop.f32.mrf.mxu2  ;;  %966 = vmatpush.msrb.mxu1 %v943_v49 }
 0x243   :  { %v651_v53 = vadd.f32 %v2264_v41, %v650_v52  ;;  %v837_v52 = vld [vmem:[%s3832_s7 + $0x60] sm:$0xff] }
 0x244   :  { %864 = vmatpush.msrb.mxu3 %v837_v52  ;;  %v2973_v52 = vld [vmem:[%s3833_s8] ss:$0 sm:$0xff]  ;;  %967 = vmatpush.msrb.mxu1 %v942_v50 }
 0x245   :  { %v661_v54 = vmax.f32 %v651_v53, 0.0  ;;  %v852_v53 = vld [vmem:[%s3832_s7 + $0xd8] sm:$0xff]  ;;  %v1069_v50 = vld [vmem:[#allocation2] ss:$2 sm:$0xff] }
 0x246   :  { %888 = vmatpush.msrb.mxu2 %v852_v53 }
 0x247   :  { %666 = vst.msk [vmem:[#allocation4 + $0x11] sm:$0xff] %vm356_vm2, %v661_v54  ;;  %v836_v54 = vld [vmem:[%s3832_s7 + $0x58] sm:$0xff] }
 0x248   :  { %865 = vmatpush.msrb.mxu3 %v836_v54 }
 0x24e   :  { %v687_v55 = vld [vmem:[#allocation4 + $0x3] ss:$2 sm:$0xff] }
 0x24f   :  { %719 = vrot.lane.b32.xlu0 %v687_v55, %s2305_s15  ;;  %v851_v55 = vld [vmem:[%s3832_s7 + $0xd0] sm:$0xff] }
 0x250   :  { %889 = vmatpush.msrb.mxu2 %v851_v55 }
 0x252   :  { %v653_v56 = vpop.f32.mrf.mxu2 }
 0x253   :  { %v654_v57 = vadd.f32 %v2264_v41, %v653_v56 }
 0x255   :  { %v662_v58 = vmax.f32 %v654_v57, 0.0  ;;  %v835_v57 = vld [vmem:[%s3832_s7 + $0x50] sm:$0xff] }
 0x256   :  { %866 = vmatpush.msrb.mxu3 %v835_v57  ;;  %v1096_v57 = vld [vmem:[#allocation2 + $0x72] ss:$2 sm:$0xff] }
 0x257   :  { %667 = vst.msk [vmem:[#allocation4 + $0x19] sm:$0xff] %vm356_vm2, %v662_v58 }
 0x25c   :  { %v656_v59 = vpop.f32.mrf.mxu2 }
 0x25d   :  { %v657_v60 = vadd.f32 %v2264_v41, %v656_v59  ;;  %v850_v59 = vld [vmem:[%s3832_s7 + $0xc8] sm:$0xff] }
 0x25e   :  { %v683_v61 = vld [vmem:[#allocation4 + $0x12] ss:$2 sm:$0xff]  ;;  %v677_v51 = vld [vmem:[#allocation4 + $0x11] ss:$2 sm:$0xff]  ;;  %890 = vmatpush.msrb.mxu2 %v850_v59 }
 0x25f   :  { %v663_v62 = vmax.f32 %v657_v60, 0.0  ;;  %709 = vrot.lane.b32.xlu2 %v683_v61, %s2304_s14  ;;  %697 = vrot.lane.b32.xlu1 %v677_v51, %s2306_s16  ;;  %v671_v27 = vld [vmem:[#allocation4 + $0x10] ss:$2 sm:$0xff]  ;;  %v834_v60 = vld [vmem:[%s3832_s7 + $0x48] sm:$0xff]  ;;  %v849_v51 = vld [vmem:[%s3832_s7 + $0xc0] sm:$0xff] }
 0x260   :  { %867 = vmatpush.msrb.mxu3 %v834_v60  ;;  %891 = vmatpush.msrb.mxu2 %v849_v51  ;;  %v940_v59 = vld [vmem:[%s3834_s9 + $0x58] sm:$0xff] }
 0x261   :  { %668 = vst.msk [vmem:[#allocation4 + $0x21] sm:$0xff] %vm356_vm2, %v663_v62  ;;  %v833_v62 = vld [vmem:[%s3832_s7 + $0x40] sm:$0xff] }
 0x262   :  { %868 = vmatpush.msrb.mxu3 %v833_v62  ;;  %v1106_v60 = vld [vmem:[#allocation2 + $0x73] ss:$2 sm:$0xff] }
 0x268   :  { %v689_v63 = vld [vmem:[#allocation4 + $0x13] ss:$2 sm:$0xff]  ;;  %v685_v0 = vld [vmem:[#allocation4 + $0x22] ss:$2 sm:$0xf] }
 0x269   :  { %721 = vrot.lane.b32.xlu0 %v689_v63, %s2305_s15  ;;  %711 = vrot.lane.b32.xlu2 %v685_v0, %s2304_s14  ;;  %v679_v1 = vld [vmem:[#allocation4 + $0x21] ss:$2 sm:$0xf]  ;;  %v673_v34 = vld [vmem:[#allocation4 + $0x20] ss:$2 sm:$0xf] }
 0x26a   :  { %699 = vrot.lane.b32.xlu1 %v679_v1, %s2306_s16  ;;  %v691_v2 = vld [vmem:[#allocation4 + $0x23] ss:$2 sm:$0xf]  ;;  %v848_v63 = vld [vmem:[%s3832_s7 + $0xb8] sm:$0xff]  ;;  %v847_v1 = vld [vmem:[%s3832_s7 + $0xb0] sm:$0xff] }
 0x26b   :  { %v832_v0 = vld [vmem:[%s3832_s7 + $0x38] sm:$0xff]  ;;  %892 = vmatpush.msrb.mxu2 %v848_v63 }
 0x26c   :  { %869 = vmatpush.msrb.mxu3 %v832_v0  ;;  %v939_v0 = vld [vmem:[%s3834_s9 + $0x50] sm:$0xff] }
 0x26d   :  { %893 = vmatpush.msrb.mxu2 %v847_v1  ;;  %v1097_v1 = vld [vmem:[#allocation2 + $0x82] ss:$2 sm:$0xff] }
 0x26e   :  { %870 = vmatpush.msrb.mxu3 %v831_v3  ;;  %v938_v3 = vld [vmem:[%s3834_s9 + $0x48] sm:$0xff] }
 0x26f   :  { %894 = vmatpush.msrb.mxu2 %v846_v5  ;;  %v1099_v5 = vld [vmem:[#allocation2 + $0x3] ss:$2 sm:$0xff] }
 0x270   :  { %871 = vmatpush.msrb.mxu3 %v830_v6  ;;  %v1098_v6 = vld [vmem:[#allocation2 + $0x92] ss:$2 sm:$0xff] }
 0x271   :  { %723 = vrot.lane.b32.xlu0 %v691_v2, %s2305_s15  ;;  %895 = vmatpush.msrb.mxu2 %v845_v8  ;;  %v935_v8 = vld [vmem:[%s3834_s9 + $0x30] sm:$0xff] }
 0x272   :  { %872 = vmatpush.msrb.mxu3 %v829_v9  ;;  %v1274_v9 = vld [vmem:[%s3826_s1 + $0x78] sm:$0xff] }
 0x273   :  { %896 = vmatpush.msrb.mxu2 %v844_v10  ;;  %v1091_v10 = vld [vmem:[#allocation2 + $0x22] ss:$2 sm:$0xff] }
 0x274   :  { %873 = vmatpush.msrb.mxu3 %v828_v11  ;;  %v1092_v11 = vld [vmem:[#allocation2 + $0x32] ss:$2 sm:$0xff] }
 0x275   :  { %897 = vmatpush.msrb.mxu2 %v843_v12  ;;  %v1108_v12 = vld [vmem:[#allocation2 + $0x93] ss:$2 sm:$0xff] }
 0x276   :  { %874 = vmatpush.msrb.mxu3 %v827_v13  ;;  %v934_v13 = vld [vmem:[%s3834_s9 + $0x28] sm:$0xff] }
 0x277   :  { %898 = vmatpush.msrb.mxu2 %v842_v18  ;;  %v1083_v18 = vld [vmem:[#allocation2 + $0x41] ss:$2 sm:$0xff] }
 0x278   :  { %875 = vmatpush.msrb.mxu3 %v826_v17  ;;  %v933_v17 = vld [vmem:[%s3834_s9 + $0x20] sm:$0xff] }
 0x299   :  { %v708_v22 = vpop.permute.xlu2 %707 }
 0x2b1   :  { %v696_v19 = vpop.permute.xlu1 %695 }
 0x2b2   :  { %v728_v21 = vsel %vm356_vm2, %v669_v20, %v696_v19  ;;  %v825_v19 = vld [vmem:[%s3832_s7] sm:$0xff] }
 0x2b3   :  { %v731_v24 = vsel %vm595_vm6, %v728_v21, %v708_v22  ;;  %v841_v20 = vld [vmem:[%s3832_s7 + $0x80] sm:$0xff]  ;;  %876 = vmatpush.msrb.mxu3 %v825_v19  ;;  %v1080_v22 = vld [vmem:[#allocation2 + $0x11] ss:$2 sm:$0xff] }
 0x2b4   :  { %899 = vmatpush.msrb.mxu2 %v841_v20  ;;  %v1079_v21 = vld [vmem:[#allocation2 + $0x1] ss:$2 sm:$0xff]  ;;  %v1084_v19 = vld [vmem:[#allocation2 + $0x51] ss:$2 sm:$0xff] }
 0x2b5   :  { %v1271_v20 = vld [vmem:[%s3826_s1 + $0x60] sm:$0xff] }
 0x2b6   :  { %1303 = vmatpush.msra.mxu2 %v1274_v9 }
 0x2b9   :  { %v710_v29 = vpop.permute.xlu2 %709 }
 0x2c1   :  { %v720_v23 = vpop.permute.xlu0 %719 }
 0x2c2   :  { %v734_v25 = vsel %vm601_vm7, %v731_v24, %v720_v23  ;;  %v1089_v23 = vld [vmem:[#allocation2 + $0x2] ss:$2 sm:$0xff]  ;;  %v2183_v24 = vpack.i.bf16 %v1080_v22, %v1079_v21  ;;  %v2208_v21 = vpack.i.bf16 %v1084_v19, %v1083_v18  ;;  %v1270_v22 = vld [vmem:[%s3826_s1 + $0x58] sm:$0xff] }
 0x2c3   :  { %773 = vmatmul.f32.vlgmr.msra.gmra.mxu3 %v734_v25  ;;  %v712_v36 = vpop.permute.xlu2 %711  ;;  %v1090_v25 = vld [vmem:[#allocation2 + $0x12] ss:$2 sm:$0xff] }
 0x2c4   :  { %2184 = vrot.lane.b32.xlu0 %v2183_v24, %s2301_s22  ;;  %v932_v24 = vld [vmem:[%s3834_s9 + $0x18] sm:$0xff] }
 0x2d1   :  { %v698_v26 = vpop.permute.xlu1 %697 }
 0x2d2   :  { %v729_v28 = vsel %vm356_vm2, %v671_v27, %v698_v26  ;;  %v2188_v26 = vpack.i.bf16 %v1090_v25, %v1089_v23  ;;  %v1100_v27 = vld [vmem:[#allocation2 + $0x13] ss:$2 sm:$0xff]  ;;  %v1268_v25 = vld [vmem:[%s3826_s1 + $0x48] sm:$0xff] }
 0x2d3   :  { %v732_v31 = vsel %vm595_vm6, %v729_v28, %v710_v29  ;;  %1201 = vrot.lane.b32.xlu0 %v1100_v27, %s2300_s17  ;;  %v1269_v23 = vld [vmem:[%s3826_s1 + $0x50] sm:$0xff]  ;;  %v1267_v27 = vld [vmem:[%s3826_s1 + $0x40] sm:$0xff] }
 0x2db   :  { %v722_v30 = vpop.permute.xlu0 %721 }
 0x2dc   :  { %v735_v32 = vsel %vm601_vm7, %v732_v31, %v722_v30  ;;  %v700_v33 = vpop.permute.xlu1 %699 }
 0x2dd   :  { %776 = vmatmul.f32.gmra.mxu3 %v735_v32  ;;  %v730_v35 = vsel %vm356_vm2, %v673_v34, %v700_v33 }
 0x2de   :  { %v733_v38 = vsel %vm595_vm6, %v730_v35, %v712_v36  ;;  %v1081_v35 = vld [vmem:[#allocation2 + $0x21] ss:$2 sm:$0xff]  ;;  %v1082_v36 = vld [vmem:[#allocation2 + $0x31] ss:$2 sm:$0xff] }
 0x2e3   :  { %v724_v37 = vpop.permute.xlu0 %723 }
 0x2e4   :  { %v736_v39 = vsel %vm601_vm7, %v733_v38, %v724_v37  ;;  %v2198_v37 = vpack.i.bf16 %v1082_v36, %v1081_v35  ;;  %v1101_v38 = vld [vmem:[#allocation2 + $0x23] ss:$2 sm:$0xff] }
 0x2e5   :  { %779 = vmatmul.f32.gmra.mxu3 %v736_v39  ;;  %1203 = vrot.lane.b32.xlu0 %v1101_v38, %s2300_s17  ;;  %v1102_v39 = vld [vmem:[#allocation2 + $0x33] ss:$2 sm:$0xff]  ;;  %v1264_v35 = vld [vmem:[%s3826_s1 + $0x28] sm:$0xff] }
 0x2e6   :  { %v929_v36 = vld [vmem:[%s3834_s9] sm:$0xff]  ;;  %v1262_v38 = vld [vmem:[%s3826_s1 + $0x18] sm:$0xff] }
 0x336   :  { %v2185_v47 = vpop.permute.xlu0 %2184 }
 0x346   :  { %v774_v41 = vpop.f32.mrf.mxu3 }
 0x347   :  { %v775_v42 = vadd.f32 %v2265_v40, %v774_v41  ;;  %v1094_v41 = vld [vmem:[#allocation2 + $0x52] ss:$2 sm:$0xff] }
 0x349   :  { %v783_v43 = vmax.f32 %v775_v42, 0.0 }
 0x34b   :  { %786 = vst.msk [vmem:[#allocation5 + $0x1] sm:$0xff] %vm595_vm6, %v783_v43  ;;  %v1103_v43 = vld [vmem:[#allocation2 + $0x43] ss:$2 sm:$0xff] }
 0x360   :  { %v777_v56 = vpop.f32.mrf.mxu3 }
 0x361   :  { %v778_v58 = vadd.f32 %v2265_v40, %v777_v56 }
 0x363   :  { %v784_v61 = vmax.f32 %v778_v58, 0.0  ;;  %v941_v58 = vld [vmem:[%s3834_s9 + $0x60] sm:$0xff] }
 0x364   :  { %968 = vmatpush.msrb.mxu1 %v941_v58 }
 0x365   :  { %787 = vst.msk [vmem:[#allocation5 + $0x9] sm:$0xff] %vm595_vm6, %v784_v61 }
 0x366   :  { %969 = vmatpush.msrb.mxu1 %v940_v59 }
 0x368   :  { %v780_v2 = vpop.f32.mrf.mxu3  ;;  %970 = vmatpush.msrb.mxu1 %v939_v0  ;;  %v1070_v0 = vld [vmem:[#allocation2 + $0x10] ss:$2 sm:$0xff] }
 0x369   :  { %v781_v4 = vadd.f32 %v2265_v40, %v780_v2  ;;  %v1093_v40 = vld [vmem:[#allocation2 + $0x42] ss:$2 sm:$0xff]  ;;  %v1107_v2 = vld [vmem:[#allocation2 + $0x83] ss:$2 sm:$0xff] }
 0x36a   :  { %v2213_v42 = vpack.i.bf16 %v1094_v41, %v1093_v40  ;;  %971 = vmatpush.msrb.mxu1 %v938_v3  ;;  %v1261_v40 = vld [vmem:[%s3826_s1 + $0x10] sm:$0xff]  ;;  %v1202_v3 = vpop.permute.xlu0 %1201 }
 0x36b   :  { %v785_v7 = vmax.f32 %v781_v4, 0.0  ;;  %v937_v4 = vld [vmem:[%s3834_s9 + $0x40] sm:$0xff]  ;;  %v1277_v41 = vld [vmem:[%s3826_s1 + $0x90] sm:$0xff] }
 0x36c   :  { %v794_v14 = vld [vmem:[#allocation5 + $0x1] ss:$2 sm:$0xff]  ;;  %v790_v31 = vld [vmem:[#allocation5] ss:$2 sm:$0xff]  ;;  %2214 = vrot.lane.b32.xlu0 %v2213_v42, %s2302_s25  ;;  %972 = vmatpush.msrb.mxu1 %v937_v4  ;;  %v1276_v42 = vld [vmem:[%s3826_s1 + $0x88] sm:$0xff] }
 0x36d   :  { %789 = vst.msk [vmem:[#allocation5 + $0x11] sm:$0xf] %vm788_vm9, %v785_v7  ;;  %v798_v32 = vld [vmem:[#allocation5 + $0x2] ss:$2 sm:$0xff] }
 0x36e   :  { %v936_v7 = vld [vmem:[%s3834_s9 + $0x38] sm:$0xff] }
 0x36f   :  { %973 = vmatpush.msrb.mxu1 %v936_v7 }
 0x371   :  { %974 = vmatpush.msrb.mxu1 %v935_v8  ;;  %v1071_v8 = vld [vmem:[#allocation2 + $0x20] ss:$2 sm:$0xff] }
 0x373   :  { %975 = vmatpush.msrb.mxu1 %v934_v13 }
 0x374   :  { %v802_v15 = vld [vmem:[#allocation5 + $0x3] ss:$2 sm:$0xff]  ;;  %2219 = vrot.lane.b32.xlu0 %v2218_v45, %s2301_s22  ;;  %v804_v62 = vld [vmem:[#allocation5 + $0x13] ss:$2 sm:$0x3]  ;;  %v2186_v45 = vunpack.i.l.bf16 %v2185_v47 }
 0x375   :  { %v2178_v16 = vpack.i.bf16 %v802_v15, %v794_v14  ;;  %v2203_v14 = vpack.i.bf16 %v1092_v11, %v1091_v10  ;;  %v1273_v15 = vld [vmem:[%s3826_s1 + $0x70] sm:$0xff]  ;;  %976 = vmatpush.msrb.mxu1 %v933_v17 }
 0x376   :  { %1304 = vmatpush.msra.mxu2 %v1273_v15  ;;  %v1229_v59 = vsel %vm80_vm0, %v1069_v50, %v2186_v45 }
 0x377   :  { %2179 = vrot.lane.b32.xlu1 %v2178_v16, %s2304_s14  ;;  %v1272_v16 = vld [vmem:[%s3826_s1 + $0x68] sm:$0xff]  ;;  %977 = vmatpush.msrb.mxu1 %v932_v24 }
 0x378   :  { %1305 = vmatpush.msra.mxu2 %v1272_v16  ;;  %v1072_v16 = vld [vmem:[#allocation2 + $0x30] ss:$2 sm:$0xff]  ;;  %v1073_v24 = vld [vmem:[#allocation2 + $0x40] ss:$2 sm:$0xff] }
 0x37a   :  { %1306 = vmatpush.msra.mxu2 %v1271_v20 }
 0x37c   :  { %1173 = vrot.lane.b32.xlu0 %v1096_v57, %s2302_s25  ;;  %1307 = vmatpush.msra.mxu2 %v1270_v22 }
 0x37e   :  { %1308 = vmatpush.msra.mxu2 %v1269_v23 }
 0x37f   :  { %2189 = vrot.lane.b32.xlu1 %v2188_v26, %s2302_s25  ;;  %v931_v26 = vld [vmem:[%s3834_s9 + $0x10] sm:$0xff] }
 0x380   :  { %1309 = vmatpush.msra.mxu2 %v1268_v25  ;;  %978 = vmatpush.msrb.mxu1 %v931_v26 }
 0x382   :  { %1310 = vmatpush.msra.mxu2 %v1267_v27 }
 0x384   :  { %1175 = vrot.lane.b32.xlu0 %v1097_v1, %s2302_s25 }
 0x387   :  { %2199 = vrot.lane.b32.xlu1 %v2198_v37, %s2301_s22  ;;  %v1263_v37 = vld [vmem:[%s3826_s1 + $0x20] sm:$0xff] }
 0x38c   :  { %1177 = vrot.lane.b32.xlu0 %v1098_v6, %s2302_s25 }
 0x38f   :  { %1205 = vrot.lane.b32.xlu1 %v1102_v39, %s2300_s17  ;;  %v1278_v39 = vld [vmem:[%s3826_s1 + $0x98] sm:$0xff] }
 0x397   :  { %1207 = vrot.lane.b32.xlu1 %v1103_v43, %s2300_s17  ;;  %v1260_v43 = vld [vmem:[%s3826_s1 + $0x8] sm:$0xff] }
 0x39f   :  { %1171 = vrot.lane.b32.xlu1 %v1095_v48, %s2302_s25 }
 0x3a7   :  { %1213 = vrot.lane.b32.xlu1 %v1106_v60, %s2300_s17 }
 0x3af   :  { %1215 = vrot.lane.b32.xlu1 %v1107_v2, %s2300_s17 }
 0x3b7   :  { %1217 = vrot.lane.b32.xlu1 %v1108_v12, %s2300_s17  ;;  %v1204_v12 = vpop.permute.xlu0 %1203 }
 0x3de   :  { %v2215_v22 = vpop.permute.xlu0 %2214 }
 0x3df   :  { %v2216_v25 = vunpack.i.l.bf16 %v2215_v22 }
 0x3e9   :  { %v2180_v28 = vpop.permute.xlu1 %2179 }
 0x3ea   :  { %v2182_v29 = vunpack.i.h.bf16 %v2180_v28  ;;  %v2181_v30 = vunpack.i.l.bf16 %v2180_v28  ;;  %v1266_v28 = vld [vmem:[%s3826_s1 + $0x38] sm:$0xff] }
 0x3eb   :  { %1311 = vmatpush.msra.mxu2 %v1266_v28 }
 0x3ec   :  { %v821_v33 = vsel %vm595_vm6, %v790_v31, %v2181_v30  ;;  %v823_v34 = vsel %vm595_vm6, %v798_v32, %v2182_v29  ;;  %v1104_v29 = vld [vmem:[#allocation2 + $0x53] ss:$2 sm:$0xff]  ;;  %v1105_v31 = vld [vmem:[#allocation2 + $0x63] ss:$2 sm:$0xff] }
 0x3ed   :  { %877 = vmatmul.f32.vlgmr.msrb.gmra.mxu3 %v821_v33  ;;  %900 = vmatmul.f32.vlgmr.msrb.gmra.mxu2 %v823_v34  ;;  %v1265_v30 = vld [vmem:[%s3826_s1 + $0x30] sm:$0xff]  ;;  %v1087_v32 = vld [vmem:[#allocation2 + $0x81] ss:$2 sm:$0xff] }
 0x3ee   :  { %1312 = vmatpush.msra.mxu2 %v1265_v30  ;;  %v1088_v33 = vld [vmem:[#allocation2 + $0x91] ss:$2 sm:$0xff]  ;;  %v930_v34 = vld [vmem:[%s3834_s9 + $0x8] sm:$0xff] }
 0x3ef   :  { %979 = vmatpush.msrb.mxu1 %v930_v34 }
 0x3f0   :  { %1313 = vmatpush.msra.mxu2 %v1264_v35 }
 0x3f1   :  { %980 = vmatpush.msrb.mxu1 %v929_v36  ;;  %v2190_v48 = vpop.permute.xlu1 %2189  ;;  %v2220_v36 = vpop.permute.xlu0 %2219 }
 0x3f2   :  { %1314 = vmatpush.msra.mxu2 %v1263_v37  ;;  %v2192_v1 = vunpack.i.h.bf16 %v2190_v48  ;;  %v2221_v37 = vunpack.i.l.bf16 %v2220_v36 }
 0x3f3   :  { %1362 = vmatpush.msra.mxu1 %v1278_v39 }
 0x3f4   :  { %1315 = vmatpush.msra.mxu2 %v1262_v38  ;;  %v1075_v38 = vld [vmem:[#allocation2 + $0x60] ss:$2 sm:$0xff] }
 0x3f5   :  { %1363 = vmatpush.msra.mxu1 %v1277_v41  ;;  %v1235_v41 = vsel %vm80_vm0, %v1075_v38, %v2221_v37 }
 0x3f6   :  { %1316 = vmatpush.msra.mxu2 %v1261_v40 }
 0x3f7   :  { %1364 = vmatpush.msra.mxu1 %v1276_v42 }
 0x3f8   :  { %1317 = vmatpush.msra.mxu2 %v1260_v43 }
 0x3f9   :  { %1365 = vmatpush.msra.mxu1 %v1275_v46  ;;  %v2200_v4 = vpop.permute.xlu1 %2199  ;;  %v2222_v46 = vunpack.i.h.bf16 %v2220_v36 }
 0x3fa   :  { %1318 = vmatpush.msra.mxu2 %v1259_v44 }
 0x401   :  { %v1206_v19 = vpop.permute.xlu1 %1205 }
 0x409   :  { %v1208_v28 = vpop.permute.xlu1 %1207 }
 0x411   :  { %v1172_v40 = vpop.permute.xlu1 %1171 }
 0x412   :  { %v1245_v43 = vsel %vm310_vm3, %v1235_v41, %v1172_v40 }
 0x470   :  { %v878_v53 = vpop.f32.mrf.mxu3  ;;  %v901_v55 = vpop.f32.mrf.mxu2 }
 0x471   :  { %v879_v54 = vadd.f32 %v2973_v52, %v878_v53 }
 0x473   :  { %v902_v56 = vadd.f32 %v901_v55, %v879_v54  ;;  %v800_v55 = vld [vmem:[#allocation5 + $0x12] ss:$2 sm:$0x3] }
 0x475   :  { %v2984_v61 = vmax.f32 %v902_v56, 0.0  ;;  %v2191_v56 = vunpack.i.l.bf16 %v2190_v48  ;;  %v1076_v48 = vld [vmem:[#allocation2 + $0x70] ss:$2 sm:$0xff] }
 0x476   :  { %v1236_v50 = vsel %vm80_vm0, %v1076_v48, %v2222_v46 }
 0x477   :  { %v910_v51 = vrot.slane %v2984_v61, 1  ;;  %v1239_v60 = vsel %vm310_vm3, %v1229_v59, %v2191_v56 }
 0x479   :  { %v2193_v63 = vpack.i.bf16 %v910_v51, %v804_v62  ;;  %v2187_v62 = vunpack.i.h.bf16 %v2185_v47  ;;  %v1174_v47 = vpop.permute.xlu0 %1173 }
 0x47b   :  { %2194 = vrot.lane.b32.xlu2 %v2193_v63, %s2304_s14  ;;  %v1230_v2 = vsel %vm80_vm0, %v1070_v0, %v2187_v62 }
 0x47c   :  { %v1240_v6 = vsel %vm310_vm3, %v1230_v2, %v2192_v1 }
 0x47d   :  { %v1250_v10 = vsel %vm321_vm4, %v1240_v6, %v1202_v3 }
 0x481   :  { %v1176_v56 = vpop.permute.xlu0 %1175 }
 0x483   :  { %1199 = vrot.lane.b32.xlu2 %v1099_v5, %s2300_s17  ;;  %v2201_v5 = vunpack.i.l.bf16 %v2200_v4 }
 0x485   :  { %v1231_v11 = vsel %vm80_vm0, %v1071_v8, %v2201_v5  ;;  %v3144_v8 = vld [vmem:[%s3827_s2] ss:$0 sm:$0xff] }
 0x489   :  { %v1178_v1 = vpop.permute.xlu0 %1177 }
 0x48b   :  { %2204 = vrot.lane.b32.xlu2 %v2203_v14, %s2302_s25  ;;  %v2202_v14 = vunpack.i.h.bf16 %v2200_v4 }
 0x48d   :  { %v1232_v18 = vsel %vm80_vm0, %v1072_v16, %v2202_v14 }
 0x493   :  { %2209 = vrot.lane.b32.xlu2 %v2208_v21, %s2301_s22 }
 0x49b   :  { %1209 = vrot.lane.b32.xlu2 %v1104_v29, %s2300_s17 }
 0x4a3   :  { %1211 = vrot.lane.b32.xlu2 %v1105_v31, %s2300_s17 }
 0x4ab   :  { %1135 = vrot.lane.b32.xlu2 %v1087_v32, %s2301_s22  ;;  %v1074_v32 = vld [vmem:[#allocation2 + $0x50] ss:$2 sm:$0xff] }
 0x4b3   :  { %1137 = vrot.lane.b32.xlu2 %v1088_v33, %s2301_s22  ;;  %v2217_v33 = vunpack.i.h.bf16 %v2215_v22 }
 0x4d5   :  { %v2195_v49 = vpop.permute.xlu2 %2194 }
 0x4d6   :  { %v2197_v53 = vunpack.i.h.bf16 %v2195_v49  ;;  %v2196_v54 = vunpack.i.l.bf16 %v2195_v49  ;;  %v1214_v49 = vpop.permute.xlu1 %1213 }
 0x4d8   :  { %v824_v57 = vsel %vm595_vm6, %v800_v55, %v2196_v54  ;;  %v927_v58 = vsel %vm595_vm6, %v2984_v61, %v2197_v53  ;;  %v1246_v54 = vsel %vm310_vm3, %v1236_v50, %v1174_v47  ;;  %v1077_v55 = vld [vmem:[#allocation2 + $0x80] ss:$2 sm:$0xff] }
 0x4d9   :  { %903 = vmatmul.f32.gmra.mxu2 %v824_v57  ;;  %981 = vmatmul.f32.vlgmr.msrb.gmra.mxu1 %v927_v58  ;;  %v1256_v57 = vsel %vm321_vm4, %v1246_v54, %v1214_v49  ;;  %v796_v54 = vld [vmem:[#allocation5 + $0x11] ss:$2 sm:$0x3] }
 0x4dd   :  { %v1200_v51 = vpop.permute.xlu2 %1199 }
 0x4de   :  { %v1249_v63 = vsel %vm321_vm4, %v1239_v60, %v1200_v51  ;;  %v1216_v59 = vpop.permute.xlu1 %1215 }
 0x4e1   :  { %1319 = vmatmul.f32.vlgmr.msra.gmra.mxu2 %v1249_v63  ;;  %2118 = vmatmul.msk.f32.vlgmr.msra.gmra.mxu1 %vm356_vm2, %v1200_v51  ;;  %v1078_v51 = vld [vmem:[#allocation2 + $0x90] ss:$2 sm:$0xff] }
 0x4e5   :  { %v2205_v7 = vpop.permute.xlu2 %2204 }
 0x4e6   :  { %v2206_v9 = vunpack.i.l.bf16 %v2205_v7  ;;  %v2207_v17 = vunpack.i.h.bf16 %v2205_v7 }
 0x4e8   :  { %v1241_v13 = vsel %vm310_vm3, %v1231_v11, %v2206_v9  ;;  %v1242_v23 = vsel %vm310_vm3, %v1232_v18, %v2207_v17 }
 0x4e9   :  { %1322 = vmatmul.f32.gmra.mxu2 %v1250_v10  ;;  %2119 = vmatmul.msk.f32.gmra.mxu1 %vm356_vm2, %v1202_v3  ;;  %v1251_v15 = vsel %vm321_vm4, %v1241_v13, %v1204_v12  ;;  %v1252_v26 = vsel %vm321_vm4, %v1242_v23, %v1206_v19  ;;  %v1218_v3 = vpop.permute.xlu1 %1217 }
 0x4ed   :  { %v2210_v20 = vpop.permute.xlu2 %2209 }
 0x4ee   :  { %v2211_v21 = vunpack.i.l.bf16 %v2210_v20  ;;  %v2212_v30 = vunpack.i.h.bf16 %v2210_v20 }
 0x4f0   :  { %v1233_v27 = vsel %vm80_vm0, %v1073_v24, %v2211_v21  ;;  %v1234_v34 = vsel %vm80_vm0, %v1074_v32, %v2212_v30 }
 0x4f1   :  { %1325 = vmatmul.f32.gmra.mxu2 %v1251_v15  ;;  %2120 = vmatmul.msk.f32.gmra.mxu1 %vm356_vm2, %v1204_v12  ;;  %v1243_v29 = vsel %vm310_vm3, %v1233_v27, %v2216_v25  ;;  %v1244_v39 = vsel %vm310_vm3, %v1234_v34, %v2217_v33 }
 0x4f2   :  { %v1253_v31 = vsel %vm321_vm4, %v1243_v29, %v1208_v28 }
 0x4f5   :  { %v1210_v35 = vpop.permute.xlu2 %1209 }
 0x4f6   :  { %v1254_v42 = vsel %vm321_vm4, %v1244_v39, %v1210_v35 }
 0x4f9   :  { %1328 = vmatmul.f32.gmra.mxu2 %v1252_v26  ;;  %2121 = vmatmul.msk.f32.gmra.mxu1 %vm356_vm2, %v1206_v19 }
 0x4fd   :  { %v1212_v44 = vpop.permute.xlu2 %1211 }
 0x4fe   :  { %v1255_v45 = vsel %vm321_vm4, %v1245_v43, %v1212_v44 }
 0x501   :  { %1331 = vmatmul.f32.gmra.mxu2 %v1253_v31  ;;  %2122 = vmatmul.msk.f32.gmra.mxu1 %vm356_vm2, %v1208_v28 }
 0x505   :  { %v1136_v53 = vpop.permute.xlu2 %1135 }
 0x506   :  { %v1237_v58 = vsel %vm80_vm0, %v1077_v55, %v1136_v53 }
 0x507   :  { %v1247_v60 = vsel %vm310_vm3, %v1237_v58, %v1176_v56 }
 0x508   :  { %v1257_v63 = vsel %vm321_vm4, %v1247_v60, %v1216_v59  ;;  %v1527_v60 = vld [vmem:[%s3828_s3 + $0x78] sm:$0xff] }
 0x509   :  { %1334 = vmatmul.f32.gmra.mxu2 %v1254_v42  ;;  %2123 = vmatmul.msk.f32.gmra.mxu1 %vm356_vm2, %v1210_v35 }
 0x50a   :  { %1532 = vmatpush.msrb.mxu0 %v1527_v60 }
 0x50d   :  { %v1138_v62 = vpop.permute.xlu2 %1137 }
 0x50e   :  { %v1238_v0 = vsel %vm80_vm0, %v1078_v51, %v1138_v62  ;;  %v1526_v51 = vld [vmem:[%s3828_s3 + $0x70] sm:$0xff] }
 0x50f   :  { %v1248_v2 = vsel %vm310_vm3, %v1238_v0, %v1178_v1  ;;  %1533 = vmatpush.msrb.mxu0 %v1526_v51  ;;  %v1524_v1 = vld [vmem:[%s3828_s3 + $0x60] sm:$0xff] }
 0x510   :  { %v1258_v4 = vsel %vm321_vm4, %v1248_v2, %v1218_v3 }
 0x511   :  { %1337 = vmatmul.f32.gmra.mxu2 %v1255_v45  ;;  %2124 = vmatmul.msk.f32.gmra.mxu1 %vm356_vm2, %v1212_v44 }
 0x519   :  { %1340 = vmatmul.f32.gmra.mxu2 %v1256_v57  ;;  %2125 = vmatmul.msk.f32.gmra.mxu1 %vm356_vm2, %v1214_v49 }
 0x521   :  { %1343 = vmatmul.f32.gmra.mxu2 %v1257_v63  ;;  %2126 = vmatmul.msk.f32.gmra.mxu1 %vm356_vm2, %v1216_v59  ;;  %v1525_v63 = vld [vmem:[%s3828_s3 + $0x68] sm:$0xff] }
 0x522   :  { %1534 = vmatpush.msrb.mxu0 %v1525_v63 }
 0x524   :  { %1535 = vmatpush.msrb.mxu0 %v1524_v1 }
 0x529   :  { %1346 = vmatmul.f32.gmra.mxu2 %v1258_v4  ;;  %2127 = vmatmul.msk.f32.gmra.mxu1 %vm356_vm2, %v1218_v3  ;;  %v1523_v4 = vld [vmem:[%s3828_s3 + $0x58] sm:$0xff] }
 0x52a   :  { %1536 = vmatpush.msrb.mxu0 %v1523_v4 }
 0x556   :  { %v3137_v5 = vpop.f32.mrf.mxu1 }
 0x55c   :  { %v3139_v6 = vpop.f32.mrf.mxu2 }
 0x55e   :  { %v1367_v7 = vpop.f32.mrf.mxu1 }
 0x564   :  { %v1320_v9 = vpop.f32.mrf.mxu2 }
 0x565   :  { %v1321_v10 = vadd.f32 %v3144_v8, %v1320_v9 }
 0x566   :  { %v1370_v11 = vpop.f32.mrf.mxu1 }
 0x567   :  { %v1368_v12 = vadd.f32 %v1367_v7, %v1321_v10  ;;  %v1522_v10 = vld [vmem:[%s3828_s3 + $0x50] sm:$0xff] }
 0x568   :  { %1537 = vmatpush.msrb.mxu0 %v1522_v10 }
 0x569   :  { %v1397_v13 = vmax.f32 %v1368_v12, 0.0  ;;  %v1521_v12 = vld [vmem:[%s3828_s3 + $0x48] sm:$0xff] }
 0x56a   :  { %1538 = vmatpush.msrb.mxu0 %v1521_v12 }
 0x56b   :  { %1407 = vst.msk [vmem:[#allocation3 + $0x1] sm:$0xff] %vm356_vm2, %v1397_v13 }
 0x56c   :  { %v1323_v14 = vpop.f32.mrf.mxu2 }
 0x56d   :  { %v1324_v15 = vadd.f32 %v3144_v8, %v1323_v14 }
 0x56e   :  { %v1373_v16 = vpop.f32.mrf.mxu1 }
 0x56f   :  { %v1371_v17 = vadd.f32 %v1370_v11, %v1324_v15  ;;  %v1520_v15 = vld [vmem:[%s3828_s3 + $0x40] sm:$0xff] }
 0x570   :  { %1539 = vmatpush.msrb.mxu0 %v1520_v15 }
 0x571   :  { %v1398_v18 = vmax.f32 %v1371_v17, 0.0 }
 0x573   :  { %1408 = vst.msk [vmem:[#allocation3 + $0x9] sm:$0xff] %vm356_vm2, %v1398_v18 }
 0x574   :  { %v1326_v19 = vpop.f32.mrf.mxu2 }
 0x575   :  { %v1327_v20 = vadd.f32 %v3144_v8, %v1326_v19 }
 0x576   :  { %v1376_v21 = vpop.f32.mrf.mxu1 }
 0x577   :  { %v1374_v22 = vadd.f32 %v1373_v16, %v1327_v20 }
 0x579   :  { %v1399_v23 = vmax.f32 %v1374_v22, 0.0 }
 0x57a   :  { %v1427_v34 = vld [vmem:[#allocation3 + $0x2] ss:$2 sm:$0xff]  ;;  %v1422_v36 = vld [vmem:[#allocation3 + $0x1] ss:$2 sm:$0xff] }
 0x57b   :  { %1409 = vst.msk [vmem:[#allocation3 + $0x11] sm:$0xff] %vm356_vm2, %v1399_v23 }
 0x57c   :  { %v1329_v24 = vpop.f32.mrf.mxu2 }
 0x57d   :  { %v1330_v25 = vadd.f32 %v3144_v8, %v1329_v24 }
 0x57e   :  { %v1379_v26 = vpop.f32.mrf.mxu1 }
 0x57f   :  { %v1377_v27 = vadd.f32 %v1376_v21, %v1330_v25 }
 0x581   :  { %v1400_v28 = vmax.f32 %v1377_v27, 0.0  ;;  %v1518_v27 = vld [vmem:[%s3828_s3 + $0x30] sm:$0xff] }
 0x582   :  { %v1432_v46 = vld [vmem:[#allocation3 + $0x3] ss:$2 sm:$0xff] }
 0x583   :  { %1410 = vst.msk [vmem:[#allocation3 + $0x19] sm:$0xff] %vm356_vm2, %v1400_v28  ;;  %v1517_v28 = vld [vmem:[%s3828_s3 + $0x28] sm:$0xff] }
 0x584   :  { %v1332_v29 = vpop.f32.mrf.mxu2 }
 0x585   :  { %v1333_v30 = vadd.f32 %v3144_v8, %v1332_v29  ;;  %v1516_v29 = vld [vmem:[%s3828_s3 + $0x20] sm:$0xff] }
 0x586   :  { %v1382_v31 = vpop.f32.mrf.mxu1 }
 0x587   :  { %v1380_v32 = vadd.f32 %v1379_v26, %v1333_v30  ;;  %v1515_v30 = vld [vmem:[%s3828_s3 + $0x18] sm:$0xff] }
 0x589   :  { %v1401_v33 = vmax.f32 %v1380_v32, 0.0  ;;  %v1513_v32 = vld [vmem:[%s3828_s3 + $0x8] sm:$0xff] }
 0x58a   :  { %v1428_v35 = vld [vmem:[#allocation3 + $0x12] ss:$2 sm:$0xff]  ;;  %v1423_v37 = vld [vmem:[#allocation3 + $0x11] ss:$2 sm:$0xff] }
 0x58b   :  { %1411 = vst.msk [vmem:[#allocation3 + $0x21] sm:$0xff] %vm356_vm2, %v1401_v33  ;;  %v2228_v38 = vpack.i.bf16 %v1428_v35, %v1427_v34  ;;  %v2223_v39 = vpack.i.bf16 %v1423_v37, %v1422_v36  ;;  %v1512_v33 = vld [vmem:[%s3828_s3] sm:$0xff] }
 0x58c   :  { %v1335_v40 = vpop.f32.mrf.mxu2  ;;  %v792_v37 = vld [vmem:[#allocation5 + $0x10] ss:$2 sm:$0x3] }
 0x58d   :  { %v1336_v41 = vadd.f32 %v3144_v8, %v1335_v40  ;;  %2229 = vrot.lane.b32.xlu0 %v2228_v38, %s2304_s14  ;;  %2224 = vrot.lane.b32.xlu2 %v2223_v39, %s2306_s16 }
 0x58e   :  { %v1385_v43 = vpop.f32.mrf.mxu1 }
 0x58f   :  { %v1383_v42 = vadd.f32 %v1382_v31, %v1336_v41  ;;  %v1514_v31 = vld [vmem:[%s3828_s3 + $0x10] sm:$0xff] }
 0x591   :  { %v1402_v44 = vmax.f32 %v1383_v42, 0.0 }
 0x592   :  { %v1433_v47 = vld [vmem:[#allocation3 + $0x13] ss:$2 sm:$0xff] }
 0x593   :  { %1412 = vst.msk [vmem:[#allocation3 + $0x29] sm:$0xff] %vm356_vm2, %v1402_v44  ;;  %v2233_v45 = vpack.i.bf16 %v1433_v47, %v1432_v46 }
 0x594   :  { %v1338_v48 = vpop.f32.mrf.mxu2 }
 0x595   :  { %v1339_v49 = vadd.f32 %v3144_v8, %v1338_v48  ;;  %2234 = vrot.lane.b32.xlu1 %v2233_v45, %s2305_s15 }
 0x596   :  { %v1388_v55 = vpop.f32.mrf.mxu1 }
 0x597   :  { %v1386_v50 = vadd.f32 %v1385_v43, %v1339_v49  ;;  %v1417_v43 = vld [vmem:[#allocation3] ss:$2 sm:$0xff] }
 0x599   :  { %v1403_v53 = vmax.f32 %v1386_v50, 0.0 }
 0x59a   :  { %v1424_v56 = vld [vmem:[#allocation3 + $0x21] ss:$2 sm:$0xff]  ;;  %v1429_v57 = vld [vmem:[#allocation3 + $0x22] ss:$2 sm:$0xff] }
 0x59b   :  { %1413 = vst.msk [vmem:[#allocation3 + $0x31] sm:$0xff] %vm356_vm2, %v1403_v53  ;;  %1446 = vrot.lane.b32.xlu0 %v1424_v56, %s2306_s16  ;;  %v2238_v58 = vpack.i.bf16 %v1429_v57, %v796_v54  ;;  %v1418_v53 = vld [vmem:[#allocation3 + $0x10] ss:$2 sm:$0xff] }
 0x59c   :  { %v1341_v59 = vpop.f32.mrf.mxu2 }
 0x59d   :  { %v1342_v62 = vadd.f32 %v3144_v8, %v1341_v59  ;;  %2239 = vrot.lane.b32.xlu2 %v2238_v58, %s2304_s14  ;;  %v1419_v58 = vld [vmem:[#allocation3 + $0x20] ss:$2 sm:$0xff] }
 0x59e   :  { %v1391_v7 = vpop.f32.mrf.mxu1 }
 0x59f   :  { %v1389_v0 = vadd.f32 %v1388_v55, %v1342_v62 }
 0x5a1   :  { %v1404_v2 = vmax.f32 %v1389_v0, 0.0 }
 0x5a2   :  { %v1434_v3 = vld [vmem:[#allocation3 + $0x23] ss:$2 sm:$0xff] }
 0x5a3   :  { %1414 = vst.msk [vmem:[#allocation3 + $0x39] sm:$0xff] %vm356_vm2, %v1404_v2  ;;  %1486 = vrot.lane.b32.xlu1 %v1434_v3, %s2305_s15 }
 0x5a4   :  { %v1344_v9 = vpop.f32.mrf.mxu2 }
 0x5a5   :  { %v1345_v11 = vadd.f32 %v3144_v8, %v1344_v9 }
 0x5a6   :  { %v1394_v20 = vpop.f32.mrf.mxu1 }
 0x5a7   :  { %v1392_v13 = vadd.f32 %v1391_v7, %v1345_v11 }
 0x5a9   :  { %v1405_v14 = vmax.f32 %v1392_v13, 0.0 }
 0x5aa   :  { %v1430_v16 = vld [vmem:[#allocation3 + $0x32] ss:$2 sm:$0xff]  ;;  %v1425_v17 = vld [vmem:[#allocation3 + $0x31] ss:$2 sm:$0xff] }
 0x5ab   :  { %1415 = vst.msk [vmem:[#allocation3 + $0x41] sm:$0xff] %vm356_vm2, %v1405_v14  ;;  %1468 = vrot.lane.b32.xlu0 %v1430_v16, %s2304_s14  ;;  %1448 = vrot.lane.b32.xlu2 %v1425_v17, %s2306_s16  ;;  %v1420_v2 = vld [vmem:[#allocation3 + $0x30] ss:$2 sm:$0xff] }
 0x5ac   :  { %v1347_v18 = vpop.f32.mrf.mxu2 }
 0x5ad   :  { %v1348_v19 = vadd.f32 %v3144_v8, %v1347_v18  ;;  %v1519_v8 = vld [vmem:[%s3828_s3 + $0x38] sm:$0xff] }
 0x5ae   :  { %1540 = vmatpush.msrb.mxu0 %v1519_v8 }
 0x5af   :  { %v1395_v21 = vadd.f32 %v1394_v20, %v1348_v19 }
 0x5b0   :  { %1541 = vmatpush.msrb.mxu0 %v1518_v27 }
 0x5b1   :  { %v1406_v22 = vmax.f32 %v1395_v21, 0.0 }
 0x5b2   :  { %v1435_v23 = vld [vmem:[#allocation3 + $0x33] ss:$2 sm:$0xff]  ;;  %1542 = vmatpush.msrb.mxu0 %v1517_v28 }
 0x5b3   :  { %1416 = vst.msk [vmem:[#allocation3 + $0x49] sm:$0xff] %vm356_vm2, %v1406_v22  ;;  %1488 = vrot.lane.b32.xlu1 %v1435_v23, %s2305_s15  ;;  %v921_v22 = vrot.slane %v2984_v61, 3  ;;  %v2269_v23 = vld [vmem:[%s3829_s4] ss:$0 sm:$0xff] }
 0x5b4   :  { %1543 = vmatpush.msrb.mxu0 %v1516_v29 }
 0x5b6   :  { %1544 = vmatpush.msrb.mxu0 %v1515_v30 }
 0x5b8   :  { %1545 = vmatpush.msrb.mxu0 %v1514_v31 }
 0x5ba   :  { %v1436_v24 = vld [vmem:[#allocation3 + $0x43] ss:$2 sm:$0xff]  ;;  %v1431_v25 = vld [vmem:[#allocation3 + $0x42] ss:$2 sm:$0xff]  ;;  %1546 = vmatpush.msrb.mxu0 %v1513_v32 }
 0x5bb   :  { %v1426_v26 = vld [vmem:[#allocation3 + $0x41] ss:$2 sm:$0xff]  ;;  %1490 = vrot.lane.b32.xlu1 %v1436_v24, %s2305_s15  ;;  %1470 = vrot.lane.b32.xlu0 %v1431_v25, %s2304_s14  ;;  %v1421_v11 = vld [vmem:[#allocation3 + $0x40] ss:$2 sm:$0xff] }
 0x5bc   :  { %1450 = vrot.lane.b32.xlu2 %v1426_v26, %s2306_s16  ;;  %1547 = vmatpush.msrb.mxu0 %v1512_v33  ;;  %v3263_v33 = vld [vmem:[%s3834_s9 + $0xf8] sm:$0xff] }
 0x5bd   :  { %985 = vmatpush.msra.mxu3 %v3263_v33 }
 0x5e7   :  { %v2225_v34 = vpop.permute.xlu2 %2224 }
 0x5e8   :  { %v2226_v40 = vunpack.i.l.bf16 %v2225_v34  ;;  %v2227_v48 = vunpack.i.h.bf16 %v2225_v34  ;;  %v3268_v34 = vld [vmem:[%s3834_s9 + $0xf0] sm:$0xff] }
 0x5e9   :  { %986 = vmatpush.msra.mxu3 %v3268_v34 }
 0x5ea   :  { %v1497_v46 = vsel %vm356_vm2, %v1417_v43, %v2226_v40  ;;  %v1498_v54 = vsel %vm356_vm2, %v1418_v53, %v2227_v48  ;;  %v3300_v43 = vld [vmem:[%s3834_s9 + $0xc8] sm:$0xff]  ;;  %v3321_v53 = vld [vmem:[%s3834_s9 + $0xb0] sm:$0xff] }
 0x5f7   :  { %v2240_v35 = vpop.permute.xlu2 %2239 }
 0x5f8   :  { %v2241_v36 = vunpack.i.l.bf16 %v2240_v35  ;;  %v2242_v60 = vunpack.i.h.bf16 %v2240_v35 }
 0x5fa   :  { %v822_v38 = vsel %vm595_vm6, %v792_v37, %v2241_v36  ;;  %v3274_v37 = vld [vmem:[%s3834_s9 + $0xe8] sm:$0xff] }
 0x5fb   :  { %880 = vmatmul.f32.gmra.mxu3 %v822_v38 }
 0x5fc   :  { %987 = vmatpush.msra.mxu3 %v3274_v37 }
 0x5ff   :  { %v2230_v39 = vpop.permute.xlu0 %2229 }
 0x600   :  { %v2231_v41 = vunpack.i.l.bf16 %v2230_v39  ;;  %v2232_v49 = vunpack.i.h.bf16 %v2230_v39  ;;  %v3281_v39 = vld [vmem:[%s3834_s9 + $0xe0] sm:$0xff] }
 0x601   :  { %988 = vmatpush.msra.mxu3 %v3281_v39 }
 0x602   :  { %v1502_v47 = vsel %vm595_vm6, %v1497_v46, %v2231_v41  ;;  %v1503_v55 = vsel %vm595_vm6, %v1498_v54, %v2232_v49  ;;  %v3287_v41 = vld [vmem:[%s3834_s9 + $0xd8] sm:$0xff]  ;;  %v3327_v54 = vld [vmem:[%s3834_s9 + $0xa8] sm:$0xff] }
 0x603   :  { %989 = vmatpush.msra.mxu3 %v3287_v41 }
 0x605   :  { %v1449_v0 = vpop.permute.xlu2 %1448 }
 0x606   :  { %v1500_v3 = vsel %vm356_vm2, %v1420_v2, %v1449_v0  ;;  %v1646_v0 = vld [vmem:[%s3830_s5 + $0x78] sm:$0xff]  ;;  %v1644_v2 = vld [vmem:[%s3830_s5 + $0x68] sm:$0xff] }
 0x607   :  { %v2235_v42 = vpop.permute.xlu1 %2234 }
 0x608   :  { %v2236_v44 = vunpack.i.l.bf16 %v2235_v42  ;;  %v2237_v50 = vunpack.i.h.bf16 %v2235_v42  ;;  %v3294_v42 = vld [vmem:[%s3834_s9 + $0xd0] sm:$0xff] }
 0x609   :  { %990 = vmatpush.msra.mxu3 %v3294_v42 }
 0x60a   :  { %v1507_v45 = vsel %vm601_vm7, %v1502_v47, %v2236_v44  ;;  %v1508_v56 = vsel %vm601_vm7, %v1503_v55, %v2237_v50  ;;  %v3307_v47 = vld [vmem:[%s3834_s9 + $0xc0] sm:$0xff]  ;;  %v3314_v50 = vld [vmem:[%s3834_s9 + $0xb8] sm:$0xff] }
 0x60b   :  { %1548 = vmatmul.f32.vlgmr.msrb.gmra.mxu0 %v1507_v45  ;;  %991 = vmatpush.msra.mxu3 %v3300_v43  ;;  %v3334_v55 = vld [vmem:[%s3834_s9 + $0xa0] sm:$0xff] }
 0x60d   :  { %v1447_v57 = vpop.permute.xlu0 %1446  ;;  %992 = vmatpush.msra.mxu3 %v3307_v47 }
 0x60e   :  { %v1499_v59 = vsel %vm356_vm2, %v1419_v58, %v1447_v57 }
 0x60f   :  { %v1504_v62 = vsel %vm595_vm6, %v1499_v59, %v2242_v60  ;;  %993 = vmatpush.msra.mxu3 %v3314_v50  ;;  %v3341_v59 = vld [vmem:[%s3834_s9 + $0x98] sm:$0xff]  ;;  %v3348_v60 = vld [vmem:[%s3834_s9 + $0x90] sm:$0xff] }
 0x611   :  { %994 = vmatpush.msra.mxu3 %v3321_v53 }
 0x613   :  { %1551 = vmatmul.f32.gmra.mxu0 %v1508_v56  ;;  %995 = vmatpush.msra.mxu3 %v3327_v54 }
 0x615   :  { %v1487_v51 = vpop.permute.xlu1 %1486  ;;  %996 = vmatpush.msra.mxu3 %v3334_v55 }
 0x616   :  { %v1509_v63 = vsel %vm601_vm7, %v1504_v62, %v1487_v51  ;;  %v1451_v10 = vpop.permute.xlu2 %1450  ;;  %v3354_v51 = vld [vmem:[%s3834_s9 + $0x88] sm:$0xff] }
 0x617   :  { %v1501_v12 = vsel %vm356_vm2, %v1421_v11, %v1451_v10  ;;  %997 = vmatpush.msra.mxu3 %v3341_v59  ;;  %v1640_v10 = vld [vmem:[%s3830_s5 + $0x48] sm:$0xff]  ;;  %v1639_v11 = vld [vmem:[%s3830_s5 + $0x40] sm:$0xff] }
 0x619   :  { %998 = vmatpush.msra.mxu3 %v3348_v60 }
 0x61b   :  { %1554 = vmatmul.f32.gmra.mxu0 %v1509_v63  ;;  %999 = vmatpush.msra.mxu3 %v3354_v51  ;;  %v3362_v63 = vld [vmem:[%s3834_s9 + $0x80] sm:$0xff] }
 0x61d   :  { %v1469_v1 = vpop.permute.xlu0 %1468  ;;  %1000 = vmatpush.msra.mxu3 %v3362_v63 }
 0x61e   :  { %v1505_v4 = vsel %vm595_vm6, %v1500_v3, %v1469_v1  ;;  %v1645_v1 = vld [vmem:[%s3830_s5 + $0x70] sm:$0xff]  ;;  %v1643_v3 = vld [vmem:[%s3830_s5 + $0x60] sm:$0xff] }
 0x61f   :  { %1651 = vmatpush.msrb.mxu3 %v1646_v0 }
 0x621   :  { %1652 = vmatpush.msrb.mxu3 %v1645_v1 }
 0x623   :  { %1653 = vmatpush.msrb.mxu3 %v1644_v2 }
 0x625   :  { %v1489_v7 = vpop.permute.xlu1 %1488  ;;  %1654 = vmatpush.msrb.mxu3 %v1643_v3  ;;  %v1726_v3 = vld [vmem:[%s3832_s7 + $0x78] sm:$0xff] }
 0x626   :  { %v1510_v9 = vsel %vm601_vm7, %v1505_v4, %v1489_v7  ;;  %v1642_v4 = vld [vmem:[%s3830_s5 + $0x58] sm:$0xff]  ;;  %v1641_v7 = vld [vmem:[%s3830_s5 + $0x50] sm:$0xff]  ;;  %1747 = vmatpush.msra.mxu0 %v1726_v3  ;;  %v2271_v3 = vld [vmem:[%s3833_s8] ss:$0 sm:$0xff] }
 0x627   :  { %1557 = vmatmul.f32.gmra.mxu0 %v1510_v9  ;;  %1655 = vmatpush.msrb.mxu3 %v1642_v4 }
 0x629   :  { %1656 = vmatpush.msrb.mxu3 %v1641_v7  ;;  %v1742_v7 = vld [vmem:[%s3832_s7 + $0xf8] sm:$0xff] }
 0x62b   :  { %1657 = vmatpush.msrb.mxu3 %v1640_v10  ;;  %v1724_v10 = vld [vmem:[%s3832_s7 + $0x68] sm:$0xff] }
 0x62d   :  { %v1491_v13 = vpop.permute.xlu1 %1490  ;;  %v1471_v14 = vpop.permute.xlu0 %1470  ;;  %1658 = vmatpush.msrb.mxu3 %v1639_v11  ;;  %v1741_v11 = vld [vmem:[%s3832_s7 + $0xf0] sm:$0xff] }
 0x62e   :  { %v1506_v15 = vsel %vm595_vm6, %v1501_v12, %v1471_v14  ;;  %v916_v12 = vrot.slane %v2984_v61, 2  ;;  %v1636_v61 = vld [vmem:[%s3830_s5 + $0x28] sm:$0xff] }
 0x62f   :  { %v1511_v16 = vsel %vm601_vm7, %v1506_v15, %v1491_v13  ;;  %v1638_v15 = vld [vmem:[%s3830_s5 + $0x38] sm:$0xff] }
 0x630   :  { %1560 = vmatmul.f32.gmra.mxu0 %v1511_v16  ;;  %1659 = vmatpush.msrb.mxu3 %v1638_v15  ;;  %v1722_v15 = vld [vmem:[%s3832_s7 + $0x58] sm:$0xff] }
 0x67e   :  { %v881_v17 = vpop.f32.mrf.mxu3 }
 0x67f   :  { %v882_v18 = vadd.f32 %v2973_v52, %v881_v17  ;;  %v1637_v17 = vld [vmem:[%s3830_s5 + $0x30] sm:$0xff] }
 0x680   :  { %1660 = vmatpush.msrb.mxu3 %v1637_v17  ;;  %v1720_v17 = vld [vmem:[%s3832_s7 + $0x48] sm:$0xff] }
 0x681   :  { %v3244_v19 = vadd.f32 %v3139_v6, %v882_v18  ;;  %v1635_v18 = vld [vmem:[%s3830_s5 + $0x20] sm:$0xff] }
 0x682   :  { %1661 = vmatpush.msrb.mxu3 %v1636_v61 }
 0x683   :  { %v908_v20 = vmax.f32 %v3244_v19, 0.0  ;;  %v1634_v19 = vld [vmem:[%s3830_s5 + $0x18] sm:$0xff] }
 0x684   :  { %1662 = vmatpush.msrb.mxu3 %v1635_v18 }
 0x685   :  { %v922_v21 = vrot.slane %v908_v20, 3  ;;  %v917_v9 = vrot.slane %v908_v20, 2  ;;  %v1633_v20 = vld [vmem:[%s3830_s5 + $0x10] sm:$0xff] }
 0x686   :  { %1663 = vmatpush.msrb.mxu3 %v1634_v19  ;;  %v1719_v19 = vld [vmem:[%s3832_s7 + $0x40] sm:$0xff] }
 0x687   :  { %v923_v24 = vsel %vm920_vm10, %v921_v22, %v922_v21  ;;  %v918_v14 = vsel %vm915_vm11, %v916_v12, %v917_v9  ;;  %v1632_v21 = vld [vmem:[%s3830_s5 + $0x8] sm:$0xff]  ;;  %v1631_v22 = vld [vmem:[%s3830_s5] sm:$0xff] }
 0x688   :  { %924 = vrot.lane.b32.xlu2 %v923_v24, %s2304_s14  ;;  %v1549_v52 = vpop.f32.mrf.mxu0  ;;  %1664 = vmatpush.msrb.mxu3 %v1633_v20  ;;  %v1740_v12 = vld [vmem:[%s3832_s7 + $0xe8] sm:$0xff] }
 0x689   :  { %v1550_v25 = vadd.f32 %v2269_v23, %v1549_v52 }
 0x68a   :  { %1665 = vmatpush.msrb.mxu3 %v1632_v21 }
 0x68b   :  { %v1564_v6 = vmax.f32 %v1550_v25, 0.0 }
 0x68c   :  { %1666 = vmatpush.msrb.mxu3 %v1631_v22 }
 0x68d   :  { %1569 = vst.msk [vmem:[#allocation4 + $0x1] sm:$0xff] %vm356_vm2, %v1564_v6 }
 0x690   :  { %v1552_v26 = vpop.f32.mrf.mxu0 }
 0x691   :  { %v1553_v8 = vadd.f32 %v2269_v23, %v1552_v26 }
 0x693   :  { %v1565_v27 = vmax.f32 %v1553_v8, 0.0 }
 0x695   :  { %1570 = vst.msk [vmem:[#allocation4 + $0x9] sm:$0xff] %vm356_vm2, %v1565_v27 }
 0x698   :  { %v1555_v28 = vpop.f32.mrf.mxu0 }
 0x699   :  { %v1556_v29 = vadd.f32 %v2269_v23, %v1555_v28 }
 0x69b   :  { %v1566_v30 = vmax.f32 %v1556_v29, 0.0 }
 0x69c   :  { %v1580_v31 = vld [vmem:[#allocation4 + $0x2] ss:$2 sm:$0xff]  ;;  %v1577_v32 = vld [vmem:[#allocation4 + $0x1] ss:$2 sm:$0xff] }
 0x69d   :  { %1571 = vst.msk [vmem:[#allocation4 + $0x11] sm:$0xff] %vm356_vm2, %v1566_v30  ;;  %1601 = vrot.lane.b32.xlu1 %v1580_v31, %s2304_s14  ;;  %1589 = vrot.lane.b32.xlu0 %v1577_v32, %s2306_s16  ;;  %v1574_v52 = vld [vmem:[#allocation4] ss:$2 sm:$0xff] }
 0x6a4   :  { %v1558_v35 = vpop.f32.mrf.mxu0  ;;  %v1583_v36 = vld [vmem:[#allocation4 + $0x3] ss:$2 sm:$0xff] }
 0x6a5   :  { %v1559_v38 = vadd.f32 %v2269_v23, %v1558_v35  ;;  %1613 = vrot.lane.b32.xlu2 %v1583_v36, %s2305_s15 }
 0x6a7   :  { %v1567_v40 = vmax.f32 %v1559_v38, 0.0 }
 0x6a9   :  { %1572 = vst.msk [vmem:[#allocation4 + $0x19] sm:$0xff] %vm356_vm2, %v1567_v40 }
 0x6ad   :  { %v1561_v44 = vpop.f32.mrf.mxu0 }
 0x6ae   :  { %v1562_v46 = vadd.f32 %v2269_v23, %v1561_v44 }
 0x6b0   :  { %v1568_v45 = vmax.f32 %v1562_v46, 0.0  ;;  %v1581_v48 = vld [vmem:[#allocation4 + $0x12] ss:$2 sm:$0xff]  ;;  %v1578_v49 = vld [vmem:[#allocation4 + $0x11] ss:$2 sm:$0xff] }
 0x6b1   :  { %1603 = vrot.lane.b32.xlu1 %v1581_v48, %s2304_s14  ;;  %1591 = vrot.lane.b32.xlu0 %v1578_v49, %s2306_s16  ;;  %v1575_v28 = vld [vmem:[#allocation4 + $0x10] ss:$2 sm:$0xff]  ;;  %v2267_v49 = vld [vmem:[%s3835_s10] ss:$0 sm:$0xff] }
 0x6b2   :  { %1573 = vst.msk [vmem:[#allocation4 + $0x21] sm:$0xff] %vm356_vm2, %v1568_v45 }
 0x6b9   :  { %v1584_v56 = vld [vmem:[#allocation4 + $0x13] ss:$2 sm:$0xff]  ;;  %v1582_v57 = vld [vmem:[#allocation4 + $0x22] ss:$2 sm:$0xf] }
 0x6ba   :  { %1615 = vrot.lane.b32.xlu2 %v1584_v56, %s2305_s15  ;;  %1605 = vrot.lane.b32.xlu1 %v1582_v57, %s2304_s14  ;;  %v1579_v58 = vld [vmem:[#allocation4 + $0x21] ss:$2 sm:$0xf]  ;;  %v1576_v38 = vld [vmem:[#allocation4 + $0x20] ss:$2 sm:$0xf]  ;;  %v983_v56 = vadd.f32 %v2267_v49, %v3137_v5 }
 0x6bb   :  { %1593 = vrot.lane.b32.xlu0 %v1579_v58, %s2306_s16  ;;  %v1585_v62 = vld [vmem:[#allocation4 + $0x23] ss:$2 sm:$0xf]  ;;  %v1725_v5 = vld [vmem:[%s3832_s7 + $0x70] sm:$0xff] }
 0x6bc   :  { %1748 = vmatpush.msra.mxu0 %v1725_v5  ;;  %v1728_v49 = vld [vmem:[%s3832_s7 + $0x88] sm:$0xff] }
 0x6be   :  { %1749 = vmatpush.msra.mxu0 %v1724_v10 }
 0x6c2   :  { %1617 = vrot.lane.b32.xlu2 %v1585_v62, %s2305_s15  ;;  %v2270_v62 = vld [vmem:[%s3831_s6] ss:$0 sm:$0xff] }
 0x6e2   :  { %v925_v13 = vpop.permute.xlu2 %924 }
 0x6e3   :  { %v928_v16 = vsel %vm595_vm6, %v918_v14, %v925_v13  ;;  %v1723_v14 = vld [vmem:[%s3832_s7 + $0x60] sm:$0xff] }
 0x6e4   :  { %1001 = vmatmul.f32.vlgmr.msra.gmra.mxu3 %v928_v16  ;;  %1750 = vmatpush.msra.mxu0 %v1723_v14  ;;  %v1721_v16 = vld [vmem:[%s3832_s7 + $0x50] sm:$0xff] }
 0x6e5   :  { %1770 = vmatpush.msra.mxu3 %v1742_v7  ;;  %v1819_v7 = vld [vmem:[%s3834_s9 + $0x30] sm:$0xff] }
 0x6e6   :  { %1751 = vmatpush.msra.mxu0 %v1722_v15 }
 0x6e7   :  { %1771 = vmatpush.msra.mxu3 %v1741_v11  ;;  %v1818_v11 = vld [vmem:[%s3834_s9 + $0x28] sm:$0xff] }
 0x6e8   :  { %1752 = vmatpush.msra.mxu0 %v1721_v16  ;;  %v1816_v16 = vld [vmem:[%s3834_s9 + $0x18] sm:$0xff] }
 0x6e9   :  { %1772 = vmatpush.msra.mxu3 %v1740_v12 }
 0x6ea   :  { %1753 = vmatpush.msra.mxu0 %v1720_v17 }
 0x6ec   :  { %1754 = vmatpush.msra.mxu0 %v1719_v19 }
 0x6ff   :  { %v1614_v6 = vpop.permute.xlu2 %1613 }
 0x70f   :  { %v1602_v23 = vpop.permute.xlu1 %1601  ;;  %v1590_v24 = vpop.permute.xlu0 %1589 }
 0x710   :  { %v1622_v25 = vsel %vm356_vm2, %v1574_v52, %v1590_v24  ;;  %v1739_v52 = vld [vmem:[%s3832_s7 + $0xe0] sm:$0xff] }
 0x711   :  { %v1625_v26 = vsel %vm595_vm6, %v1622_v25, %v1602_v23  ;;  %v1718_v25 = vld [vmem:[%s3832_s7 + $0x38] sm:$0xff]  ;;  %1773 = vmatpush.msra.mxu3 %v1739_v52 }
 0x712   :  { %v1628_v8 = vsel %vm601_vm7, %v1625_v26, %v1614_v6  ;;  %v1738_v6 = vld [vmem:[%s3832_s7 + $0xd8] sm:$0xff]  ;;  %1755 = vmatpush.msra.mxu0 %v1718_v25  ;;  %v1717_v26 = vld [vmem:[%s3832_s7 + $0x30] sm:$0xff] }
 0x713   :  { %1667 = vmatmul.f32.vlgmr.msrb.gmra.mxu3 %v1628_v8  ;;  %v1737_v8 = vld [vmem:[%s3832_s7 + $0xd0] sm:$0xff] }
 0x714   :  { %v1616_v31 = vpop.permute.xlu2 %1615  ;;  %1774 = vmatpush.msra.mxu3 %v1738_v6  ;;  %1756 = vmatpush.msra.mxu0 %v1717_v26  ;;  %v1982_v6 = vld [vmem:[%s3836_s11 + $0x1b8] sm:$0xff]  ;;  %v1981_v26 = vld [vmem:[%s3836_s11 + $0x1b0] sm:$0xff] }
 0x716   :  { %1775 = vmatpush.msra.mxu3 %v1737_v8  ;;  %v1980_v8 = vld [vmem:[%s3836_s11 + $0x1a8] sm:$0xff] }
 0x71c   :  { %v1618_v46 = vpop.permute.xlu2 %1617 }
 0x723   :  { %v1604_v27 = vpop.permute.xlu1 %1603  ;;  %v1592_v29 = vpop.permute.xlu0 %1591 }
 0x724   :  { %v1623_v30 = vsel %vm356_vm2, %v1575_v28, %v1592_v29  ;;  %v1736_v28 = vld [vmem:[%s3832_s7 + $0xc8] sm:$0xff]  ;;  %v1715_v29 = vld [vmem:[%s3832_s7 + $0x20] sm:$0xff] }
 0x725   :  { %v1626_v32 = vsel %vm595_vm6, %v1623_v30, %v1604_v27  ;;  %v1716_v27 = vld [vmem:[%s3832_s7 + $0x28] sm:$0xff]  ;;  %v1735_v30 = vld [vmem:[%s3832_s7 + $0xc0] sm:$0xff]  ;;  %1776 = vmatpush.msra.mxu3 %v1736_v28 }
 0x726   :  { %v1629_v35 = vsel %vm601_vm7, %v1626_v32, %v1616_v31  ;;  %1757 = vmatpush.msra.mxu0 %v1716_v27  ;;  %v1714_v31 = vld [vmem:[%s3832_s7 + $0x18] sm:$0xff] }
 0x727   :  { %1670 = vmatmul.f32.gmra.mxu3 %v1629_v35  ;;  %v1734_v32 = vld [vmem:[%s3832_s7 + $0xb8] sm:$0xff]  ;;  %v1713_v35 = vld [vmem:[%s3832_s7 + $0x10] sm:$0xff] }
 0x728   :  { %1758 = vmatpush.msra.mxu0 %v1715_v29  ;;  %1777 = vmatpush.msra.mxu3 %v1735_v30 }
 0x72a   :  { %1759 = vmatpush.msra.mxu0 %v1714_v31  ;;  %1778 = vmatpush.msra.mxu3 %v1734_v32 }
 0x72c   :  { %v1606_v36 = vpop.permute.xlu1 %1605  ;;  %1760 = vmatpush.msra.mxu0 %v1713_v35 }
 0x72d   :  { %v1594_v40 = vpop.permute.xlu0 %1593 }
 0x72e   :  { %v1624_v44 = vsel %vm356_vm2, %v1576_v38, %v1594_v40  ;;  %v1712_v38 = vld [vmem:[%s3832_s7 + $0x8] sm:$0xff] }
 0x72f   :  { %v1627_v45 = vsel %vm595_vm6, %v1624_v44, %v1606_v36  ;;  %v1733_v36 = vld [vmem:[%s3832_s7 + $0xb0] sm:$0xff]  ;;  %v1732_v40 = vld [vmem:[%s3832_s7 + $0xa8] sm:$0xff]  ;;  %1761 = vmatpush.msra.mxu0 %v1712_v38  ;;  %v1711_v44 = vld [vmem:[%s3832_s7] sm:$0xff] }
 0x730   :  { %v1630_v48 = vsel %vm601_vm7, %v1627_v45, %v1618_v46  ;;  %1779 = vmatpush.msra.mxu3 %v1733_v36  ;;  %v1731_v46 = vld [vmem:[%s3832_s7 + $0xa0] sm:$0xff]  ;;  %v1730_v45 = vld [vmem:[%s3832_s7 + $0x98] sm:$0xff] }
 0x731   :  { %1673 = vmatmul.f32.gmra.mxu3 %v1630_v48  ;;  %1762 = vmatpush.msra.mxu0 %v1711_v44  ;;  %v1729_v48 = vld [vmem:[%s3832_s7 + $0x90] sm:$0xff]  ;;  %v1979_v38 = vld [vmem:[%s3836_s11 + $0x1a0] sm:$0xff] }
 0x732   :  { %1780 = vmatpush.msra.mxu3 %v1732_v40  ;;  %v1978_v40 = vld [vmem:[%s3836_s11 + $0x198] sm:$0xff]  ;;  %v1977_v44 = vld [vmem:[%s3836_s11 + $0x190] sm:$0xff] }
 0x733   :  { %1869 = vmatpush.msrb.mxu0 %v3263_v33  ;;  %v1727_v33 = vld [vmem:[%s3832_s7 + $0x80] sm:$0xff] }
 0x734   :  { %1781 = vmatpush.msra.mxu3 %v1731_v46  ;;  %v1976_v46 = vld [vmem:[%s3836_s11 + $0x188] sm:$0xff] }
 0x735   :  { %1870 = vmatpush.msrb.mxu0 %v3268_v34 }
 0x736   :  { %1782 = vmatpush.msra.mxu3 %v1730_v45  ;;  %v1975_v45 = vld [vmem:[%s3836_s11 + $0x180] sm:$0xff] }
 0x737   :  { %1871 = vmatpush.msrb.mxu0 %v3274_v37 }
 0x738   :  { %1783 = vmatpush.msra.mxu3 %v1729_v48  ;;  %v1942_v48 = vld [vmem:[%s3836_s11 + $0x78] sm:$0xff] }
 0x739   :  { %1872 = vmatpush.msrb.mxu0 %v3281_v39  ;;  %1990 = vmatpush.msrb.mxu2 %v1942_v48  ;;  %v1960_v48 = vld [vmem:[%s3836_s11 + $0x108] sm:$0xff] }
 0x73a   :  { %1784 = vmatpush.msra.mxu3 %v1728_v49  ;;  %v1941_v49 = vld [vmem:[%s3836_s11 + $0x70] sm:$0xff] }
 0x73b   :  { %1873 = vmatpush.msrb.mxu0 %v3287_v41  ;;  %1991 = vmatpush.msrb.mxu2 %v1941_v49  ;;  %v1943_v49 = vld [vmem:[%s3836_s11 + $0x80] sm:$0xff] }
 0x73c   :  { %1785 = vmatpush.msra.mxu3 %v1727_v33  ;;  %v1940_v33 = vld [vmem:[%s3836_s11 + $0x68] sm:$0xff] }
 0x73d   :  { %1874 = vmatpush.msrb.mxu0 %v3294_v42  ;;  %1992 = vmatpush.msrb.mxu2 %v1940_v33  ;;  %v1959_v33 = vld [vmem:[%s3836_s11 + $0x100] sm:$0xff] }
 0x73f   :  { %1875 = vmatpush.msrb.mxu0 %v3300_v43 }
 0x741   :  { %1876 = vmatpush.msrb.mxu0 %v3307_v47 }
 0x743   :  { %1877 = vmatpush.msrb.mxu0 %v3314_v50 }
 0x745   :  { %1878 = vmatpush.msrb.mxu0 %v3321_v53 }
 0x747   :  { %1879 = vmatpush.msrb.mxu0 %v3327_v54 }
 0x749   :  { %1880 = vmatpush.msrb.mxu0 %v3334_v55 }
 0x74b   :  { %1881 = vmatpush.msrb.mxu0 %v3341_v59 }
 0x74d   :  { %1882 = vmatpush.msrb.mxu0 %v3348_v60  ;;  %v1828_v60 = vld [vmem:[%s3834_s9 + $0x78] sm:$0xff] }
 0x74e   :  { %1849 = vmatpush.msrb.mxu1 %v1828_v60  ;;  %v1931_v60 = vld [vmem:[%s3836_s11 + $0x20] sm:$0xff] }
 0x74f   :  { %1883 = vmatpush.msrb.mxu0 %v3354_v51  ;;  %v1827_v51 = vld [vmem:[%s3834_s9 + $0x70] sm:$0xff] }
 0x750   :  { %1850 = vmatpush.msrb.mxu1 %v1827_v51 }
 0x751   :  { %1884 = vmatpush.msrb.mxu0 %v3362_v63  ;;  %v1826_v63 = vld [vmem:[%s3834_s9 + $0x68] sm:$0xff] }
 0x752   :  { %1851 = vmatpush.msrb.mxu1 %v1826_v63 }
 0x767   :  { %v1002_v57 = vpop.f32.mrf.mxu3 }
 0x768   :  { %v3431_v58 = vadd.f32 %v1002_v57, %v983_v56  ;;  %v1825_v56 = vld [vmem:[%s3834_s9 + $0x60] sm:$0xff]  ;;  %v1824_v57 = vld [vmem:[%s3834_s9 + $0x58] sm:$0xff] }
 0x769   :  { %1852 = vmatpush.msrb.mxu1 %v1825_v56 }
 0x76a   :  { %v3685_v51 = vmax.f32 %v3431_v58, 0.0 }
 0x76b   :  { %1853 = vmatpush.msrb.mxu1 %v1824_v57  ;;  %v1930_v57 = vld [vmem:[%s3836_s11 + $0x18] sm:$0xff] }
 0x76c   :  { %v1013_v58 = vrot.slane %v3685_v51, 3 }
 0x796   :  { %v1668_v0 = vpop.f32.mrf.mxu3 }
 0x797   :  { %v1669_v1 = vadd.f32 %v2270_v62, %v1668_v0 }
 0x799   :  { %v1677_v2 = vmax.f32 %v1669_v1, 0.0  ;;  %v1822_v1 = vld [vmem:[%s3834_s9 + $0x48] sm:$0xff] }
 0x79b   :  { %1680 = vst.msk [vmem:[#allocation5 + $0x1] sm:$0xff] %vm595_vm6, %v1677_v2  ;;  %v1821_v2 = vld [vmem:[%s3834_s9 + $0x40] sm:$0xff] }
 0x7aa   :  { %v1671_v4 = vpop.f32.mrf.mxu3 }
 0x7ab   :  { %v1672_v9 = vadd.f32 %v2270_v62, %v1671_v4  ;;  %v1820_v4 = vld [vmem:[%s3834_s9 + $0x38] sm:$0xff] }
 0x7ad   :  { %v1678_v13 = vmax.f32 %v1672_v9, 0.0 }
 0x7af   :  { %1681 = vst.msk [vmem:[#allocation5 + $0x9] sm:$0xff] %vm595_vm6, %v1678_v13  ;;  %v1817_v13 = vld [vmem:[%s3834_s9 + $0x20] sm:$0xff] }
 0x7b4   :  { %v1674_v61 = vpop.f32.mrf.mxu3 }
 0x7b5   :  { %v1675_v18 = vadd.f32 %v2270_v62, %v1674_v61  ;;  %v1823_v62 = vld [vmem:[%s3834_s9 + $0x50] sm:$0xff] }
 0x7b6   :  { %v1685_v20 = vld [vmem:[#allocation5 + $0x1] ss:$2 sm:$0xff]  ;;  %v1683_v37 = vld [vmem:[#allocation5] ss:$2 sm:$0xff]  ;;  %1854 = vmatpush.msrb.mxu1 %v1823_v62 }
 0x7b7   :  { %v1679_v21 = vmax.f32 %v1675_v18, 0.0  ;;  %1693 = vrot.lane.b32.xlu1 %v1685_v20, %s2304_s14  ;;  %v1687_v42 = vld [vmem:[#allocation5 + $0x2] ss:$2 sm:$0xff]  ;;  %v1814_v20 = vld [vmem:[%s3834_s9 + $0x8] sm:$0xff] }
 0x7b8   :  { %1855 = vmatpush.msrb.mxu1 %v1822_v1  ;;  %v1815_v18 = vld [vmem:[%s3834_s9 + $0x10] sm:$0xff]  ;;  %v1023_v1 = vrot.slane %v3685_v51, 6 }
 0x7b9   :  { %1682 = vst.msk [vmem:[#allocation5 + $0x11] sm:$0xf] %vm788_vm9, %v1679_v21 }
 0x7ba   :  { %1856 = vmatpush.msrb.mxu1 %v1821_v2  ;;  %v1019_v2 = vrot.slane %v3685_v51, 5 }
 0x7bc   :  { %1857 = vmatpush.msrb.mxu1 %v1820_v4 }
 0x7be   :  { %1858 = vmatpush.msrb.mxu1 %v1819_v7 }
 0x7c0   :  { %v1690_v22 = vld [vmem:[#allocation5 + $0x13] ss:$2 sm:$0x3]  ;;  %v1689_v23 = vld [vmem:[#allocation5 + $0x3] ss:$2 sm:$0xff]  ;;  %1859 = vmatpush.msrb.mxu1 %v1818_v11 }
 0x7c1   :  { %1703 = vrot.lane.b32.xlu2 %v1690_v22, %s2304_s14  ;;  %1701 = vrot.lane.b32.xlu0 %v1689_v23, %s2304_s14  ;;  %v1686_v24 = vld [vmem:[#allocation5 + $0x11] ss:$2 sm:$0x3]  ;;  %v1684_v53 = vld [vmem:[#allocation5 + $0x10] ss:$2 sm:$0x3] }
 0x7c2   :  { %v1688_v54 = vld [vmem:[#allocation5 + $0x12] ss:$2 sm:$0x3]  ;;  %1860 = vmatpush.msrb.mxu1 %v1817_v13 }
 0x7c4   :  { %1861 = vmatpush.msrb.mxu1 %v1816_v16  ;;  %v1973_v16 = vld [vmem:[%s3836_s11 + $0x170] sm:$0xff] }
 0x7c6   :  { %1862 = vmatpush.msrb.mxu1 %v1815_v18  ;;  %v1972_v18 = vld [vmem:[%s3836_s11 + $0x168] sm:$0xff] }
 0x7c8   :  { %1863 = vmatpush.msrb.mxu1 %v1814_v20  ;;  %v1955_v20 = vld [vmem:[%s3836_s11 + $0xe0] sm:$0xff] }
 0x7c9   :  { %1695 = vrot.lane.b32.xlu0 %v1686_v24, %s2304_s14  ;;  %v1813_v24 = vld [vmem:[%s3834_s9] sm:$0xff]  ;;  %s2077_s9 = sshll.u32 %s2307_s23, 4  ;;  %s2078_s9 = int_to_ptr.vmem [resolvable:$true] %s2077_s9 }
 0x7ca   :  { %1864 = vmatpush.msrb.mxu1 %v1813_v24  ;;  %v1953_v24 = vld [vmem:[%s3836_s11 + $0xd0] sm:$0xff] }
 0x81b   :  { %v1704_v47 = vpop.permute.xlu2 %1703 }
 0x81c   :  { %v1710_v59 = vsel %vm595_vm6, %v1688_v54, %v1704_v47  ;;  %v1935_v47 = vld [vmem:[%s3836_s11 + $0x40] sm:$0xff] }
 0x81d   :  { %v2272_v54 = vld [vmem:[%s3835_s10] ss:$0 sm:$0xff] }
 0x829   :  { %v1694_v34 = vpop.permute.xlu1 %1693 }
 0x82a   :  { %v1707_v39 = vsel %vm595_vm6, %v1683_v37, %v1694_v34  ;;  %v1939_v34 = vld [vmem:[%s3836_s11 + $0x60] sm:$0xff]  ;;  %v1958_v37 = vld [vmem:[%s3836_s11 + $0xf8] sm:$0xff] }
 0x82b   :  { %1763 = vmatmul.f32.vlgmr.msra.gmra.mxu0 %v1707_v39  ;;  %v1974_v39 = vld [vmem:[%s3836_s11 + $0x178] sm:$0xff]  ;;  %2010 = vmatpush.msrb.mxu3 %v1958_v37 }
 0x82c   :  { %2058 = vmatpush.msra.mxu0 %v1982_v6  ;;  %2030 = vmatpush.msra.mxu1 %v1974_v39  ;;  %v1968_v6 = vld [vmem:[%s3836_s11 + $0x148] sm:$0xff] }
 0x82d   :  { %1993 = vmatpush.msrb.mxu2 %v1939_v34 }
 0x82e   :  { %2059 = vmatpush.msra.mxu0 %v1981_v26  ;;  %2031 = vmatpush.msra.mxu1 %v1973_v16  ;;  %v1951_v26 = vld [vmem:[%s3836_s11 + $0xc0] sm:$0xff] }
 0x830   :  { %2060 = vmatpush.msra.mxu0 %v1980_v8  ;;  %2032 = vmatpush.msra.mxu1 %v1972_v18  ;;  %v1967_v8 = vld [vmem:[%s3836_s11 + $0x140] sm:$0xff] }
 0x832   :  { %2061 = vmatpush.msra.mxu0 %v1979_v38  ;;  %v1946_v38 = vld [vmem:[%s3836_s11 + $0x98] sm:$0xff] }
 0x833   :  { %v1702_v41 = vpop.permute.xlu0 %1701 }
 0x834   :  { %v1709_v43 = vsel %vm595_vm6, %v1687_v42, %v1702_v41  ;;  %2062 = vmatpush.msra.mxu0 %v1978_v40  ;;  %v1938_v41 = vld [vmem:[%s3836_s11 + $0x58] sm:$0xff]  ;;  %v1937_v42 = vld [vmem:[%s3836_s11 + $0x50] sm:$0xff] }
 0x835   :  { %1786 = vmatmul.f32.vlgmr.msra.gmra.mxu3 %v1709_v43  ;;  %1994 = vmatpush.msrb.mxu2 %v1938_v41  ;;  %v1936_v43 = vld [vmem:[%s3836_s11 + $0x48] sm:$0xff]  ;;  %v1962_v40 = vld [vmem:[%s3836_s11 + $0x118] sm:$0xff] }
 0x836   :  { %2063 = vmatpush.msra.mxu0 %v1977_v44  ;;  %v1945_v44 = vld [vmem:[%s3836_s11 + $0x90] sm:$0xff] }
 0x837   :  { %1995 = vmatpush.msrb.mxu2 %v1937_v42 }
 0x838   :  { %2064 = vmatpush.msra.mxu0 %v1976_v46  ;;  %v1961_v46 = vld [vmem:[%s3836_s11 + $0x110] sm:$0xff] }
 0x839   :  { %1996 = vmatpush.msrb.mxu2 %v1936_v43 }
 0x83a   :  { %2065 = vmatpush.msra.mxu0 %v1975_v45  ;;  %v1944_v45 = vld [vmem:[%s3836_s11 + $0x88] sm:$0xff] }
 0x83b   :  { %v1696_v50 = vpop.permute.xlu0 %1695  ;;  %1997 = vmatpush.msrb.mxu2 %v1935_v47 }
 0x83c   :  { %v1708_v55 = vsel %vm595_vm6, %v1684_v53, %v1696_v50  ;;  %v1934_v50 = vld [vmem:[%s3836_s11 + $0x38] sm:$0xff]  ;;  %v1933_v53 = vld [vmem:[%s3836_s11 + $0x30] sm:$0xff] }
 0x83d   :  { %1766 = vmatmul.f32.gmra.mxu0 %v1708_v55  ;;  %1789 = vmatmul.f32.gmra.mxu3 %v1710_v59  ;;  %v1932_v55 = vld [vmem:[%s3836_s11 + $0x28] sm:$0xff] }
 0x83e   :  { %1998 = vmatpush.msrb.mxu2 %v1934_v50 }
 0x840   :  { %1999 = vmatpush.msrb.mxu2 %v1933_v53 }
 0x842   :  { %2000 = vmatpush.msrb.mxu2 %v1932_v55 }
 0x844   :  { %2001 = vmatpush.msrb.mxu2 %v1931_v60 }
 0x846   :  { %2002 = vmatpush.msrb.mxu2 %v1930_v57  ;;  %v1017_v57 = vrot.slane %v3685_v51, 4 }
 0x8a8   :  { %v1764_v0 = vpop.f32.mrf.mxu0 }
 0x8a9   :  { %v1765_v9 = vadd.f32 %v2271_v3, %v1764_v0 }
 0x8b8   :  { %v1787_v5 = vpop.f32.mrf.mxu3 }
 0x8b9   :  { %v1788_v12 = vadd.f32 %v1787_v5, %v1765_v9 }
 0x8ba   :  { %v1767_v10 = vpop.f32.mrf.mxu0 }
 0x8bb   :  { %v1768_v14 = vadd.f32 %v2271_v3, %v1767_v10  ;;  %v1793_v17 = vmax.f32 %v1788_v12, 0.0  ;;  %v1007_v3 = vrot.slane %v3685_v51, 1 }
 0x8bd   :  { %v1805_v21 = vrot.slane %v1793_v17, 3  ;;  %v1796_v23 = vrot.slane %v1793_v17, 1  ;;  %v1801_v28 = vrot.slane %v1793_v17, 2 }
 0x8c0   :  { %v1790_v15 = vpop.f32.mrf.mxu3 }
 0x8c1   :  { %v1791_v61 = vadd.f32 %v1790_v15, %v1768_v14  ;;  %v1929_v14 = vld [vmem:[%s3836_s11 + $0x10] sm:$0xff] }
 0x8c2   :  { %v1957_v15 = vld [vmem:[%s3836_s11 + $0xf0] sm:$0xff]  ;;  %2003 = vmatpush.msrb.mxu2 %v1929_v14 }
 0x8c3   :  { %v1794_v19 = vmax.f32 %v1791_v61, 0.0  ;;  %2011 = vmatpush.msrb.mxu3 %v1957_v15  ;;  %v1956_v61 = vld [vmem:[%s3836_s11 + $0xe8] sm:$0xff] }
 0x8c5   :  { %v1806_v22 = vrot.slane %v1794_v19, 3  ;;  %v1802_v27 = vrot.slane %v1794_v19, 2  ;;  %2012 = vmatpush.msrb.mxu3 %v1956_v61  ;;  %v1927_v19 = vld [vmem:[%s3836_s11] sm:$0xff] }
 0x8c7   :  { %v1807_v52 = vsel %vm920_vm10, %v1805_v21, %v1806_v22  ;;  %v1803_v32 = vsel %vm915_vm11, %v1801_v28, %v1802_v27  ;;  %v1971_v21 = vld [vmem:[%s3836_s11 + $0x160] sm:$0xff]  ;;  %2013 = vmatpush.msrb.mxu3 %v1955_v20  ;;  %v1954_v22 = vld [vmem:[%s3836_s11 + $0xd8] sm:$0xff] }
 0x8c8   :  { %v2243_v25 = vpack.i.bf16 %v1807_v52, %v1796_v23  ;;  %v1970_v23 = vld [vmem:[%s3836_s11 + $0x158] sm:$0xff]  ;;  %2033 = vmatpush.msra.mxu1 %v1971_v21  ;;  %v1969_v52 = vld [vmem:[%s3836_s11 + $0x150] sm:$0xff] }
 0x8c9   :  { %2014 = vmatpush.msrb.mxu3 %v1954_v22  ;;  %v1950_v27 = vld [vmem:[%s3836_s11 + $0xb8] sm:$0xff] }
 0x8ca   :  { %2244 = vrot.lane.b32.xlu1 %v2243_v25, %s2304_s14  ;;  %2034 = vmatpush.msra.mxu1 %v1970_v23  ;;  %v1952_v25 = vld [vmem:[%s3836_s11 + $0xc8] sm:$0xff]  ;;  %v1966_v28 = vld [vmem:[%s3836_s11 + $0x138] sm:$0xff] }
 0x8cb   :  { %2015 = vmatpush.msrb.mxu3 %v1953_v24 }
 0x8cc   :  { %2035 = vmatpush.msra.mxu1 %v1969_v52 }
 0x8cd   :  { %2016 = vmatpush.msrb.mxu3 %v1952_v25 }
 0x8ce   :  { %2036 = vmatpush.msra.mxu1 %v1968_v6 }
 0x8cf   :  { %2017 = vmatpush.msrb.mxu3 %v1951_v26 }
 0x8d0   :  { %2037 = vmatpush.msra.mxu1 %v1967_v8 }
 0x8d1   :  { %2018 = vmatpush.msrb.mxu3 %v1950_v27 }
 0x8d2   :  { %2038 = vmatpush.msra.mxu1 %v1966_v28 }
 0x93c   :  { %v2245_v29 = vpop.permute.xlu1 %2244 }
 0x93d   :  { %v2247_v30 = vunpack.i.h.bf16 %v2245_v29  ;;  %v2246_v31 = vunpack.i.l.bf16 %v2245_v29  ;;  %v1949_v29 = vld [vmem:[%s3836_s11 + $0xb0] sm:$0xff] }
 0x93e   :  { %2019 = vmatpush.msrb.mxu3 %v1949_v29 }
 0x93f   :  { %v1811_v35 = vsel %vm595_vm6, %v1793_v17, %v2246_v31  ;;  %v1812_v36 = vsel %vm595_vm6, %v1803_v32, %v2247_v30  ;;  %v1928_v17 = vld [vmem:[%s3836_s11 + $0x8] sm:$0xff]  ;;  %v1965_v30 = vld [vmem:[%s3836_s11 + $0x130] sm:$0xff] }
 0x940   :  { %1865 = vmatmul.f32.vlgmr.msrb.gmra.mxu1 %v1811_v35  ;;  %1885 = vmatmul.f32.vlgmr.msrb.gmra.mxu0 %v1812_v36  ;;  %v1948_v31 = vld [vmem:[%s3836_s11 + $0xa8] sm:$0xff]  ;;  %v1947_v35 = vld [vmem:[%s3836_s11 + $0xa0] sm:$0xff] }
 0x941   :  { %2004 = vmatpush.msrb.mxu2 %v1928_v17  ;;  %v1964_v32 = vld [vmem:[%s3836_s11 + $0x128] sm:$0xff]  ;;  %2039 = vmatpush.msra.mxu1 %v1965_v30  ;;  %v1963_v36 = vld [vmem:[%s3836_s11 + $0x120] sm:$0xff] }
 0x942   :  { %2020 = vmatpush.msrb.mxu3 %v1948_v31 }
 0x943   :  { %2005 = vmatpush.msrb.mxu2 %v1927_v19  ;;  %2040 = vmatpush.msra.mxu1 %v1964_v32 }
 0x944   :  { %2021 = vmatpush.msrb.mxu3 %v1947_v35 }
 0x945   :  { %2041 = vmatpush.msra.mxu1 %v1963_v36 }
 0x946   :  { %2022 = vmatpush.msrb.mxu3 %v1946_v38 }
 0x947   :  { %2042 = vmatpush.msra.mxu1 %v1962_v40 }
 0x948   :  { %2023 = vmatpush.msrb.mxu3 %v1945_v44 }
 0x949   :  { %2043 = vmatpush.msra.mxu1 %v1961_v46 }
 0x94a   :  { %2024 = vmatpush.msrb.mxu3 %v1944_v45 }
 0x94b   :  { %2044 = vmatpush.msra.mxu1 %v1960_v48 }
 0x94c   :  { %2025 = vmatpush.msrb.mxu3 %v1943_v49 }
 0x94d   :  { %2045 = vmatpush.msra.mxu1 %v1959_v33 }
 0x9bd   :  { %v1866_v59 = vpop.f32.mrf.mxu1  ;;  %v1886_v56 = vpop.f32.mrf.mxu0 }
 0x9be   :  { %v1867_v63 = vadd.f32 %v2272_v54, %v1866_v59 }
 0x9c0   :  { %v1887_v62 = vadd.f32 %v1886_v56, %v1867_v63 }
 0x9c2   :  { %v3690_v0 = vmax.f32 %v1887_v62, 0.0 }
 0x9c4   :  { %v2128_v5 = vrot.slane %v3690_v0, 13  ;;  %v1903_v4 = vrot.slane %v3690_v0, 5  ;;  %v1897_v7 = vrot.slane %v3690_v0, 3  ;;  %v1891_v9 = vrot.slane %v3690_v0, 1 }
 0x9c5   :  { %v1901_v53 = vrot.slane %v3690_v0, 4  ;;  %v1895_v55 = vrot.slane %v3690_v0, 2 }
 0x9c6   :  { %v1926_v10 = vsel %vm1922_vm12, %v1023_v1, %v2128_v5  ;;  %v2258_v11 = vpack.i.bf16 %v1019_v2, %v1903_v4  ;;  %v2253_v12 = vpack.i.bf16 %v1013_v58, %v1897_v7  ;;  %v2248_v13 = vpack.i.bf16 %v1007_v3, %v1891_v9  ;;  %v2273_v9 = vld [vmem:[%s3837_s12] ss:$0 sm:$0xff] }
 0x9c7   :  { %2129 = vmatmul.msk.f32.vlgmr.msra.gmra.mxu0 %vm595_vm6, %v1926_v10  ;;  %v1011_v1 = vrot.slane %v3685_v51, 2 }
 0x9c8   :  { %2259 = vrot.lane.b32.xlu1 %v2258_v11, %s2304_s14  ;;  %2254 = vrot.lane.b32.xlu0 %v2253_v12, %s2304_s14 }
 0x9c9   :  { %2249 = vrot.lane.b32.xlu2 %v2248_v13, %s2304_s14 }
 0xa23   :  { %v2250_v34 = vpop.permute.xlu2 %2249 }
 0xa24   :  { %v2252_v37 = vunpack.i.h.bf16 %v2250_v34  ;;  %v2251_v39 = vunpack.i.l.bf16 %v2250_v34 }
 0xa26   :  { %v1908_v41 = vsel %vm595_vm6, %v3690_v0, %v2251_v39  ;;  %v1025_v43 = vsel %vm595_vm6, %v3685_v51, %v2252_v37 }
 0xa27   :  { %v1914_v42 = vrot.slane %v1908_v41, 7 }
 0xa29   :  { %v1923_v47 = vsel %vm1922_vm12, %v1025_v43, %v1914_v42 }
 0xa2a   :  { %2006 = vmatmul.f32.vlgmr.msrb.gmra.mxu2 %v1923_v47 }
 0xa3a   :  { %v2260_v50 = vpop.permute.xlu1 %2259  ;;  %v2255_v54 = vpop.permute.xlu0 %2254 }
 0xa3b   :  { %v2262_v59 = vunpack.i.h.bf16 %v2260_v50  ;;  %v2261_v60 = vunpack.i.l.bf16 %v2260_v50  ;;  %v2257_v63 = vunpack.i.h.bf16 %v2255_v54  ;;  %v2256_v56 = vunpack.i.l.bf16 %v2255_v54 }
 0xa3d   :  { %v1910_v62 = vsel %vm595_vm6, %v1901_v53, %v2261_v60  ;;  %v1909_v2 = vsel %vm595_vm6, %v1895_v55, %v2256_v56  ;;  %v1027_v5 = vsel %vm595_vm6, %v1017_v57, %v2262_v59  ;;  %v1026_v4 = vsel %vm595_vm6, %v1011_v1, %v2257_v63 }
 0xa3e   :  { %v1916_v58 = vrot.slane %v1910_v62, 7  ;;  %v1915_v3 = vrot.slane %v1909_v2, 7 }
 0xa40   :  { %v1924_v0 = vsel %vm1922_vm12, %v1026_v4, %v1915_v3  ;;  %v1925_v7 = vsel %vm1922_vm12, %v1027_v5, %v1916_v58 }
 0xa41   :  { %2026 = vmatmul.f32.vlgmr.msrb.gmra.mxu3 %v1924_v0  ;;  %2046 = vmatmul.f32.vlgmr.msra.gmra.mxu1 %v1925_v7 }
 0xa44   :  { %v2067_v15 = vpop.f32.mrf.mxu0 }
 0xaad   :  { %v2007_v10 = vpop.f32.mrf.mxu2 }
 0xaae   :  { %v2008_v51 = vadd.f32 %v2273_v9, %v2007_v10 }
 0xabe   :  { %v2047_v13 = vpop.f32.mrf.mxu1 }
 0xac4   :  { %v2027_v11 = vpop.f32.mrf.mxu3 }
 0xac5   :  { %v2028_v12 = vadd.f32 %v2027_v11, %v2008_v51 }
 0xac7   :  { %v2048_v14 = vadd.f32 %v2047_v13, %v2028_v12 }
 0xac9   :  { %v2068_v16 = vadd.f32 %v2067_v15, %v2048_v14 }
 0xacb   :  { %2071 = vst.msk [vmem:[#allocation6] sm:$0x3] %vm2070_vm13, %v2068_v16 }
 0xacc   :  { %2082 = dma.vmem_to_hbm [thread:$0]  %s2078_s9, 32, %s2080_s26, [#allocation7]  }
 0xacd   :  { %2298 = dma.done.wait [#allocation7], 32  }
 0xace   :  { %2299 = vsyncadd [#allocation7], 4294967264 }
 0xacf   :  { %2087 = vsyncpa [#allocation7], 1 }

</bundles_post_ra>
